<compile_context>
chip_gen: v7x
topology: tpu7x:2x2x1
jax: 0.10.0
libtpu: 0.0.40
codegen_flags: <defaults>
</compile_context>

<pallas_src>
import jax
import jax.numpy as jnp
from jax.experimental import pallas as pl
from jax.experimental.pallas import tpu as pltpu

F32 = jnp.float32
BF16 = jnp.bfloat16

VMEM_LIMIT_BYTES = 48 * 1024 * 1024   # > v5e/v6e scoped defaults, < v7x 64 MiB physical


def _round_up(x, m):
    return ((x + m - 1) // m) * m


# ----------------------------------------------------------------------------
# Kernel 1: fc prep -> fc_gates = relu(fc @ w_fc + b_fc) @ w_af + b_a
# (time-invariant attention-LSTM gate contribution, computed once)
# ----------------------------------------------------------------------------
def fc_prep_kernel(fc_ref, w_fc_ref, b_fc_ref, w_af_ref, b_a_ref, fc_gate_ref):
    fc_emb = jnp.maximum(
        jnp.dot(fc_ref[...].astype(BF16), w_fc_ref[...],
                preferred_element_type=F32) + b_fc_ref[...], 0.0)
    fc_gate_ref[...] = jnp.dot(fc_emb.astype(BF16), w_af_ref[...],
                               preferred_element_type=F32) + b_a_ref[...]


# ----------------------------------------------------------------------------
# Kernel 2: att prep (att_embed + ctx2att), tiled over 8-row batch blocks.
# Outputs stored bf16 (MXU operands downstream; halves HBM/VMEM footprint).
# ----------------------------------------------------------------------------
def att_prep_kernel(att_ref, w_ae_ref, b_ae_ref, w_ctx_ref, b_ctx_ref,
                    att_out_ref, patt_out_ref):
    bt, L, Da = att_ref.shape
    a = att_ref[...].reshape(bt * L, Da)
    emb = jnp.maximum(
        jnp.dot(a.astype(BF16), w_ae_ref[...], preferred_element_type=F32)
        + b_ae_ref[...], 0.0)                                   # (bt*L, F) f32
    att_out_ref[...] = emb.astype(BF16).reshape(bt, L, -1)
    patt = (jnp.dot(emb.astype(BF16), w_ctx_ref[...],
                    preferred_element_type=F32) + b_ctx_ref[...])
    patt_out_ref[...] = patt.astype(BF16).reshape(bt, L, -1)


# ----------------------------------------------------------------------------
# Kernel 3: word-embedding gate projection (one big time-parallel GEMM)
# we_gates[t] = relu(embed[caption_t]) @ w_aw
# ----------------------------------------------------------------------------
def wgate_kernel(we_ref, w_aw_ref, out_ref):
    tb, b, ew = we_ref.shape
    x = we_ref[...].reshape(tb * b, ew)
    g = jnp.dot(x.astype(BF16), w_aw_ref[...], preferred_element_type=F32)
    out_ref[...] = g.reshape(tb, b, -1)


# ----------------------------------------------------------------------------
# Kernel 4: recurrent step kernel.
# Grid: (batch blocks ["parallel"], time blocks ["arbitrary"]).
# State in VMEM scratch; T_BLK (<=4) timesteps per invocation (Python loop).
# att_lstm -> attention (tanh/softmax/weighted-sum) -> lang_lstm -> h_lang out
# ----------------------------------------------------------------------------
def step_kernel(weg_ref, fcg_ref, attf_ref, patt_ref,
                w_ah_ref, w_ahh_ref, w_la_ref, w_lh_ref, w_lhh_ref, b_l_ref,
                w_h2att_ref, b_h2att_ref, w_alpha_ref,
                h_out_ref,
                h_att_s, c_att_s, h_lang_s, c_lang_s):
    H = h_att_s.shape[-1]
    t_block = weg_ref.shape[0]

    @pl.when(pl.program_id(1) == 0)            # init_hidden at start of each
    def _():                                    # batch block's time sweep
        h_att_s[...] = jnp.zeros_like(h_att_s)
        c_att_s[...] = jnp.zeros_like(c_att_s)
        h_lang_s[...] = jnp.zeros_like(h_lang_s)
        c_lang_s[...] = jnp.zeros_like(c_lang_s)

    # Hoist all time-invariant loads out of the inner time loop.
    fcg = fcg_ref[...]                          # (Bb, 4H) f32
    attf = attf_ref[...]                        # (Bb, L, F) bf16
    patt = patt_ref[...]                        # (Bb, L, A) bf16
    w_ah = w_ah_ref[...]                        # (H, 4H)  bf16
    w_ahh = w_ahh_ref[...]                      # (H, 4H)  bf16
    w_la = w_la_ref[...]                        # (F, 4H)  bf16
    w_lh = w_lh_ref[...]                        # (H, 4H)  bf16
    w_lhh = w_lhh_ref[...]                      # (H, 4H)  bf16
    b_l = b_l_ref[...]                          # (1, 4H)  f32
    w_h2att = w_h2att_ref[...]                  # (H, A)   bf16
    b_h2att = b_h2att_ref[...]                  # (1, A)   f32
    w_alpha = w_alpha_ref[...][None, :, :]      # (1, 1, A) f32

    def lstm(gates, c_prev):
        i_g = jax.nn.sigmoid(gates[:, 0 * H:1 * H])
        f_g = jax.nn.sigmoid(gates[:, 1 * H:2 * H])
        g_g = jnp.tanh(gates[:, 2 * H:3 * H])
        o_g = jax.nn.sigmoid(gates[:, 3 * H:4 * H])
        c_new = f_g * c_prev + i_g * g_g
        return o_g * jnp.tanh(c_new), c_new

    h_att, c_att = h_att_s[...], c_att_s[...]
    h_lang, c_lang = h_lang_s[...], c_lang_s[...]

    # T_BLK <= 4: bounded live ranges with a plain unrolled loop.
    for tt in range(t_block):
        # --- attention LSTM: split accumulating bf16 dots (no per-step concat)
        g1 = (weg_ref[tt] + fcg
              + jnp.dot(h_lang.astype(BF16), w_ah, preferred_element_type=F32)
              + jnp.dot(h_att.astype(BF16), w_ahh, preferred_element_type=F32))
        h_att, c_att = lstm(g1, c_att)

        # --- attention module (softmax over L); element-wise math stays f32
        ha = jnp.dot(h_att.astype(BF16), w_h2att,
                     preferred_element_type=F32) + b_h2att
        p = jnp.tanh(patt + ha[:, None, :])          # bf16 + f32 -> f32 tanh
        # alpha_net bias is constant over L -> softmax-invariant -> dropped.
        e = jnp.sum(p * w_alpha, axis=-1)            # (Bb, L) f32
        e = e - jnp.max(e, axis=1, keepdims=True)
        ew = jnp.exp(e)
        wsm = ew * pl.reciprocal(jnp.sum(ew, axis=1, keepdims=True), approx=True)
        att_res = jnp.sum(wsm[:, :, None] * attf, axis=1)   # (Bb, F) f32

        # --- language LSTM: split accumulating bf16 dots
        g2 = (jnp.dot(att_res.astype(BF16), w_la, preferred_element_type=F32)
              + jnp.dot(h_att.astype(BF16), w_lh, preferred_element_type=F32)
              + jnp.dot(h_lang.astype(BF16), w_lhh, preferred_element_type=F32)
              + b_l)
        h_lang, c_lang = lstm(g2, c_lang)

        h_out_ref[tt] = h_lang

    h_att_s[...] = h_att
    c_att_s[...] = c_att
    h_lang_s[...] = h_lang
    c_lang_s[...] = c_lang


# ----------------------------------------------------------------------------
# Kernel 5: classifier + log_softmax, time-parallel over the h_lang slab.
# V padded to a 128 multiple (lane-dense stores); padded b_cls = -1e9.
# ----------------------------------------------------------------------------
def cls_kernel(h_ref, w_cls_ref, b_cls_ref, out_ref):
    tb, b, h = h_ref.shape
    x = h_ref[...].reshape(tb * b, h)
    logits = jnp.dot(x.astype(BF16), w_cls_ref[...],
                     preferred_element_type=F32) + b_cls_ref[...]
    z = logits - jnp.max(logits, axis=1, keepdims=True)
    lse = jnp.log(jnp.sum(jnp.exp(z), axis=1, keepdims=True))
    out_ref[...] = (z - lse).reshape(tb, b, -1)


# ----------------------------------------------------------------------------
# Wrapper
# ----------------------------------------------------------------------------
@jax.jit
def decoder_forward_xe(params, fc_feats, att_feats, captions):
    B, L, Da = att_feats.shape
    T = captions.shape[1]
    steps = T - 1
    V, Ew = params['embed'].shape
    Ff = params['w_fc'].shape[1]                 # feat_emb_dim
    A = params['w_ctx'].shape[1]                 # att_hid_dim
    H = params['w_ahh'].shape[0]
    H4 = 4 * H

    # --- batch / vocab padding -----------------------------------------------
    B_pad = _round_up(B, 8)                      # sublane-dense ops & stores
    Vp = _round_up(V, 128)                       # lane-dense classifier output
    if B_pad != B:
        fc_feats = jnp.pad(fc_feats, ((0, B_pad - B), (0, 0)))
        att_feats = jnp.pad(att_feats, ((0, B_pad - B), (0, 0), (0, 0)))
        captions = jnp.pad(captions, ((0, B_pad - B), (0, 0)))

    # --- time blocking --------------------------------------------------------
    T_BLK = min(4, steps)                        # recurrent block (<= 4)
    n_tblk = pl.cdiv(steps, T_BLK)
    padded_rec = n_tblk * T_BLK
    # Time-parallel kernels get a bigger block so the MXU sees M >= 256.
    T_CLS = min(padded_rec, _round_up(max(1, pl.cdiv(256, B_pad)), T_BLK))
    n_tcls = pl.cdiv(padded_rec, T_CLS)
    padded_par = n_tcls * T_CLS

    # --- bf16 copies of every MXU weight operand (f32 accumulation) ----------
    w_fc = params['w_fc'].astype(BF16)
    w_af = params['w_af'].astype(BF16)
    w_ae = params['w_attemb'].astype(BF16)
    w_ctx = params['w_ctx'].astype(BF16)
    w_aw = params['w_aw'].astype(BF16)
    w_ah = params['w_ah'].astype(BF16)
    w_ahh = params['w_ahh'].astype(BF16)
    w_la = params['w_la'].astype(BF16)
    w_lh = params['w_lh'].astype(BF16)
    w_lhh = params['w_lhh'].astype(BF16)
    w_h2att = params['w_h2att'].astype(BF16)
    w_cls = params['w_cls']
    b_cls = params['b_cls']
    if Vp != V:
        w_cls = jnp.pad(w_cls, ((0, 0), (0, Vp - V)))
        b_cls = jnp.pad(b_cls, ((0, 0), (0, Vp - V)), constant_values=-1e9)
    w_cls = w_cls.astype(BF16)

    # --- fc prep: time-invariant att-LSTM gate contribution ------------------
    fc_gates = pl.pallas_call(
        fc_prep_kernel,
        out_shape=jax.ShapeDtypeStruct((B_pad, H4), F32),
    )(fc_feats, w_fc, params['b_fc'], w_af, params['b_a'])

    # --- att prep: 8-row batch tiles, bf16 outputs ----------------------------
    BT = 8
    att_emb, p_att = pl.pallas_call(
        att_prep_kernel,
        out_shape=(jax.ShapeDtypeStruct((B_pad, L, Ff), BF16),
                   jax.ShapeDtypeStruct((B_pad, L, A), BF16)),
        grid=(B_pad // BT,),
        in_specs=[pl.BlockSpec((BT, L, Da), lambda b: (b, 0, 0)),
                  pl.BlockSpec(w_ae.shape, lambda b: (0, 0)),
                  pl.BlockSpec(params['b_attemb'].shape, lambda b: (0, 0)),
                  pl.BlockSpec(w_ctx.shape, lambda b: (0, 0)),
                  pl.BlockSpec(params['b_ctx'].shape, lambda b: (0, 0))],
        out_specs=(pl.BlockSpec((BT, L, Ff), lambda b: (b, 0, 0)),
                   pl.BlockSpec((BT, L, A), lambda b: (b, 0, 0))),
        compiler_params=pltpu.CompilerParams(
            dimension_semantics=("parallel",),
            vmem_limit_bytes=VMEM_LIMIT_BYTES),
    )(att_feats, w_ae, params['b_attemb'], w_ctx, params['b_ctx'])

    # --- word_embed gather (time-major, no big transpose) ---------------------
    ids = jnp.transpose(captions[:, :steps], (1, 0))          # (steps, B_pad)
    ids = jnp.pad(ids, ((0, padded_par - steps), (0, 0)))
    we = jax.nn.relu(jnp.take(params['embed'], ids, axis=0))  # (padded_par, B_pad, Ew)

    # --- word-embedding gate projection: one big time-parallel GEMM ----------
    we_gates = pl.pallas_call(
        wgate_kernel,
        out_shape=jax.ShapeDtypeStruct((padded_par, B_pad, H4), F32),
        grid=(n_tcls,),
        in_specs=[pl.BlockSpec((T_CLS, B_pad, Ew), lambda t: (t, 0, 0)),
                  pl.BlockSpec(w_aw.shape, lambda t: (0, 0))],
        out_specs=pl.BlockSpec((T_CLS, B_pad, H4), lambda t: (t, 0, 0)),
        compiler_params=pltpu.CompilerParams(
            dimension_semantics=("parallel",),
            vmem_limit_bytes=VMEM_LIMIT_BYTES),
    )(we, w_aw)

    # --- recurrent step kernel -------------------------------------------------
    # v7x: split the batch across the two TensorCores (leading "parallel" axis);
    # time axis stays sequential ("arbitrary") because state lives in scratch.
    n_bblk = 2 if (B_pad % 16 == 0) else 1
    B_blk = B_pad // n_bblk

    def _const_spec(a):
        nd = a.ndim
        return pl.BlockSpec(a.shape, lambda b, t, _nd=nd: (0,) * _nd)

    weights = [w_ah, w_ahh, w_la, w_lh, w_lhh, params['b_l'],
               w_h2att, params['b_h2att'], params['w_alpha']]

    in_specs = ([pl.BlockSpec((T_BLK, B_blk, H4), lambda b, t: (t, b, 0)),   # weg
                 pl.BlockSpec((B_blk, H4), lambda b, t: (b, 0)),             # fcg
                 pl.BlockSpec((B_blk, L, Ff), lambda b, t: (b, 0, 0)),       # attf
                 pl.BlockSpec((B_blk, L, A), lambda b, t: (b, 0, 0))]        # patt
                + [_const_spec(w) for w in weights])

    h_all = pl.pallas_call(
        step_kernel,
        out_shape=jax.ShapeDtypeStruct((padded_rec, B_pad, H), F32),
        grid=(n_bblk, n_tblk),
        in_specs=in_specs,
        out_specs=pl.BlockSpec((T_BLK, B_blk, H), lambda b, t: (t, b, 0)),
        scratch_shapes=[pltpu.VMEM((B_blk, H), F32) for _ in range(4)],
        compiler_params=pltpu.CompilerParams(
            dimension_semantics=("parallel", "arbitrary"),
            vmem_limit_bytes=VMEM_LIMIT_BYTES),
    )(we_gates, fc_gates, att_emb, p_att, *weights)

    # --- classifier + log_softmax: time-parallel, lane-dense Vp --------------
    h_cls = h_all
    if padded_par != padded_rec:
        h_cls = jnp.pad(h_all, ((0, padded_par - padded_rec), (0, 0), (0, 0)))

    logp = pl.pallas_call(
        cls_kernel,
        out_shape=jax.ShapeDtypeStruct((padded_par, B_pad, Vp), F32),
        grid=(n_tcls,),
        in_specs=[pl.BlockSpec((T_CLS, B_pad, H), lambda t: (t, 0, 0)),
                  pl.BlockSpec(w_cls.shape, lambda t: (0, 0)),
                  pl.BlockSpec(b_cls.shape, lambda t: (0, 0))],
        out_specs=pl.BlockSpec((T_CLS, B_pad, Vp), lambda t: (t, 0, 0)),
        compiler_params=pltpu.CompilerParams(
            dimension_semantics=("parallel",),
            vmem_limit_bytes=VMEM_LIMIT_BYTES),
    )(h_cls, w_cls, b_cls)

    # (B, T-1, V) == torch.stack(outputs, 1)
    return jnp.transpose(logp[:steps, :B, :V], (1, 0, 2))


# ----------------------------------------------------------------------------
# Pure-JAX reference (for sanity check)
# ----------------------------------------------------------------------------
def ref_forward_xe(params, fc_feats, att_feats, captions):
    hp = jax.lax.Precision.HIGHEST
    dot = lambda a, b: jnp.dot(a, b, precision=hp)
    relu = jax.nn.relu
    B, L, Da = att_feats.shape
    H = params['w_ahh'].shape[0]

    fc_emb = relu(dot(fc_feats, params['w_fc']) + params['b_fc'])
    att_emb = relu(dot(att_feats.reshape(B * L, Da), params['w_attemb'])
                   + params['b_attemb']).reshape(B, L, -1)
    p_att = (dot(att_emb.reshape(B * L, -1), params['w_ctx'])
             + params['b_ctx']).reshape(B, L, -1)

    we_all = relu(params['embed'][captions[:, :-1]])   # (B, T-1, Ew)
    h_att = c_att = h_lang = c_lang = jnp.zeros((B, H), jnp.float32)
    outs = []
    for t in range(captions.shape[1] - 1):
        we = we_all[:, t]
        g = (dot(h_lang, params['w_ah']) + dot(fc_emb, params['w_af'])
             + dot(we, params['w_aw']) + dot(h_att, params['w_ahh']) + params['b_a'])
        i1, f1, c1, o1 = (jax.nn.sigmoid(g[:, :H]), jax.nn.sigmoid(g[:, H:2 * H]),
                          jnp.tanh(g[:, 2 * H:3 * H]), jax.nn.sigmoid(g[:, 3 * H:]))
        c_att = f1 * c_att + i1 * c1
        h_att = o1 * jnp.tanh(c_att)

        ha = dot(h_att, params['w_h2att']) + params['b_h2att']
        p = jnp.tanh(p_att + ha[:, None, :])
        e = jnp.sum(p * params['w_alpha'][None], axis=-1) + params['b_alpha']
        w = jax.nn.softmax(e, axis=1)
        att_res = jnp.einsum('bl,blf->bf', w, att_emb, precision=hp)

        g2 = (dot(att_res, params['w_la']) + dot(h_att, params['w_lh'])
              + dot(h_lang, params['w_lhh']) + params['b_l'])
        i2, f2, c2, o2 = (jax.nn.sigmoid(g2[:, :H]), jax.nn.sigmoid(g2[:, H:2 * H]),
                          jnp.tanh(g2[:, 2 * H:3 * H]), jax.nn.sigmoid(g2[:, 3 * H:]))
        c_lang = f2 * c_lang + i2 * c2
        h_lang = o2 * jnp.tanh(c_lang)

        logits = dot(h_lang, params['w_cls']) + params['b_cls']
        outs.append(jax.nn.log_softmax(logits, axis=1))
    return jnp.stack(outs, axis=1)


# ----------------------------------------------------------------------------
# Deterministic parameter init + example run
# ----------------------------------------------------------------------------
def init_params(key, vocab_size, pad_id, fc_feat_dim, att_feat_dim,
                feat_emb_dim, word_emb_dim, rnn_hid_dim, att_hid_dim):
    ks = jax.random.split(key, 24)
    n = iter(range(24))
    rnd = lambda shape, s=0.1: (s * jax.random.normal(ks[next(n)], shape)).astype(jnp.float32)
    H4 = 4 * rnn_hid_dim
    embed = rnd((vocab_size, word_emb_dim))
    embed = embed.at[pad_id].set(0.0)          # padding_idx row zeroed
    return dict(
        embed=embed,
        w_fc=rnd((fc_feat_dim, feat_emb_dim)), b_fc=rnd((1, feat_emb_dim)),
        w_attemb=rnd((att_feat_dim, feat_emb_dim)), b_attemb=rnd((1, feat_emb_dim)),
        w_ctx=rnd((feat_emb_dim, att_hid_dim)), b_ctx=rnd((1, att_hid_dim)),
        # att_lstm (input split: prev_h_lang | fc_emb | word_emb)
        w_ah=rnd((rnn_hid_dim, H4)), w_af=rnd((feat_emb_dim, H4)), w_aw=rnd((word_emb_dim, H4)),
        w_ahh=rnd((rnn_hid_dim, H4)), b_a=rnd((1, H4)),
        # lang_lstm (input split: att_res | h_att)
        w_la=rnd((feat_emb_dim, H4)), w_lh=rnd((rnn_hid_dim, H4)),
        w_lhh=rnd((rnn_hid_dim, H4)), b_l=rnd((1, H4)),
        # attention
        w_h2att=rnd((rnn_hid_dim, att_hid_dim)), b_h2att=rnd((1, att_hid_dim)),
        w_alpha=rnd((1, att_hid_dim)), b_alpha=rnd((1, 1)),
        # classifier
        w_cls=rnd((rnn_hid_dim, vocab_size)), b_cls=rnd((1, vocab_size)),
    )


if __name__ == "__main__":
    # Synthetic vocabulary / settings (small, consistent with the module)
    idx2word = ['<PAD>', '<UNK>', '<SOS>', '<EOS>'] + [f'w{i}' for i in range(28)]
    vocab_size = len(idx2word)          # 32
    pad_id = idx2word.index('<PAD>')
    B, L, T = 2, 8, 8                   # batch, att locations, caption length
    fc_feat_dim, att_feat_dim = 16, 16
    feat_emb_dim = word_emb_dim = rnn_hid_dim = att_hid_dim = 32

    key = jax.random.PRNGKey(0)
    kp, kf, ka, kc = jax.random.split(key, 4)
    params = init_params(kp, vocab_size, pad_id, fc_feat_dim, att_feat_dim,
                         feat_emb_dim, word_emb_dim, rnn_hid_dim, att_hid_dim)

    fc_feats = jax.random.normal(kf, (B, fc_feat_dim), jnp.float32)
    att_feats = jax.random.normal(ka, (B, L, att_feat_dim), jnp.float32)
    captions = jax.random.randint(kc, (B, T), 0, vocab_size, dtype=jnp.int32)

    out = decoder_forward_xe(params, fc_feats, att_feats, captions)
    out = jax.block_until_ready(out)

    ref = ref_forward_xe(params, fc_feats, att_feats, captions)
    assert out.shape == (B, T - 1, vocab_size)
    assert bool(jnp.all(jnp.isfinite(out)))
    assert bool(jnp.allclose(out, ref, rtol=5e-2, atol=5e-2)), "mismatch vs reference"

    # TODO(synk): forward_rl sampling (multinomial) and beam-search `sample` are
    # host-side / data-dependent control flow and are not implemented as kernels.
    print("KERNEL_OK")
</pallas_src>

<mosaic_0001>
module attributes {stable_mosaic.version = 11 : i64} {
  func.func @wgate_kernel(%arg0: i32, %arg1: memref<8x8x32xf32, #tpu.memory_space<vmem>>, %arg2: memref<32x128xbf16, #tpu.memory_space<vmem>>, %arg3: memref<8x8x128xf32, #tpu.memory_space<vmem>>) attributes {dimension_semantics = [#tpu.dimension_semantics<parallel>], iteration_bounds = array<i64: 1>, scalar_prefetch = 0 : i64, scratch_operands = 0 : i64, tpu.core_type = #tpu.core_type<tc>, window_params = [{transform_indices = @transform_0, window_bounds = array<i64: 8, 8, 32>}, {pipeline_mode = #tpu.pipeline_mode<synchronous>, transform_indices = @transform_1, window_bounds = array<i64: 32, 128>}, {transform_indices = @transform_2, window_bounds = array<i64: 8, 8, 128>}]} {
    %c0 = arith.constant 0 : index
    %c0_0 = arith.constant 0 : index
    %c0_1 = arith.constant 0 : index
    %0 = vector.load %arg1[%c0, %c0_0, %c0_1] : memref<8x8x32xf32, #tpu.memory_space<vmem>>, vector<8x8x32xf32>
    %1 = vector.shape_cast %0 : vector<8x8x32xf32> to vector<64x32xf32>
    %2 = arith.truncf %1 : vector<64x32xf32> to vector<64x32xbf16>
    %c0_2 = arith.constant 0 : index
    %c0_3 = arith.constant 0 : index
    %3 = vector.load %arg2[%c0_2, %c0_3] : memref<32x128xbf16, #tpu.memory_space<vmem>>, vector<32x128xbf16>
    %cst = arith.constant dense<0.000000e+00> : vector<64x128xf32>
    %4 = tpu.matmul %2, %3, %cst {dimension_numbers = #tpu.dot_dimension_numbers<[1], [0], [0], [1], [0, 0, 1, 1], [], []>} : vector<64x32xbf16>, vector<32x128xbf16>, vector<64x128xf32> -> vector<64x128xf32>
    %5 = vector.shape_cast %4 : vector<64x128xf32> to vector<8x8x128xf32>
    %c0_4 = arith.constant 0 : index
    %c0_5 = arith.constant 0 : index
    %c0_6 = arith.constant 0 : index
    %6 = vector.load %arg3[%c0_4, %c0_5, %c0_6] : memref<8x8x128xf32, #tpu.memory_space<vmem>>, vector<8x8x128xf32>
    tpu.vector_store %arg3[%c0_4, %c0_5, %c0_6], %5 {strides = array<i32>} : memref<8x8x128xf32, #tpu.memory_space<vmem>>, vector<8x8x128xf32>,
    return
  }
  func.func @transform_0(%arg0: i32) -> (i32, i32, i32) {
    %c0_i32 = arith.constant 0 : i32
    %c0_i32_0 = arith.constant 0 : i32
    %c0_i32_1 = arith.constant 0 : i32
    return %arg0, %c0_i32, %c0_i32_0 : i32, i32, i32
  }
  func.func @transform_1(%arg0: i32) -> (i32, i32) {
    %c0_i32 = arith.constant 0 : i32
    %c0_i32_0 = arith.constant 0 : i32
    %c0_i32_1 = arith.constant 0 : i32
    return %c0_i32, %c0_i32_0 : i32, i32
  }
  func.func @transform_2(%arg0: i32) -> (i32, i32, i32) {
    %c0_i32 = arith.constant 0 : i32
    %c0_i32_0 = arith.constant 0 : i32
    %c0_i32_1 = arith.constant 0 : i32
    return %arg0, %c0_i32, %c0_i32_0 : i32, i32, i32
  }
}

module attributes {stable_mosaic.version = 11 : i64} {
  func.func @att_prep_kernel(%arg0: i32, %arg1: memref<8x8x16xf32, #tpu.memory_space<vmem>>, %arg2: memref<16x32xbf16, #tpu.memory_space<vmem>>, %arg3: memref<1x32xf32, #tpu.memory_space<vmem>>, %arg4: memref<32x32xbf16, #tpu.memory_space<vmem>>, %arg5: memref<1x32xf32, #tpu.memory_space<vmem>>, %arg6: memref<8x8x32xbf16, #tpu.memory_space<vmem>>, %arg7: memref<8x8x32xbf16, #tpu.memory_space<vmem>>) attributes {dimension_semantics = [#tpu.dimension_semantics<parallel>], iteration_bounds = array<i64: 1>, scalar_prefetch = 0 : i64, scratch_operands = 0 : i64, tpu.core_type = #tpu.core_type<tc>, window_params = [{transform_indices = @transform_0, window_bounds = array<i64: 8, 8, 16>}, {pipeline_mode = #tpu.pipeline_mode<synchronous>, transform_indices = @transform_1, window_bounds = array<i64: 16, 32>}, {pipeline_mode = #tpu.pipeline_mode<synchronous>, transform_indices = @transform_2, window_bounds = array<i64: 1, 32>}, {pipeline_mode = #tpu.pipeline_mode<synchronous>, transform_indices = @transform_3, window_bounds = array<i64: 32, 32>}, {pipeline_mode = #tpu.pipeline_mode<synchronous>, transform_indices = @transform_4, window_bounds = array<i64: 1, 32>}, {transform_indices = @transform_5, window_bounds = array<i64: 8, 8, 32>}, {transform_indices = @transform_6, window_bounds = array<i64: 8, 8, 32>}]} {
    %c0 = arith.constant 0 : index
    %c0_0 = arith.constant 0 : index
    %c0_1 = arith.constant 0 : index
    %0 = vector.load %arg1[%c0, %c0_0, %c0_1] : memref<8x8x16xf32, #tpu.memory_space<vmem>>, vector<8x8x16xf32>
    %1 = vector.shape_cast %0 : vector<8x8x16xf32> to vector<64x16xf32>
    %2 = arith.truncf %1 : vector<64x16xf32> to vector<64x16xbf16>
    %c0_2 = arith.constant 0 : index
    %c0_3 = arith.constant 0 : index
    %3 = vector.load %arg2[%c0_2, %c0_3] : memref<16x32xbf16, #tpu.memory_space<vmem>>, vector<16x32xbf16>
    %cst = arith.constant dense<0.000000e+00> : vector<64x32xf32>
    %4 = tpu.matmul %2, %3, %cst {dimension_numbers = #tpu.dot_dimension_numbers<[1], [0], [0], [1], [0, 0, 1, 1], [], []>} : vector<64x16xbf16>, vector<16x32xbf16>, vector<64x32xf32> -> vector<64x32xf32>
    %c0_4 = arith.constant 0 : index
    %c0_5 = arith.constant 0 : index
    %5 = vector.load %arg3[%c0_4, %c0_5] : memref<1x32xf32, #tpu.memory_space<vmem>>, vector<1x32xf32>
    %6 = vector.broadcast %5 : vector<1x32xf32> to vector<64x32xf32>
    %7 = arith.addf %4, %6 : vector<64x32xf32>
    %cst_6 = arith.constant 0.000000e+00 : f32
    %8 = vector.broadcast %cst_6 : f32 to vector<64x32xf32>
    %9 = arith.maximumf %7, %8 : vector<64x32xf32>
    %10 = arith.truncf %9 : vector<64x32xf32> to vector<64x32xbf16>
    %11 = vector.shape_cast %10 : vector<64x32xbf16> to vector<8x8x32xbf16>
    %c0_7 = arith.constant 0 : index
    %c0_8 = arith.constant 0 : index
    %c0_9 = arith.constant 0 : index
    %12 = vector.load %arg6[%c0_7, %c0_8, %c0_9] : memref<8x8x32xbf16, #tpu.memory_space<vmem>>, vector<8x8x32xbf16>
    tpu.vector_store %arg6[%c0_7, %c0_8, %c0_9], %11 {strides = array<i32>} : memref<8x8x32xbf16, #tpu.memory_space<vmem>>, vector<8x8x32xbf16>,
    %13 = arith.truncf %9 : vector<64x32xf32> to vector<64x32xbf16>
    %c0_10 = arith.constant 0 : index
    %c0_11 = arith.constant 0 : index
    %14 = vector.load %arg4[%c0_10, %c0_11] : memref<32x32xbf16, #tpu.memory_space<vmem>>, vector<32x32xbf16>
    %cst_12 = arith.constant dense<0.000000e+00> : vector<64x32xf32>
    %15 = tpu.matmul %13, %14, %cst_12 {dimension_numbers = #tpu.dot_dimension_numbers<[1], [0], [0], [1], [0, 0, 1, 1], [], []>} : vector<64x32xbf16>, vector<32x32xbf16>, vector<64x32xf32> -> vector<64x32xf32>
    %c0_13 = arith.constant 0 : index
    %c0_14 = arith.constant 0 : index
    %16 = vector.load %arg5[%c0_13, %c0_14] : memref<1x32xf32, #tpu.memory_space<vmem>>, vector<1x32xf32>
    %17 = vector.broadcast %16 : vector<1x32xf32> to vector<64x32xf32>
    %18 = arith.addf %15, %17 : vector<64x32xf32>
    %19 = arith.truncf %18 : vector<64x32xf32> to vector<64x32xbf16>
    %20 = vector.shape_cast %19 : vector<64x32xbf16> to vector<8x8x32xbf16>
    %c0_15 = arith.constant 0 : index
    %c0_16 = arith.constant 0 : index
    %c0_17 = arith.constant 0 : index
    %21 = vector.load %arg7[%c0_15, %c0_16, %c0_17] : memref<8x8x32xbf16, #tpu.memory_space<vmem>>, vector<8x8x32xbf16>
    tpu.vector_store %arg7[%c0_15, %c0_16, %c0_17], %20 {strides = array<i32>} : memref<8x8x32xbf16, #tpu.memory_space<vmem>>, vector<8x8x32xbf16>,
    return
  }
  func.func @transform_0(%arg0: i32) -> (i32, i32, i32) {
    %c0_i32 = arith.constant 0 : i32
    %c0_i32_0 = arith.constant 0 : i32
    %c0_i32_1 = arith.constant 0 : i32
    return %arg0, %c0_i32, %c0_i32_0 : i32, i32, i32
  }
  func.func @transform_1(%arg0: i32) -> (i32, i32) {
    %c0_i32 = arith.constant 0 : i32
    %c0_i32_0 = arith.constant 0 : i32
    %c0_i32_1 = arith.constant 0 : i32
    return %c0_i32, %c0_i32_0 : i32, i32
  }
  func.func @transform_2(%arg0: i32) -> (i32, i32) {
    %c0_i32 = arith.constant 0 : i32
    %c0_i32_0 = arith.constant 0 : i32
    %c0_i32_1 = arith.constant 0 : i32
    return %c0_i32, %c0_i32_0 : i32, i32
  }
  func.func @transform_3(%arg0: i32) -> (i32, i32) {
    %c0_i32 = arith.constant 0 : i32
    %c0_i32_0 = arith.constant 0 : i32
    %c0_i32_1 = arith.constant 0 : i32
    return %c0_i32, %c0_i32_0 : i32, i32
  }
  func.func @transform_4(%arg0: i32) -> (i32, i32) {
    %c0_i32 = arith.constant 0 : i32
    %c0_i32_0 = arith.constant 0 : i32
    %c0_i32_1 = arith.constant 0 : i32
    return %c0_i32, %c0_i32_0 : i32, i32
  }
  func.func @transform_5(%arg0: i32) -> (i32, i32, i32) {
    %c0_i32 = arith.constant 0 : i32
    %c0_i32_0 = arith.constant 0 : i32
    %c0_i32_1 = arith.constant 0 : i32
    return %arg0, %c0_i32, %c0_i32_0 : i32, i32, i32
  }
  func.func @transform_6(%arg0: i32) -> (i32, i32, i32) {
    %c0_i32 = arith.constant 0 : i32
    %c0_i32_0 = arith.constant 0 : i32
    %c0_i32_1 = arith.constant 0 : i32
    return %arg0, %c0_i32, %c0_i32_0 : i32, i32, i32
  }
}

module attributes {stable_mosaic.version = 11 : i64} {
  func.func @fc_prep_kernel(%arg0: memref<8x16xf32, #tpu.memory_space<vmem>>, %arg1: memref<16x32xbf16, #tpu.memory_space<vmem>>, %arg2: memref<1x32xf32, #tpu.memory_space<vmem>>, %arg3: memref<32x128xbf16, #tpu.memory_space<vmem>>, %arg4: memref<1x128xf32, #tpu.memory_space<vmem>>, %arg5: memref<8x128xf32, #tpu.memory_space<vmem>>) attributes {dimension_semantics = [], scalar_prefetch = 0 : i64, scratch_operands = 0 : i64, tpu.core_type = #tpu.core_type<tc>} {
    %c0 = arith.constant 0 : index
    %c0_0 = arith.constant 0 : index
    %0 = vector.load %arg0[%c0, %c0_0] : memref<8x16xf32, #tpu.memory_space<vmem>>, vector<8x16xf32>
    %1 = arith.truncf %0 : vector<8x16xf32> to vector<8x16xbf16>
    %c0_1 = arith.constant 0 : index
    %c0_2 = arith.constant 0 : index
    %2 = vector.load %arg1[%c0_1, %c0_2] : memref<16x32xbf16, #tpu.memory_space<vmem>>, vector<16x32xbf16>
    %cst = arith.constant dense<0.000000e+00> : vector<8x32xf32>
    %3 = tpu.matmul %1, %2, %cst {dimension_numbers = #tpu.dot_dimension_numbers<[1], [0], [0], [1], [0, 0, 1, 1], [], []>} : vector<8x16xbf16>, vector<16x32xbf16>, vector<8x32xf32> -> vector<8x32xf32>
    %c0_3 = arith.constant 0 : index
    %c0_4 = arith.constant 0 : index
    %4 = vector.load %arg2[%c0_3, %c0_4] : memref<1x32xf32, #tpu.memory_space<vmem>>, vector<1x32xf32>
    %5 = vector.broadcast %4 : vector<1x32xf32> to vector<8x32xf32>
    %6 = arith.addf %3, %5 : vector<8x32xf32>
    %cst_5 = arith.constant 0.000000e+00 : f32
    %7 = vector.broadcast %cst_5 : f32 to vector<8x32xf32>
    %8 = arith.maximumf %6, %7 : vector<8x32xf32>
    %9 = arith.truncf %8 : vector<8x32xf32> to vector<8x32xbf16>
    %c0_6 = arith.constant 0 : index
    %c0_7 = arith.constant 0 : index
    %10 = vector.load %arg3[%c0_6, %c0_7] : memref<32x128xbf16, #tpu.memory_space<vmem>>, vector<32x128xbf16>
    %cst_8 = arith.constant dense<0.000000e+00> : vector<8x128xf32>
    %11 = tpu.matmul %9, %10, %cst_8 {dimension_numbers = #tpu.dot_dimension_numbers<[1], [0], [0], [1], [0, 0, 1, 1], [], []>} : vector<8x32xbf16>, vector<32x128xbf16>, vector<8x128xf32> -> vector<8x128xf32>
    %c0_9 = arith.constant 0 : index
    %c0_10 = arith.constant 0 : index
    %12 = vector.load %arg4[%c0_9, %c0_10] : memref<1x128xf32, #tpu.memory_space<vmem>>, vector<1x128xf32>
    %13 = vector.broadcast %12 : vector<1x128xf32> to vector<8x128xf32>
    %14 = arith.addf %11, %13 : vector<8x128xf32>
    %c0_11 = arith.constant 0 : index
    %c0_12 = arith.constant 0 : index
    %15 = vector.load %arg5[%c0_11, %c0_12] : memref<8x128xf32, #tpu.memory_space<vmem>>, vector<8x128xf32>
    tpu.vector_store %arg5[%c0_11, %c0_12], %14 {strides = array<i32>} : memref<8x128xf32, #tpu.memory_space<vmem>>, vector<8x128xf32>,
    return
  }
}

module attributes {stable_mosaic.version = 11 : i64} {
  func.func @step_kernel(%arg0: i32, %arg1: i32, %arg2: memref<4x8x128xf32, #tpu.memory_space<vmem>>, %arg3: memref<8x128xf32, #tpu.memory_space<vmem>>, %arg4: memref<8x8x32xbf16, #tpu.memory_space<vmem>>, %arg5: memref<8x8x32xbf16, #tpu.memory_space<vmem>>, %arg6: memref<32x128xbf16, #tpu.memory_space<vmem>>, %arg7: memref<32x128xbf16, #tpu.memory_space<vmem>>, %arg8: memref<32x128xbf16, #tpu.memory_space<vmem>>, %arg9: memref<32x128xbf16, #tpu.memory_space<vmem>>, %arg10: memref<32x128xbf16, #tpu.memory_space<vmem>>, %arg11: memref<1x128xf32, #tpu.memory_space<vmem>>, %arg12: memref<32x32xbf16, #tpu.memory_space<vmem>>, %arg13: memref<1x32xf32, #tpu.memory_space<vmem>>, %arg14: memref<1x32xf32, #tpu.memory_space<vmem>>, %arg15: memref<4x8x32xf32, #tpu.memory_space<vmem>>, %arg16: memref<8x32xf32, #tpu.memory_space<vmem>>, %arg17: memref<8x32xf32, #tpu.memory_space<vmem>>, %arg18: memref<8x32xf32, #tpu.memory_space<vmem>>, %arg19: memref<8x32xf32, #tpu.memory_space<vmem>>) attributes {dimension_semantics = [#tpu.dimension_semantics<parallel>, #tpu.dimension_semantics<arbitrary>], iteration_bounds = array<i64: 1, 2>, scalar_prefetch = 0 : i64, scratch_operands = 4 : i64, tpu.core_type = #tpu.core_type<tc>, window_params = [{transform_indices = @transform_0, window_bounds = array<i64: 4, 8, 128>}, {transform_indices = @transform_1, window_bounds = array<i64: 8, 128>}, {transform_indices = @transform_2, window_bounds = array<i64: 8, 8, 32>}, {transform_indices = @transform_3, window_bounds = array<i64: 8, 8, 32>}, {pipeline_mode = #tpu.pipeline_mode<synchronous>, transform_indices = @transform_4, window_bounds = array<i64: 32, 128>}, {pipeline_mode = #tpu.pipeline_mode<synchronous>, transform_indices = @transform_5, window_bounds = array<i64: 32, 128>}, {pipeline_mode = #tpu.pipeline_mode<synchronous>, transform_indices = @transform_6, window_bounds = array<i64: 32, 128>}, {pipeline_mode = #tpu.pipeline_mode<synchronous>, transform_indices = @transform_7, window_bounds = array<i64: 32, 128>}, {pipeline_mode = #tpu.pipeline_mode<synchronous>, transform_indices = @transform_8, window_bounds = array<i64: 32, 128>}, {pipeline_mode = #tpu.pipeline_mode<synchronous>, transform_indices = @transform_9, window_bounds = array<i64: 1, 128>}, {pipeline_mode = #tpu.pipeline_mode<synchronous>, transform_indices = @transform_10, window_bounds = array<i64: 32, 32>}, {pipeline_mode = #tpu.pipeline_mode<synchronous>, transform_indices = @transform_11, window_bounds = array<i64: 1, 32>}, {pipeline_mode = #tpu.pipeline_mode<synchronous>, transform_indices = @transform_12, window_bounds = array<i64: 1, 32>}, {transform_indices = @transform_13, window_bounds = array<i64: 4, 8, 32>}]} {
    %c0_i32 = arith.constant 0 : i32
    %0 = arith.cmpi eq, %arg1, %c0_i32 : i32
    %1 = arith.extui %0 : i1 to i32
    %c0_i32_0 = arith.constant 0 : i32
    %2 = arith.cmpi ne, %1, %c0_i32_0 : i32
    scf.if %2 {
      %cst_126 = arith.constant 0.000000e+00 : f32
      %420 = vector.broadcast %cst_126 : f32 to vector<8x32xf32>
      %c0_127 = arith.constant 0 : index
      %c0_128 = arith.constant 0 : index
      %421 = vector.load %arg16[%c0_127, %c0_128] : memref<8x32xf32, #tpu.memory_space<vmem>>, vector<8x32xf32>
      tpu.vector_store %arg16[%c0_127, %c0_128], %420 {strides = array<i32>} : memref<8x32xf32, #tpu.memory_space<vmem>>, vector<8x32xf32>,
      %cst_129 = arith.constant 0.000000e+00 : f32
      %422 = vector.broadcast %cst_129 : f32 to vector<8x32xf32>
      %c0_130 = arith.constant 0 : index
      %c0_131 = arith.constant 0 : index
      %423 = vector.load %arg17[%c0_130, %c0_131] : memref<8x32xf32, #tpu.memory_space<vmem>>, vector<8x32xf32>
      tpu.vector_store %arg17[%c0_130, %c0_131], %422 {strides = array<i32>} : memref<8x32xf32, #tpu.memory_space<vmem>>, vector<8x32xf32>,
      %cst_132 = arith.constant 0.000000e+00 : f32
      %424 = vector.broadcast %cst_132 : f32 to vector<8x32xf32>
      %c0_133 = arith.constant 0 : index
      %c0_134 = arith.constant 0 : index
      %425 = vector.load %arg18[%c0_133, %c0_134] : memref<8x32xf32, #tpu.memory_space<vmem>>, vector<8x32xf32>
      tpu.vector_store %arg18[%c0_133, %c0_134], %424 {strides = array<i32>} : memref<8x32xf32, #tpu.memory_space<vmem>>, vector<8x32xf32>,
      %cst_135 = arith.constant 0.000000e+00 : f32
      %426 = vector.broadcast %cst_135 : f32 to vector<8x32xf32>
      %c0_136 = arith.constant 0 : index
      %c0_137 = arith.constant 0 : index
      %427 = vector.load %arg19[%c0_136, %c0_137] : memref<8x32xf32, #tpu.memory_space<vmem>>, vector<8x32xf32>
      tpu.vector_store %arg19[%c0_136, %c0_137], %426 {strides = array<i32>} : memref<8x32xf32, #tpu.memory_space<vmem>>, vector<8x32xf32>,
    } else {
    }
    %c0 = arith.constant 0 : index
    %c0_1 = arith.constant 0 : index
    %3 = vector.load %arg3[%c0, %c0_1] : memref<8x128xf32, #tpu.memory_space<vmem>>, vector<8x128xf32>
    %c0_2 = arith.constant 0 : index
    %c0_3 = arith.constant 0 : index
    %c0_4 = arith.constant 0 : index
    %4 = vector.load %arg4[%c0_2, %c0_3, %c0_4] : memref<8x8x32xbf16, #tpu.memory_space<vmem>>, vector<8x8x32xbf16>
    %c0_5 = arith.constant 0 : index
    %c0_6 = arith.constant 0 : index
    %c0_7 = arith.constant 0 : index
    %5 = vector.load %arg5[%c0_5, %c0_6, %c0_7] : memref<8x8x32xbf16, #tpu.memory_space<vmem>>, vector<8x8x32xbf16>
    %c0_8 = arith.constant 0 : index
    %c0_9 = arith.constant 0 : index
    %6 = vector.load %arg6[%c0_8, %c0_9] : memref<32x128xbf16, #tpu.memory_space<vmem>>, vector<32x128xbf16>
    %c0_10 = arith.constant 0 : index
    %c0_11 = arith.constant 0 : index
    %7 = vector.load %arg7[%c0_10, %c0_11] : memref<32x128xbf16, #tpu.memory_space<vmem>>, vector<32x128xbf16>
    %c0_12 = arith.constant 0 : index
    %c0_13 = arith.constant 0 : index
    %8 = vector.load %arg8[%c0_12, %c0_13] : memref<32x128xbf16, #tpu.memory_space<vmem>>, vector<32x128xbf16>
    %c0_14 = arith.constant 0 : index
    %c0_15 = arith.constant 0 : index
    %9 = vector.load %arg9[%c0_14, %c0_15] : memref<32x128xbf16, #tpu.memory_space<vmem>>, vector<32x128xbf16>
    %c0_16 = arith.constant 0 : index
    %c0_17 = arith.constant 0 : index
    %10 = vector.load %arg10[%c0_16, %c0_17] : memref<32x128xbf16, #tpu.memory_space<vmem>>, vector<32x128xbf16>
    %c0_18 = arith.constant 0 : index
    %c0_19 = arith.constant 0 : index
    %11 = vector.load %arg11[%c0_18, %c0_19] : memref<1x128xf32, #tpu.memory_space<vmem>>, vector<1x128xf32>
    %c0_20 = arith.constant 0 : index
    %c0_21 = arith.constant 0 : index
    %12 = vector.load %arg12[%c0_20, %c0_21] : memref<32x32xbf16, #tpu.memory_space<vmem>>, vector<32x32xbf16>
    %c0_22 = arith.constant 0 : index
    %c0_23 = arith.constant 0 : index
    %13 = vector.load %arg13[%c0_22, %c0_23] : memref<1x32xf32, #tpu.memory_space<vmem>>, vector<1x32xf32>
    %c0_24 = arith.constant 0 : index
    %c0_25 = arith.constant 0 : index
    %14 = vector.load %arg14[%c0_24, %c0_25] : memref<1x32xf32, #tpu.memory_space<vmem>>, vector<1x32xf32>
    %15 = vector.shape_cast %14 : vector<1x32xf32> to vector<1x1x32xf32>
    %c0_26 = arith.constant 0 : index
    %c0_27 = arith.constant 0 : index
    %16 = vector.load %arg16[%c0_26, %c0_27] : memref<8x32xf32, #tpu.memory_space<vmem>>, vector<8x32xf32>
    %c0_28 = arith.constant 0 : index
    %c0_29 = arith.constant 0 : index
    %17 = vector.load %arg17[%c0_28, %c0_29] : memref<8x32xf32, #tpu.memory_space<vmem>>, vector<8x32xf32>
    %c0_30 = arith.constant 0 : index
    %c0_31 = arith.constant 0 : index
    %18 = vector.load %arg18[%c0_30, %c0_31] : memref<8x32xf32, #tpu.memory_space<vmem>>, vector<8x32xf32>
    %c0_32 = arith.constant 0 : index
    %c0_33 = arith.constant 0 : index
    %19 = vector.load %arg19[%c0_32, %c0_33] : memref<8x32xf32, #tpu.memory_space<vmem>>, vector<8x32xf32>
    %c0_34 = arith.constant 0 : index
    %c0_35 = arith.constant 0 : index
    %c0_36 = arith.constant 0 : index
    %20 = vector.load %arg2[%c0_34, %c0_35, %c0_36] : memref<4x8x128xf32, #tpu.memory_space<vmem>>, vector<1x8x128xf32>
    %21 = vector.shape_cast %20 : vector<1x8x128xf32> to vector<8x128xf32>
    %22 = arith.addf %21, %3 : vector<8x128xf32>
    %23 = arith.truncf %18 : vector<8x32xf32> to vector<8x32xbf16>
    %cst = arith.constant dense<0.000000e+00> : vector<8x128xf32>
    %24 = tpu.matmul %23, %6, %cst {dimension_numbers = #tpu.dot_dimension_numbers<[1], [0], [0], [1], [0, 0, 1, 1], [], []>} : vector<8x32xbf16>, vector<32x128xbf16>, vector<8x128xf32> -> vector<8x128xf32>
    %25 = arith.addf %22, %24 : vector<8x128xf32>
    %26 = arith.truncf %16 : vector<8x32xf32> to vector<8x32xbf16>
    %cst_37 = arith.constant dense<0.000000e+00> : vector<8x128xf32>
    %27 = tpu.matmul %26, %7, %cst_37 {dimension_numbers = #tpu.dot_dimension_numbers<[1], [0], [0], [1], [0, 0, 1, 1], [], []>} : vector<8x32xbf16>, vector<32x128xbf16>, vector<8x128xf32> -> vector<8x128xf32>
    %28 = arith.addf %25, %27 : vector<8x128xf32>
    %29 = vector.extract_strided_slice %28 {offsets = [0, 0], sizes = [8, 32], strides = [1, 1]} : vector<8x128xf32> to vector<8x32xf32>
    %30 = arith.negf %29 : vector<8x32xf32>
    %31 = math.exp %30 : vector<8x32xf32>
    %cst_38 = arith.constant 1.000000e+00 : f32
    %32 = vector.broadcast %cst_38 : f32 to vector<8x32xf32>
    %33 = arith.addf %32, %31 : vector<8x32xf32>
    %34 = arith.divf %32, %33 : vector<8x32xf32>
    %35 = vector.extract_strided_slice %28 {offsets = [0, 32], sizes = [8, 32], strides = [1, 1]} : vector<8x128xf32> to vector<8x32xf32>
    %36 = arith.negf %35 : vector<8x32xf32>
    %37 = math.exp %36 : vector<8x32xf32>
    %cst_39 = arith.constant 1.000000e+00 : f32
    %38 = vector.broadcast %cst_39 : f32 to vector<8x32xf32>
    %39 = arith.addf %38, %37 : vector<8x32xf32>
    %40 = arith.divf %38, %39 : vector<8x32xf32>
    %41 = vector.extract_strided_slice %28 {offsets = [0, 64], sizes = [8, 32], strides = [1, 1]} : vector<8x128xf32> to vector<8x32xf32>
    %42 = math.tanh %41 : vector<8x32xf32>
    %43 = vector.extract_strided_slice %28 {offsets = [0, 96], sizes = [8, 32], strides = [1, 1]} : vector<8x128xf32> to vector<8x32xf32>
    %44 = arith.negf %43 : vector<8x32xf32>
    %45 = math.exp %44 : vector<8x32xf32>
    %cst_40 = arith.constant 1.000000e+00 : f32
    %46 = vector.broadcast %cst_40 : f32 to vector<8x32xf32>
    %47 = arith.addf %46, %45 : vector<8x32xf32>
    %48 = arith.divf %46, %47 : vector<8x32xf32>
    %49 = arith.mulf %40, %17 : vector<8x32xf32>
    %50 = arith.mulf %34, %42 : vector<8x32xf32>
    %51 = arith.addf %49, %50 : vector<8x32xf32>
    %52 = math.tanh %51 : vector<8x32xf32>
    %53 = arith.mulf %48, %52 : vector<8x32xf32>
    %54 = arith.truncf %53 : vector<8x32xf32> to vector<8x32xbf16>
    %cst_41 = arith.constant dense<0.000000e+00> : vector<8x32xf32>
    %55 = tpu.matmul %54, %12, %cst_41 {dimension_numbers = #tpu.dot_dimension_numbers<[1], [0], [0], [1], [0, 0, 1, 1], [], []>} : vector<8x32xbf16>, vector<32x32xbf16>, vector<8x32xf32> -> vector<8x32xf32>
    %56 = vector.broadcast %13 : vector<1x32xf32> to vector<8x32xf32>
    %57 = arith.addf %55, %56 : vector<8x32xf32>
    %58 = vector.shape_cast %57 : vector<8x32xf32> to vector<8x1x32xf32>
    %59 = arith.extf %5 : vector<8x8x32xbf16> to vector<8x8x32xf32>
    %60 = vector.broadcast %58 : vector<8x1x32xf32> to vector<8x8x32xf32>
    %61 = arith.addf %59, %60 : vector<8x8x32xf32>
    %62 = math.tanh %61 : vector<8x8x32xf32>
    %63 = vector.broadcast %15 : vector<1x1x32xf32> to vector<8x8x32xf32>
    %64 = arith.mulf %62, %63 : vector<8x8x32xf32>
    %cst_42 = arith.constant dense<0.000000e+00> : vector<8x8xf32>
    %65 = vector.multi_reduction <add>, %64, %cst_42 [2] : vector<8x8x32xf32> to vector<8x8xf32>
    %cst_43 = arith.constant dense<0xFF800000> : vector<8xf32>
    %66 = vector.multi_reduction <maximumf>, %65, %cst_43 [1] : vector<8x8xf32> to vector<8xf32>
    %67 = vector.shape_cast %66 : vector<8xf32> to vector<8x1xf32>
    %68 = vector.broadcast %67 : vector<8x1xf32> to vector<8x8xf32>
    %69 = arith.subf %65, %68 : vector<8x8xf32>
    %70 = math.exp %69 : vector<8x8xf32>
    %cst_44 = arith.constant dense<0.000000e+00> : vector<8xf32>
    %71 = vector.multi_reduction <add>, %70, %cst_44 [1] : vector<8x8xf32> to vector<8xf32>
    %72 = vector.shape_cast %71 : vector<8xf32> to vector<8x1xf32>
    %73 = tpu.reciprocal %72 {approx = true} : vector<8x1xf32> -> vector<8x1xf32>
    %74 = vector.broadcast %73 : vector<8x1xf32> to vector<8x8xf32>
    %75 = arith.mulf %70, %74 : vector<8x8xf32>
    %76 = vector.shape_cast %75 : vector<8x8xf32> to vector<8x8x1xf32>
    %77 = arith.extf %4 : vector<8x8x32xbf16> to vector<8x8x32xf32>
    %78 = vector.broadcast %76 : vector<8x8x1xf32> to vector<8x8x32xf32>
    %79 = arith.mulf %78, %77 : vector<8x8x32xf32>
    %cst_45 = arith.constant dense<0.000000e+00> : vector<8x32xf32>
    %80 = vector.multi_reduction <add>, %79, %cst_45 [1] : vector<8x8x32xf32> to vector<8x32xf32>
    %81 = arith.truncf %80 : vector<8x32xf32> to vector<8x32xbf16>
    %cst_46 = arith.constant dense<0.000000e+00> : vector<8x128xf32>
    %82 = tpu.matmul %81, %8, %cst_46 {dimension_numbers = #tpu.dot_dimension_numbers<[1], [0], [0], [1], [0, 0, 1, 1], [], []>} : vector<8x32xbf16>, vector<32x128xbf16>, vector<8x128xf32> -> vector<8x128xf32>
    %83 = arith.truncf %53 : vector<8x32xf32> to vector<8x32xbf16>
    %cst_47 = arith.constant dense<0.000000e+00> : vector<8x128xf32>
    %84 = tpu.matmul %83, %9, %cst_47 {dimension_numbers = #tpu.dot_dimension_numbers<[1], [0], [0], [1], [0, 0, 1, 1], [], []>} : vector<8x32xbf16>, vector<32x128xbf16>, vector<8x128xf32> -> vector<8x128xf32>
    %85 = arith.addf %82, %84 : vector<8x128xf32>
    %86 = arith.truncf %18 : vector<8x32xf32> to vector<8x32xbf16>
    %cst_48 = arith.constant dense<0.000000e+00> : vector<8x128xf32>
    %87 = tpu.matmul %86, %10, %cst_48 {dimension_numbers = #tpu.dot_dimension_numbers<[1], [0], [0], [1], [0, 0, 1, 1], [], []>} : vector<8x32xbf16>, vector<32x128xbf16>, vector<8x128xf32> -> vector<8x128xf32>
    %88 = arith.addf %85, %87 : vector<8x128xf32>
    %89 = vector.broadcast %11 : vector<1x128xf32> to vector<8x128xf32>
    %90 = arith.addf %88, %89 : vector<8x128xf32>
    %91 = vector.extract_strided_slice %90 {offsets = [0, 0], sizes = [8, 32], strides = [1, 1]} : vector<8x128xf32> to vector<8x32xf32>
    %92 = arith.negf %91 : vector<8x32xf32>
    %93 = math.exp %92 : vector<8x32xf32>
    %cst_49 = arith.constant 1.000000e+00 : f32
    %94 = vector.broadcast %cst_49 : f32 to vector<8x32xf32>
    %95 = arith.addf %94, %93 : vector<8x32xf32>
    %96 = arith.divf %94, %95 : vector<8x32xf32>
    %97 = vector.extract_strided_slice %90 {offsets = [0, 32], sizes = [8, 32], strides = [1, 1]} : vector<8x128xf32> to vector<8x32xf32>
    %98 = arith.negf %97 : vector<8x32xf32>
    %99 = math.exp %98 : vector<8x32xf32>
    %cst_50 = arith.constant 1.000000e+00 : f32
    %100 = vector.broadcast %cst_50 : f32 to vector<8x32xf32>
    %101 = arith.addf %100, %99 : vector<8x32xf32>
    %102 = arith.divf %100, %101 : vector<8x32xf32>
    %103 = vector.extract_strided_slice %90 {offsets = [0, 64], sizes = [8, 32], strides = [1, 1]} : vector<8x128xf32> to vector<8x32xf32>
    %104 = math.tanh %103 : vector<8x32xf32>
    %105 = vector.extract_strided_slice %90 {offsets = [0, 96], sizes = [8, 32], strides = [1, 1]} : vector<8x128xf32> to vector<8x32xf32>
    %106 = arith.negf %105 : vector<8x32xf32>
    %107 = math.exp %106 : vector<8x32xf32>
    %cst_51 = arith.constant 1.000000e+00 : f32
    %108 = vector.broadcast %cst_51 : f32 to vector<8x32xf32>
    %109 = arith.addf %108, %107 : vector<8x32xf32>
    %110 = arith.divf %108, %109 : vector<8x32xf32>
    %111 = arith.mulf %102, %19 : vector<8x32xf32>
    %112 = arith.mulf %96, %104 : vector<8x32xf32>
    %113 = arith.addf %111, %112 : vector<8x32xf32>
    %114 = math.tanh %113 : vector<8x32xf32>
    %115 = arith.mulf %110, %114 : vector<8x32xf32>
    %c0_52 = arith.constant 0 : index
    %c0_53 = arith.constant 0 : index
    %c0_54 = arith.constant 0 : index
    %116 = vector.load %arg15[%c0_52, %c0_53, %c0_54] : memref<4x8x32xf32, #tpu.memory_space<vmem>>, vector<1x8x32xf32>
    %117 = vector.shape_cast %116 : vector<1x8x32xf32> to vector<8x32xf32>
    %118 = vector.shape_cast %115 : vector<8x32xf32> to vector<1x8x32xf32>
    tpu.vector_store %arg15[%c0_52, %c0_53, %c0_54], %118 {strides = array<i32>} : memref<4x8x32xf32, #tpu.memory_space<vmem>>, vector<1x8x32xf32>,
    %c1 = arith.constant 1 : index
    %c0_55 = arith.constant 0 : index
    %c0_56 = arith.constant 0 : index
    %119 = vector.load %arg2[%c1, %c0_55, %c0_56] : memref<4x8x128xf32, #tpu.memory_space<vmem>>, vector<1x8x128xf32>
    %120 = vector.shape_cast %119 : vector<1x8x128xf32> to vector<8x128xf32>
    %121 = arith.addf %120, %3 : vector<8x128xf32>
    %122 = arith.truncf %115 : vector<8x32xf32> to vector<8x32xbf16>
    %cst_57 = arith.constant dense<0.000000e+00> : vector<8x128xf32>
    %123 = tpu.matmul %122, %6, %cst_57 {dimension_numbers = #tpu.dot_dimension_numbers<[1], [0], [0], [1], [0, 0, 1, 1], [], []>} : vector<8x32xbf16>, vector<32x128xbf16>, vector<8x128xf32> -> vector<8x128xf32>
    %124 = arith.addf %121, %123 : vector<8x128xf32>
    %125 = arith.truncf %53 : vector<8x32xf32> to vector<8x32xbf16>
    %cst_58 = arith.constant dense<0.000000e+00> : vector<8x128xf32>
    %126 = tpu.matmul %125, %7, %cst_58 {dimension_numbers = #tpu.dot_dimension_numbers<[1], [0], [0], [1], [0, 0, 1, 1], [], []>} : vector<8x32xbf16>, vector<32x128xbf16>, vector<8x128xf32> -> vector<8x128xf32>
    %127 = arith.addf %124, %126 : vector<8x128xf32>
    %128 = vector.extract_strided_slice %127 {offsets = [0, 0], sizes = [8, 32], strides = [1, 1]} : vector<8x128xf32> to vector<8x32xf32>
    %129 = arith.negf %128 : vector<8x32xf32>
    %130 = math.exp %129 : vector<8x32xf32>
    %cst_59 = arith.constant 1.000000e+00 : f32
    %131 = vector.broadcast %cst_59 : f32 to vector<8x32xf32>
    %132 = arith.addf %131, %130 : vector<8x32xf32>
    %133 = arith.divf %131, %132 : vector<8x32xf32>
    %134 = vector.extract_strided_slice %127 {offsets = [0, 32], sizes = [8, 32], strides = [1, 1]} : vector<8x128xf32> to vector<8x32xf32>
    %135 = arith.negf %134 : vector<8x32xf32>
    %136 = math.exp %135 : vector<8x32xf32>
    %cst_60 = arith.constant 1.000000e+00 : f32
    %137 = vector.broadcast %cst_60 : f32 to vector<8x32xf32>
    %138 = arith.addf %137, %136 : vector<8x32xf32>
    %139 = arith.divf %137, %138 : vector<8x32xf32>
    %140 = vector.extract_strided_slice %127 {offsets = [0, 64], sizes = [8, 32], strides = [1, 1]} : vector<8x128xf32> to vector<8x32xf32>
    %141 = math.tanh %140 : vector<8x32xf32>
    %142 = vector.extract_strided_slice %127 {offsets = [0, 96], sizes = [8, 32], strides = [1, 1]} : vector<8x128xf32> to vector<8x32xf32>
    %143 = arith.negf %142 : vector<8x32xf32>
    %144 = math.exp %143 : vector<8x32xf32>
    %cst_61 = arith.constant 1.000000e+00 : f32
    %145 = vector.broadcast %cst_61 : f32 to vector<8x32xf32>
    %146 = arith.addf %145, %144 : vector<8x32xf32>
    %147 = arith.divf %145, %146 : vector<8x32xf32>
    %148 = arith.mulf %139, %51 : vector<8x32xf32>
    %149 = arith.mulf %133, %141 : vector<8x32xf32>
    %150 = arith.addf %148, %149 : vector<8x32xf32>
    %151 = math.tanh %150 : vector<8x32xf32>
    %152 = arith.mulf %147, %151 : vector<8x32xf32>
    %153 = arith.truncf %152 : vector<8x32xf32> to vector<8x32xbf16>
    %cst_62 = arith.constant dense<0.000000e+00> : vector<8x32xf32>
    %154 = tpu.matmul %153, %12, %cst_62 {dimension_numbers = #tpu.dot_dimension_numbers<[1], [0], [0], [1], [0, 0, 1, 1], [], []>} : vector<8x32xbf16>, vector<32x32xbf16>, vector<8x32xf32> -> vector<8x32xf32>
    %155 = vector.broadcast %13 : vector<1x32xf32> to vector<8x32xf32>
    %156 = arith.addf %154, %155 : vector<8x32xf32>
    %157 = vector.shape_cast %156 : vector<8x32xf32> to vector<8x1x32xf32>
    %158 = arith.extf %5 : vector<8x8x32xbf16> to vector<8x8x32xf32>
    %159 = vector.broadcast %157 : vector<8x1x32xf32> to vector<8x8x32xf32>
    %160 = arith.addf %158, %159 : vector<8x8x32xf32>
    %161 = math.tanh %160 : vector<8x8x32xf32>
    %162 = vector.broadcast %15 : vector<1x1x32xf32> to vector<8x8x32xf32>
    %163 = arith.mulf %161, %162 : vector<8x8x32xf32>
    %cst_63 = arith.constant dense<0.000000e+00> : vector<8x8xf32>
    %164 = vector.multi_reduction <add>, %163, %cst_63 [2] : vector<8x8x32xf32> to vector<8x8xf32>
    %cst_64 = arith.constant dense<0xFF800000> : vector<8xf32>
    %165 = vector.multi_reduction <maximumf>, %164, %cst_64 [1] : vector<8x8xf32> to vector<8xf32>
    %166 = vector.shape_cast %165 : vector<8xf32> to vector<8x1xf32>
    %167 = vector.broadcast %166 : vector<8x1xf32> to vector<8x8xf32>
    %168 = arith.subf %164, %167 : vector<8x8xf32>
    %169 = math.exp %168 : vector<8x8xf32>
    %cst_65 = arith.constant dense<0.000000e+00> : vector<8xf32>
    %170 = vector.multi_reduction <add>, %169, %cst_65 [1] : vector<8x8xf32> to vector<8xf32>
    %171 = vector.shape_cast %170 : vector<8xf32> to vector<8x1xf32>
    %172 = tpu.reciprocal %171 {approx = true} : vector<8x1xf32> -> vector<8x1xf32>
    %173 = vector.broadcast %172 : vector<8x1xf32> to vector<8x8xf32>
    %174 = arith.mulf %169, %173 : vector<8x8xf32>
    %175 = vector.shape_cast %174 : vector<8x8xf32> to vector<8x8x1xf32>
    %176 = arith.extf %4 : vector<8x8x32xbf16> to vector<8x8x32xf32>
    %177 = vector.broadcast %175 : vector<8x8x1xf32> to vector<8x8x32xf32>
    %178 = arith.mulf %177, %176 : vector<8x8x32xf32>
    %cst_66 = arith.constant dense<0.000000e+00> : vector<8x32xf32>
    %179 = vector.multi_reduction <add>, %178, %cst_66 [1] : vector<8x8x32xf32> to vector<8x32xf32>
    %180 = arith.truncf %179 : vector<8x32xf32> to vector<8x32xbf16>
    %cst_67 = arith.constant dense<0.000000e+00> : vector<8x128xf32>
    %181 = tpu.matmul %180, %8, %cst_67 {dimension_numbers = #tpu.dot_dimension_numbers<[1], [0], [0], [1], [0, 0, 1, 1], [], []>} : vector<8x32xbf16>, vector<32x128xbf16>, vector<8x128xf32> -> vector<8x128xf32>
    %182 = arith.truncf %152 : vector<8x32xf32> to vector<8x32xbf16>
    %cst_68 = arith.constant dense<0.000000e+00> : vector<8x128xf32>
    %183 = tpu.matmul %182, %9, %cst_68 {dimension_numbers = #tpu.dot_dimension_numbers<[1], [0], [0], [1], [0, 0, 1, 1], [], []>} : vector<8x32xbf16>, vector<32x128xbf16>, vector<8x128xf32> -> vector<8x128xf32>
    %184 = arith.addf %181, %183 : vector<8x128xf32>
    %185 = arith.truncf %115 : vector<8x32xf32> to vector<8x32xbf16>
    %cst_69 = arith.constant dense<0.000000e+00> : vector<8x128xf32>
    %186 = tpu.matmul %185, %10, %cst_69 {dimension_numbers = #tpu.dot_dimension_numbers<[1], [0], [0], [1], [0, 0, 1, 1], [], []>} : vector<8x32xbf16>, vector<32x128xbf16>, vector<8x128xf32> -> vector<8x128xf32>
    %187 = arith.addf %184, %186 : vector<8x128xf32>
    %188 = vector.broadcast %11 : vector<1x128xf32> to vector<8x128xf32>
    %189 = arith.addf %187, %188 : vector<8x128xf32>
    %190 = vector.extract_strided_slice %189 {offsets = [0, 0], sizes = [8, 32], strides = [1, 1]} : vector<8x128xf32> to vector<8x32xf32>
    %191 = arith.negf %190 : vector<8x32xf32>
    %192 = math.exp %191 : vector<8x32xf32>
    %cst_70 = arith.constant 1.000000e+00 : f32
    %193 = vector.broadcast %cst_70 : f32 to vector<8x32xf32>
    %194 = arith.addf %193, %192 : vector<8x32xf32>
    %195 = arith.divf %193, %194 : vector<8x32xf32>
    %196 = vector.extract_strided_slice %189 {offsets = [0, 32], sizes = [8, 32], strides = [1, 1]} : vector<8x128xf32> to vector<8x32xf32>
    %197 = arith.negf %196 : vector<8x32xf32>
    %198 = math.exp %197 : vector<8x32xf32>
    %cst_71 = arith.constant 1.000000e+00 : f32
    %199 = vector.broadcast %cst_71 : f32 to vector<8x32xf32>
    %200 = arith.addf %199, %198 : vector<8x32xf32>
    %201 = arith.divf %199, %200 : vector<8x32xf32>
    %202 = vector.extract_strided_slice %189 {offsets = [0, 64], sizes = [8, 32], strides = [1, 1]} : vector<8x128xf32> to vector<8x32xf32>
    %203 = math.tanh %202 : vector<8x32xf32>
    %204 = vector.extract_strided_slice %189 {offsets = [0, 96], sizes = [8, 32], strides = [1, 1]} : vector<8x128xf32> to vector<8x32xf32>
    %205 = arith.negf %204 : vector<8x32xf32>
    %206 = math.exp %205 : vector<8x32xf32>
    %cst_72 = arith.constant 1.000000e+00 : f32
    %207 = vector.broadcast %cst_72 : f32 to vector<8x32xf32>
    %208 = arith.addf %207, %206 : vector<8x32xf32>
    %209 = arith.divf %207, %208 : vector<8x32xf32>
    %210 = arith.mulf %201, %113 : vector<8x32xf32>
    %211 = arith.mulf %195, %203 : vector<8x32xf32>
    %212 = arith.addf %210, %211 : vector<8x32xf32>
    %213 = math.tanh %212 : vector<8x32xf32>
    %214 = arith.mulf %209, %213 : vector<8x32xf32>
    %c1_73 = arith.constant 1 : index
    %c0_74 = arith.constant 0 : index
    %c0_75 = arith.constant 0 : index
    %215 = vector.load %arg15[%c1_73, %c0_74, %c0_75] : memref<4x8x32xf32, #tpu.memory_space<vmem>>, vector<1x8x32xf32>
    %216 = vector.shape_cast %215 : vector<1x8x32xf32> to vector<8x32xf32>
    %217 = vector.shape_cast %214 : vector<8x32xf32> to vector<1x8x32xf32>
    tpu.vector_store %arg15[%c1_73, %c0_74, %c0_75], %217 {strides = array<i32>} : memref<4x8x32xf32, #tpu.memory_space<vmem>>, vector<1x8x32xf32>,
    %c2 = arith.constant 2 : index
    %c0_76 = arith.constant 0 : index
    %c0_77 = arith.constant 0 : index
    %218 = vector.load %arg2[%c2, %c0_76, %c0_77] : memref<4x8x128xf32, #tpu.memory_space<vmem>>, vector<1x8x128xf32>
    %219 = vector.shape_cast %218 : vector<1x8x128xf32> to vector<8x128xf32>
    %220 = arith.addf %219, %3 : vector<8x128xf32>
    %221 = arith.truncf %214 : vector<8x32xf32> to vector<8x32xbf16>
    %cst_78 = arith.constant dense<0.000000e+00> : vector<8x128xf32>
    %222 = tpu.matmul %221, %6, %cst_78 {dimension_numbers = #tpu.dot_dimension_numbers<[1], [0], [0], [1], [0, 0, 1, 1], [], []>} : vector<8x32xbf16>, vector<32x128xbf16>, vector<8x128xf32> -> vector<8x128xf32>
    %223 = arith.addf %220, %222 : vector<8x128xf32>
    %224 = arith.truncf %152 : vector<8x32xf32> to vector<8x32xbf16>
    %cst_79 = arith.constant dense<0.000000e+00> : vector<8x128xf32>
    %225 = tpu.matmul %224, %7, %cst_79 {dimension_numbers = #tpu.dot_dimension_numbers<[1], [0], [0], [1], [0, 0, 1, 1], [], []>} : vector<8x32xbf16>, vector<32x128xbf16>, vector<8x128xf32> -> vector<8x128xf32>
    %226 = arith.addf %223, %225 : vector<8x128xf32>
    %227 = vector.extract_strided_slice %226 {offsets = [0, 0], sizes = [8, 32], strides = [1, 1]} : vector<8x128xf32> to vector<8x32xf32>
    %228 = arith.negf %227 : vector<8x32xf32>
    %229 = math.exp %228 : vector<8x32xf32>
    %cst_80 = arith.constant 1.000000e+00 : f32
    %230 = vector.broadcast %cst_80 : f32 to vector<8x32xf32>
    %231 = arith.addf %230, %229 : vector<8x32xf32>
    %232 = arith.divf %230, %231 : vector<8x32xf32>
    %233 = vector.extract_strided_slice %226 {offsets = [0, 32], sizes = [8, 32], strides = [1, 1]} : vector<8x128xf32> to vector<8x32xf32>
    %234 = arith.negf %233 : vector<8x32xf32>
    %235 = math.exp %234 : vector<8x32xf32>
    %cst_81 = arith.constant 1.000000e+00 : f32
    %236 = vector.broadcast %cst_81 : f32 to vector<8x32xf32>
    %237 = arith.addf %236, %235 : vector<8x32xf32>
    %238 = arith.divf %236, %237 : vector<8x32xf32>
    %239 = vector.extract_strided_slice %226 {offsets = [0, 64], sizes = [8, 32], strides = [1, 1]} : vector<8x128xf32> to vector<8x32xf32>
    %240 = math.tanh %239 : vector<8x32xf32>
    %241 = vector.extract_strided_slice %226 {offsets = [0, 96], sizes = [8, 32], strides = [1, 1]} : vector<8x128xf32> to vector<8x32xf32>
    %242 = arith.negf %241 : vector<8x32xf32>
    %243 = math.exp %242 : vector<8x32xf32>
    %cst_82 = arith.constant 1.000000e+00 : f32
    %244 = vector.broadcast %cst_82 : f32 to vector<8x32xf32>
    %245 = arith.addf %244, %243 : vector<8x32xf32>
    %246 = arith.divf %244, %245 : vector<8x32xf32>
    %247 = arith.mulf %238, %150 : vector<8x32xf32>
    %248 = arith.mulf %232, %240 : vector<8x32xf32>
    %249 = arith.addf %247, %248 : vector<8x32xf32>
    %250 = math.tanh %249 : vector<8x32xf32>
    %251 = arith.mulf %246, %250 : vector<8x32xf32>
    %252 = arith.truncf %251 : vector<8x32xf32> to vector<8x32xbf16>
    %cst_83 = arith.constant dense<0.000000e+00> : vector<8x32xf32>
    %253 = tpu.matmul %252, %12, %cst_83 {dimension_numbers = #tpu.dot_dimension_numbers<[1], [0], [0], [1], [0, 0, 1, 1], [], []>} : vector<8x32xbf16>, vector<32x32xbf16>, vector<8x32xf32> -> vector<8x32xf32>
    %254 = vector.broadcast %13 : vector<1x32xf32> to vector<8x32xf32>
    %255 = arith.addf %253, %254 : vector<8x32xf32>
    %256 = vector.shape_cast %255 : vector<8x32xf32> to vector<8x1x32xf32>
    %257 = arith.extf %5 : vector<8x8x32xbf16> to vector<8x8x32xf32>
    %258 = vector.broadcast %256 : vector<8x1x32xf32> to vector<8x8x32xf32>
    %259 = arith.addf %257, %258 : vector<8x8x32xf32>
    %260 = math.tanh %259 : vector<8x8x32xf32>
    %261 = vector.broadcast %15 : vector<1x1x32xf32> to vector<8x8x32xf32>
    %262 = arith.mulf %260, %261 : vector<8x8x32xf32>
    %cst_84 = arith.constant dense<0.000000e+00> : vector<8x8xf32>
    %263 = vector.multi_reduction <add>, %262, %cst_84 [2] : vector<8x8x32xf32> to vector<8x8xf32>
    %cst_85 = arith.constant dense<0xFF800000> : vector<8xf32>
    %264 = vector.multi_reduction <maximumf>, %263, %cst_85 [1] : vector<8x8xf32> to vector<8xf32>
    %265 = vector.shape_cast %264 : vector<8xf32> to vector<8x1xf32>
    %266 = vector.broadcast %265 : vector<8x1xf32> to vector<8x8xf32>
    %267 = arith.subf %263, %266 : vector<8x8xf32>
    %268 = math.exp %267 : vector<8x8xf32>
    %cst_86 = arith.constant dense<0.000000e+00> : vector<8xf32>
    %269 = vector.multi_reduction <add>, %268, %cst_86 [1] : vector<8x8xf32> to vector<8xf32>
    %270 = vector.shape_cast %269 : vector<8xf32> to vector<8x1xf32>
    %271 = tpu.reciprocal %270 {approx = true} : vector<8x1xf32> -> vector<8x1xf32>
    %272 = vector.broadcast %271 : vector<8x1xf32> to vector<8x8xf32>
    %273 = arith.mulf %268, %272 : vector<8x8xf32>
    %274 = vector.shape_cast %273 : vector<8x8xf32> to vector<8x8x1xf32>
    %275 = arith.extf %4 : vector<8x8x32xbf16> to vector<8x8x32xf32>
    %276 = vector.broadcast %274 : vector<8x8x1xf32> to vector<8x8x32xf32>
    %277 = arith.mulf %276, %275 : vector<8x8x32xf32>
    %cst_87 = arith.constant dense<0.000000e+00> : vector<8x32xf32>
    %278 = vector.multi_reduction <add>, %277, %cst_87 [1] : vector<8x8x32xf32> to vector<8x32xf32>
    %279 = arith.truncf %278 : vector<8x32xf32> to vector<8x32xbf16>
    %cst_88 = arith.constant dense<0.000000e+00> : vector<8x128xf32>
    %280 = tpu.matmul %279, %8, %cst_88 {dimension_numbers = #tpu.dot_dimension_numbers<[1], [0], [0], [1], [0, 0, 1, 1], [], []>} : vector<8x32xbf16>, vector<32x128xbf16>, vector<8x128xf32> -> vector<8x128xf32>
    %281 = arith.truncf %251 : vector<8x32xf32> to vector<8x32xbf16>
    %cst_89 = arith.constant dense<0.000000e+00> : vector<8x128xf32>
    %282 = tpu.matmul %281, %9, %cst_89 {dimension_numbers = #tpu.dot_dimension_numbers<[1], [0], [0], [1], [0, 0, 1, 1], [], []>} : vector<8x32xbf16>, vector<32x128xbf16>, vector<8x128xf32> -> vector<8x128xf32>
    %283 = arith.addf %280, %282 : vector<8x128xf32>
    %284 = arith.truncf %214 : vector<8x32xf32> to vector<8x32xbf16>
    %cst_90 = arith.constant dense<0.000000e+00> : vector<8x128xf32>
    %285 = tpu.matmul %284, %10, %cst_90 {dimension_numbers = #tpu.dot_dimension_numbers<[1], [0], [0], [1], [0, 0, 1, 1], [], []>} : vector<8x32xbf16>, vector<32x128xbf16>, vector<8x128xf32> -> vector<8x128xf32>
    %286 = arith.addf %283, %285 : vector<8x128xf32>
    %287 = vector.broadcast %11 : vector<1x128xf32> to vector<8x128xf32>
    %288 = arith.addf %286, %287 : vector<8x128xf32>
    %289 = vector.extract_strided_slice %288 {offsets = [0, 0], sizes = [8, 32], strides = [1, 1]} : vector<8x128xf32> to vector<8x32xf32>
    %290 = arith.negf %289 : vector<8x32xf32>
    %291 = math.exp %290 : vector<8x32xf32>
    %cst_91 = arith.constant 1.000000e+00 : f32
    %292 = vector.broadcast %cst_91 : f32 to vector<8x32xf32>
    %293 = arith.addf %292, %291 : vector<8x32xf32>
    %294 = arith.divf %292, %293 : vector<8x32xf32>
    %295 = vector.extract_strided_slice %288 {offsets = [0, 32], sizes = [8, 32], strides = [1, 1]} : vector<8x128xf32> to vector<8x32xf32>
    %296 = arith.negf %295 : vector<8x32xf32>
    %297 = math.exp %296 : vector<8x32xf32>
    %cst_92 = arith.constant 1.000000e+00 : f32
    %298 = vector.broadcast %cst_92 : f32 to vector<8x32xf32>
    %299 = arith.addf %298, %297 : vector<8x32xf32>
    %300 = arith.divf %298, %299 : vector<8x32xf32>
    %301 = vector.extract_strided_slice %288 {offsets = [0, 64], sizes = [8, 32], strides = [1, 1]} : vector<8x128xf32> to vector<8x32xf32>
    %302 = math.tanh %301 : vector<8x32xf32>
    %303 = vector.extract_strided_slice %288 {offsets = [0, 96], sizes = [8, 32], strides = [1, 1]} : vector<8x128xf32> to vector<8x32xf32>
    %304 = arith.negf %303 : vector<8x32xf32>
    %305 = math.exp %304 : vector<8x32xf32>
    %cst_93 = arith.constant 1.000000e+00 : f32
    %306 = vector.broadcast %cst_93 : f32 to vector<8x32xf32>
    %307 = arith.addf %306, %305 : vector<8x32xf32>
    %308 = arith.divf %306, %307 : vector<8x32xf32>
    %309 = arith.mulf %300, %212 : vector<8x32xf32>
    %310 = arith.mulf %294, %302 : vector<8x32xf32>
    %311 = arith.addf %309, %310 : vector<8x32xf32>
    %312 = math.tanh %311 : vector<8x32xf32>
    %313 = arith.mulf %308, %312 : vector<8x32xf32>
    %c2_94 = arith.constant 2 : index
    %c0_95 = arith.constant 0 : index
    %c0_96 = arith.constant 0 : index
    %314 = vector.load %arg15[%c2_94, %c0_95, %c0_96] : memref<4x8x32xf32, #tpu.memory_space<vmem>>, vector<1x8x32xf32>
    %315 = vector.shape_cast %314 : vector<1x8x32xf32> to vector<8x32xf32>
    %316 = vector.shape_cast %313 : vector<8x32xf32> to vector<1x8x32xf32>
    tpu.vector_store %arg15[%c2_94, %c0_95, %c0_96], %316 {strides = array<i32>} : memref<4x8x32xf32, #tpu.memory_space<vmem>>, vector<1x8x32xf32>,
    %c3 = arith.constant 3 : index
    %c0_97 = arith.constant 0 : index
    %c0_98 = arith.constant 0 : index
    %317 = vector.load %arg2[%c3, %c0_97, %c0_98] : memref<4x8x128xf32, #tpu.memory_space<vmem>>, vector<1x8x128xf32>
    %318 = vector.shape_cast %317 : vector<1x8x128xf32> to vector<8x128xf32>
    %319 = arith.addf %318, %3 : vector<8x128xf32>
    %320 = arith.truncf %313 : vector<8x32xf32> to vector<8x32xbf16>
    %cst_99 = arith.constant dense<0.000000e+00> : vector<8x128xf32>
    %321 = tpu.matmul %320, %6, %cst_99 {dimension_numbers = #tpu.dot_dimension_numbers<[1], [0], [0], [1], [0, 0, 1, 1], [], []>} : vector<8x32xbf16>, vector<32x128xbf16>, vector<8x128xf32> -> vector<8x128xf32>
    %322 = arith.addf %319, %321 : vector<8x128xf32>
    %323 = arith.truncf %251 : vector<8x32xf32> to vector<8x32xbf16>
    %cst_100 = arith.constant dense<0.000000e+00> : vector<8x128xf32>
    %324 = tpu.matmul %323, %7, %cst_100 {dimension_numbers = #tpu.dot_dimension_numbers<[1], [0], [0], [1], [0, 0, 1, 1], [], []>} : vector<8x32xbf16>, vector<32x128xbf16>, vector<8x128xf32> -> vector<8x128xf32>
    %325 = arith.addf %322, %324 : vector<8x128xf32>
    %326 = vector.extract_strided_slice %325 {offsets = [0, 0], sizes = [8, 32], strides = [1, 1]} : vector<8x128xf32> to vector<8x32xf32>
    %327 = arith.negf %326 : vector<8x32xf32>
    %328 = math.exp %327 : vector<8x32xf32>
    %cst_101 = arith.constant 1.000000e+00 : f32
    %329 = vector.broadcast %cst_101 : f32 to vector<8x32xf32>
    %330 = arith.addf %329, %328 : vector<8x32xf32>
    %331 = arith.divf %329, %330 : vector<8x32xf32>
    %332 = vector.extract_strided_slice %325 {offsets = [0, 32], sizes = [8, 32], strides = [1, 1]} : vector<8x128xf32> to vector<8x32xf32>
    %333 = arith.negf %332 : vector<8x32xf32>
    %334 = math.exp %333 : vector<8x32xf32>
    %cst_102 = arith.constant 1.000000e+00 : f32
    %335 = vector.broadcast %cst_102 : f32 to vector<8x32xf32>
    %336 = arith.addf %335, %334 : vector<8x32xf32>
    %337 = arith.divf %335, %336 : vector<8x32xf32>
    %338 = vector.extract_strided_slice %325 {offsets = [0, 64], sizes = [8, 32], strides = [1, 1]} : vector<8x128xf32> to vector<8x32xf32>
    %339 = math.tanh %338 : vector<8x32xf32>
    %340 = vector.extract_strided_slice %325 {offsets = [0, 96], sizes = [8, 32], strides = [1, 1]} : vector<8x128xf32> to vector<8x32xf32>
    %341 = arith.negf %340 : vector<8x32xf32>
    %342 = math.exp %341 : vector<8x32xf32>
    %cst_103 = arith.constant 1.000000e+00 : f32
    %343 = vector.broadcast %cst_103 : f32 to vector<8x32xf32>
    %344 = arith.addf %343, %342 : vector<8x32xf32>
    %345 = arith.divf %343, %344 : vector<8x32xf32>
    %346 = arith.mulf %337, %249 : vector<8x32xf32>
    %347 = arith.mulf %331, %339 : vector<8x32xf32>
    %348 = arith.addf %346, %347 : vector<8x32xf32>
    %349 = math.tanh %348 : vector<8x32xf32>
    %350 = arith.mulf %345, %349 : vector<8x32xf32>
    %351 = arith.truncf %350 : vector<8x32xf32> to vector<8x32xbf16>
    %cst_104 = arith.constant dense<0.000000e+00> : vector<8x32xf32>
    %352 = tpu.matmul %351, %12, %cst_104 {dimension_numbers = #tpu.dot_dimension_numbers<[1], [0], [0], [1], [0, 0, 1, 1], [], []>} : vector<8x32xbf16>, vector<32x32xbf16>, vector<8x32xf32> -> vector<8x32xf32>
    %353 = vector.broadcast %13 : vector<1x32xf32> to vector<8x32xf32>
    %354 = arith.addf %352, %353 : vector<8x32xf32>
    %355 = vector.shape_cast %354 : vector<8x32xf32> to vector<8x1x32xf32>
    %356 = arith.extf %5 : vector<8x8x32xbf16> to vector<8x8x32xf32>
    %357 = vector.broadcast %355 : vector<8x1x32xf32> to vector<8x8x32xf32>
    %358 = arith.addf %356, %357 : vector<8x8x32xf32>
    %359 = math.tanh %358 : vector<8x8x32xf32>
    %360 = vector.broadcast %15 : vector<1x1x32xf32> to vector<8x8x32xf32>
    %361 = arith.mulf %359, %360 : vector<8x8x32xf32>
    %cst_105 = arith.constant dense<0.000000e+00> : vector<8x8xf32>
    %362 = vector.multi_reduction <add>, %361, %cst_105 [2] : vector<8x8x32xf32> to vector<8x8xf32>
    %cst_106 = arith.constant dense<0xFF800000> : vector<8xf32>
    %363 = vector.multi_reduction <maximumf>, %362, %cst_106 [1] : vector<8x8xf32> to vector<8xf32>
    %364 = vector.shape_cast %363 : vector<8xf32> to vector<8x1xf32>
    %365 = vector.broadcast %364 : vector<8x1xf32> to vector<8x8xf32>
    %366 = arith.subf %362, %365 : vector<8x8xf32>
    %367 = math.exp %366 : vector<8x8xf32>
    %cst_107 = arith.constant dense<0.000000e+00> : vector<8xf32>
    %368 = vector.multi_reduction <add>, %367, %cst_107 [1] : vector<8x8xf32> to vector<8xf32>
    %369 = vector.shape_cast %368 : vector<8xf32> to vector<8x1xf32>
    %370 = tpu.reciprocal %369 {approx = true} : vector<8x1xf32> -> vector<8x1xf32>
    %371 = vector.broadcast %370 : vector<8x1xf32> to vector<8x8xf32>
    %372 = arith.mulf %367, %371 : vector<8x8xf32>
    %373 = vector.shape_cast %372 : vector<8x8xf32> to vector<8x8x1xf32>
    %374 = arith.extf %4 : vector<8x8x32xbf16> to vector<8x8x32xf32>
    %375 = vector.broadcast %373 : vector<8x8x1xf32> to vector<8x8x32xf32>
    %376 = arith.mulf %375, %374 : vector<8x8x32xf32>
    %cst_108 = arith.constant dense<0.000000e+00> : vector<8x32xf32>
    %377 = vector.multi_reduction <add>, %376, %cst_108 [1] : vector<8x8x32xf32> to vector<8x32xf32>
    %378 = arith.truncf %377 : vector<8x32xf32> to vector<8x32xbf16>
    %cst_109 = arith.constant dense<0.000000e+00> : vector<8x128xf32>
    %379 = tpu.matmul %378, %8, %cst_109 {dimension_numbers = #tpu.dot_dimension_numbers<[1], [0], [0], [1], [0, 0, 1, 1], [], []>} : vector<8x32xbf16>, vector<32x128xbf16>, vector<8x128xf32> -> vector<8x128xf32>
    %380 = arith.truncf %350 : vector<8x32xf32> to vector<8x32xbf16>
    %cst_110 = arith.constant dense<0.000000e+00> : vector<8x128xf32>
    %381 = tpu.matmul %380, %9, %cst_110 {dimension_numbers = #tpu.dot_dimension_numbers<[1], [0], [0], [1], [0, 0, 1, 1], [], []>} : vector<8x32xbf16>, vector<32x128xbf16>, vector<8x128xf32> -> vector<8x128xf32>
    %382 = arith.addf %379, %381 : vector<8x128xf32>
    %383 = arith.truncf %313 : vector<8x32xf32> to vector<8x32xbf16>
    %cst_111 = arith.constant dense<0.000000e+00> : vector<8x128xf32>
    %384 = tpu.matmul %383, %10, %cst_111 {dimension_numbers = #tpu.dot_dimension_numbers<[1], [0], [0], [1], [0, 0, 1, 1], [], []>} : vector<8x32xbf16>, vector<32x128xbf16>, vector<8x128xf32> -> vector<8x128xf32>
    %385 = arith.addf %382, %384 : vector<8x128xf32>
    %386 = vector.broadcast %11 : vector<1x128xf32> to vector<8x128xf32>
    %387 = arith.addf %385, %386 : vector<8x128xf32>
    %388 = vector.extract_strided_slice %387 {offsets = [0, 0], sizes = [8, 32], strides = [1, 1]} : vector<8x128xf32> to vector<8x32xf32>
    %389 = arith.negf %388 : vector<8x32xf32>
    %390 = math.exp %389 : vector<8x32xf32>
    %cst_112 = arith.constant 1.000000e+00 : f32
    %391 = vector.broadcast %cst_112 : f32 to vector<8x32xf32>
    %392 = arith.addf %391, %390 : vector<8x32xf32>
    %393 = arith.divf %391, %392 : vector<8x32xf32>
    %394 = vector.extract_strided_slice %387 {offsets = [0, 32], sizes = [8, 32], strides = [1, 1]} : vector<8x128xf32> to vector<8x32xf32>
    %395 = arith.negf %394 : vector<8x32xf32>
    %396 = math.exp %395 : vector<8x32xf32>
    %cst_113 = arith.constant 1.000000e+00 : f32
    %397 = vector.broadcast %cst_113 : f32 to vector<8x32xf32>
    %398 = arith.addf %397, %396 : vector<8x32xf32>
    %399 = arith.divf %397, %398 : vector<8x32xf32>
    %400 = vector.extract_strided_slice %387 {offsets = [0, 64], sizes = [8, 32], strides = [1, 1]} : vector<8x128xf32> to vector<8x32xf32>
    %401 = math.tanh %400 : vector<8x32xf32>
    %402 = vector.extract_strided_slice %387 {offsets = [0, 96], sizes = [8, 32], strides = [1, 1]} : vector<8x128xf32> to vector<8x32xf32>
    %403 = arith.negf %402 : vector<8x32xf32>
    %404 = math.exp %403 : vector<8x32xf32>
    %cst_114 = arith.constant 1.000000e+00 : f32
    %405 = vector.broadcast %cst_114 : f32 to vector<8x32xf32>
    %406 = arith.addf %405, %404 : vector<8x32xf32>
    %407 = arith.divf %405, %406 : vector<8x32xf32>
    %408 = arith.mulf %399, %311 : vector<8x32xf32>
    %409 = arith.mulf %393, %401 : vector<8x32xf32>
    %410 = arith.addf %408, %409 : vector<8x32xf32>
    %411 = math.tanh %410 : vector<8x32xf32>
    %412 = arith.mulf %407, %411 : vector<8x32xf32>
    %c3_115 = arith.constant 3 : index
    %c0_116 = arith.constant 0 : index
    %c0_117 = arith.constant 0 : index
    %413 = vector.load %arg15[%c3_115, %c0_116, %c0_117] : memref<4x8x32xf32, #tpu.memory_space<vmem>>, vector<1x8x32xf32>
    %414 = vector.shape_cast %413 : vector<1x8x32xf32> to vector<8x32xf32>
    %415 = vector.shape_cast %412 : vector<8x32xf32> to vector<1x8x32xf32>
    tpu.vector_store %arg15[%c3_115, %c0_116, %c0_117], %415 {strides = array<i32>} : memref<4x8x32xf32, #tpu.memory_space<vmem>>, vector<1x8x32xf32>,
    %c0_118 = arith.constant 0 : index
    %c0_119 = arith.constant 0 : index
    %416 = vector.load %arg16[%c0_118, %c0_119] : memref<8x32xf32, #tpu.memory_space<vmem>>, vector<8x32xf32>
    tpu.vector_store %arg16[%c0_118, %c0_119], %350 {strides = array<i32>} : memref<8x32xf32, #tpu.memory_space<vmem>>, vector<8x32xf32>,
    %c0_120 = arith.constant 0 : index
    %c0_121 = arith.constant 0 : index
    %417 = vector.load %arg17[%c0_120, %c0_121] : memref<8x32xf32, #tpu.memory_space<vmem>>, vector<8x32xf32>
    tpu.vector_store %arg17[%c0_120, %c0_121], %348 {strides = array<i32>} : memref<8x32xf32, #tpu.memory_space<vmem>>, vector<8x32xf32>,
    %c0_122 = arith.constant 0 : index
    %c0_123 = arith.constant 0 : index
    %418 = vector.load %arg18[%c0_122, %c0_123] : memref<8x32xf32, #tpu.memory_space<vmem>>, vector<8x32xf32>
    tpu.vector_store %arg18[%c0_122, %c0_123], %412 {strides = array<i32>} : memref<8x32xf32, #tpu.memory_space<vmem>>, vector<8x32xf32>,
    %c0_124 = arith.constant 0 : index
    %c0_125 = arith.constant 0 : index
    %419 = vector.load %arg19[%c0_124, %c0_125] : memref<8x32xf32, #tpu.memory_space<vmem>>, vector<8x32xf32>
    tpu.vector_store %arg19[%c0_124, %c0_125], %410 {strides = array<i32>} : memref<8x32xf32, #tpu.memory_space<vmem>>, vector<8x32xf32>,
    return
  }
  func.func @transform_0(%arg0: i32, %arg1: i32) -> (i32, i32, i32) {
    %c0_i32 = arith.constant 0 : i32
    %c0_i32_0 = arith.constant 0 : i32
    return %arg1, %arg0, %c0_i32 : i32, i32, i32
  }
  func.func @transform_1(%arg0: i32, %arg1: i32) -> (i32, i32) {
    %c0_i32 = arith.constant 0 : i32
    %c0_i32_0 = arith.constant 0 : i32
    return %arg0, %c0_i32 : i32, i32
  }
  func.func @transform_2(%arg0: i32, %arg1: i32) -> (i32, i32, i32) {
    %c0_i32 = arith.constant 0 : i32
    %c0_i32_0 = arith.constant 0 : i32
    %c0_i32_1 = arith.constant 0 : i32
    return %arg0, %c0_i32, %c0_i32_0 : i32, i32, i32
  }
  func.func @transform_3(%arg0: i32, %arg1: i32) -> (i32, i32, i32) {
    %c0_i32 = arith.constant 0 : i32
    %c0_i32_0 = arith.constant 0 : i32
    %c0_i32_1 = arith.constant 0 : i32
    return %arg0, %c0_i32, %c0_i32_0 : i32, i32, i32
  }
  func.func @transform_4(%arg0: i32, %arg1: i32) -> (i32, i32) {
    %c0_i32 = arith.constant 0 : i32
    %c0_i32_0 = arith.constant 0 : i32
    %c0_i32_1 = arith.constant 0 : i32
    return %c0_i32, %c0_i32_0 : i32, i32
  }
  func.func @transform_5(%arg0: i32, %arg1: i32) -> (i32, i32) {
    %c0_i32 = arith.constant 0 : i32
    %c0_i32_0 = arith.constant 0 : i32
    %c0_i32_1 = arith.constant 0 : i32
    return %c0_i32, %c0_i32_0 : i32, i32
  }
  func.func @transform_6(%arg0: i32, %arg1: i32) -> (i32, i32) {
    %c0_i32 = arith.constant 0 : i32
    %c0_i32_0 = arith.constant 0 : i32
    %c0_i32_1 = arith.constant 0 : i32
    return %c0_i32, %c0_i32_0 : i32, i32
  }
  func.func @transform_7(%arg0: i32, %arg1: i32) -> (i32, i32) {
    %c0_i32 = arith.constant 0 : i32
    %c0_i32_0 = arith.constant 0 : i32
    %c0_i32_1 = arith.constant 0 : i32
    return %c0_i32, %c0_i32_0 : i32, i32
  }
  func.func @transform_8(%arg0: i32, %arg1: i32) -> (i32, i32) {
    %c0_i32 = arith.constant 0 : i32
    %c0_i32_0 = arith.constant 0 : i32
    %c0_i32_1 = arith.constant 0 : i32
    return %c0_i32, %c0_i32_0 : i32, i32
  }
  func.func @transform_9(%arg0: i32, %arg1: i32) -> (i32, i32) {
    %c0_i32 = arith.constant 0 : i32
    %c0_i32_0 = arith.constant 0 : i32
    %c0_i32_1 = arith.constant 0 : i32
    return %c0_i32, %c0_i32_0 : i32, i32
  }
  func.func @transform_10(%arg0: i32, %arg1: i32) -> (i32, i32) {
    %c0_i32 = arith.constant 0 : i32
    %c0_i32_0 = arith.constant 0 : i32
    %c0_i32_1 = arith.constant 0 : i32
    return %c0_i32, %c0_i32_0 : i32, i32
  }
  func.func @transform_11(%arg0: i32, %arg1: i32) -> (i32, i32) {
    %c0_i32 = arith.constant 0 : i32
    %c0_i32_0 = arith.constant 0 : i32
    %c0_i32_1 = arith.constant 0 : i32
    return %c0_i32, %c0_i32_0 : i32, i32
  }
  func.func @transform_12(%arg0: i32, %arg1: i32) -> (i32, i32) {
    %c0_i32 = arith.constant 0 : i32
    %c0_i32_0 = arith.constant 0 : i32
    %c0_i32_1 = arith.constant 0 : i32
    return %c0_i32, %c0_i32_0 : i32, i32
  }
  func.func @transform_13(%arg0: i32, %arg1: i32) -> (i32, i32, i32) {
    %c0_i32 = arith.constant 0 : i32
    %c0_i32_0 = arith.constant 0 : i32
    return %arg1, %arg0, %c0_i32 : i32, i32, i32
  }
}

module attributes {stable_mosaic.version = 11 : i64} {
  func.func @cls_kernel(%arg0: i32, %arg1: memref<8x8x32xf32, #tpu.memory_space<vmem>>, %arg2: memref<32x128xbf16, #tpu.memory_space<vmem>>, %arg3: memref<1x128xf32, #tpu.memory_space<vmem>>, %arg4: memref<8x8x128xf32, #tpu.memory_space<vmem>>) attributes {dimension_semantics = [#tpu.dimension_semantics<parallel>], iteration_bounds = array<i64: 1>, scalar_prefetch = 0 : i64, scratch_operands = 0 : i64, tpu.core_type = #tpu.core_type<tc>, window_params = [{transform_indices = @transform_0, window_bounds = array<i64: 8, 8, 32>}, {pipeline_mode = #tpu.pipeline_mode<synchronous>, transform_indices = @transform_1, window_bounds = array<i64: 32, 128>}, {pipeline_mode = #tpu.pipeline_mode<synchronous>, transform_indices = @transform_2, window_bounds = array<i64: 1, 128>}, {transform_indices = @transform_3, window_bounds = array<i64: 8, 8, 128>}]} {
    %c0 = arith.constant 0 : index
    %c0_0 = arith.constant 0 : index
    %c0_1 = arith.constant 0 : index
    %0 = vector.load %arg1[%c0, %c0_0, %c0_1] : memref<8x8x32xf32, #tpu.memory_space<vmem>>, vector<8x8x32xf32>
    %1 = vector.shape_cast %0 : vector<8x8x32xf32> to vector<64x32xf32>
    %2 = arith.truncf %1 : vector<64x32xf32> to vector<64x32xbf16>
    %c0_2 = arith.constant 0 : index
    %c0_3 = arith.constant 0 : index
    %3 = vector.load %arg2[%c0_2, %c0_3] : memref<32x128xbf16, #tpu.memory_space<vmem>>, vector<32x128xbf16>
    %cst = arith.constant dense<0.000000e+00> : vector<64x128xf32>
    %4 = tpu.matmul %2, %3, %cst {dimension_numbers = #tpu.dot_dimension_numbers<[1], [0], [0], [1], [0, 0, 1, 1], [], []>} : vector<64x32xbf16>, vector<32x128xbf16>, vector<64x128xf32> -> vector<64x128xf32>
    %c0_4 = arith.constant 0 : index
    %c0_5 = arith.constant 0 : index
    %5 = vector.load %arg3[%c0_4, %c0_5] : memref<1x128xf32, #tpu.memory_space<vmem>>, vector<1x128xf32>
    %6 = vector.broadcast %5 : vector<1x128xf32> to vector<64x128xf32>
    %7 = arith.addf %4, %6 : vector<64x128xf32>
    %cst_6 = arith.constant dense<0xFF800000> : vector<64xf32>
    %8 = vector.multi_reduction <maximumf>, %7, %cst_6 [1] : vector<64x128xf32> to vector<64xf32>
    %9 = vector.shape_cast %8 : vector<64xf32> to vector<64x1xf32>
    %10 = vector.broadcast %9 : vector<64x1xf32> to vector<64x128xf32>
    %11 = arith.subf %7, %10 : vector<64x128xf32>
    %12 = math.exp %11 : vector<64x128xf32>
    %cst_7 = arith.constant dense<0.000000e+00> : vector<64xf32>
    %13 = vector.multi_reduction <add>, %12, %cst_7 [1] : vector<64x128xf32> to vector<64xf32>
    %14 = vector.shape_cast %13 : vector<64xf32> to vector<64x1xf32>
    %15 = math.log %14 : vector<64x1xf32>
    %16 = vector.broadcast %15 : vector<64x1xf32> to vector<64x128xf32>
    %17 = arith.subf %11, %16 : vector<64x128xf32>
    %18 = vector.shape_cast %17 : vector<64x128xf32> to vector<8x8x128xf32>
    %c0_8 = arith.constant 0 : index
    %c0_9 = arith.constant 0 : index
    %c0_10 = arith.constant 0 : index
    %19 = vector.load %arg4[%c0_8, %c0_9, %c0_10] : memref<8x8x128xf32, #tpu.memory_space<vmem>>, vector<8x8x128xf32>
    tpu.vector_store %arg4[%c0_8, %c0_9, %c0_10], %18 {strides = array<i32>} : memref<8x8x128xf32, #tpu.memory_space<vmem>>, vector<8x8x128xf32>,
    return
  }
  func.func @transform_0(%arg0: i32) -> (i32, i32, i32) {
    %c0_i32 = arith.constant 0 : i32
    %c0_i32_0 = arith.constant 0 : i32
    %c0_i32_1 = arith.constant 0 : i32
    return %arg0, %c0_i32, %c0_i32_0 : i32, i32, i32
  }
  func.func @transform_1(%arg0: i32) -> (i32, i32) {
    %c0_i32 = arith.constant 0 : i32
    %c0_i32_0 = arith.constant 0 : i32
    %c0_i32_1 = arith.constant 0 : i32
    return %c0_i32, %c0_i32_0 : i32, i32
  }
  func.func @transform_2(%arg0: i32) -> (i32, i32) {
    %c0_i32 = arith.constant 0 : i32
    %c0_i32_0 = arith.constant 0 : i32
    %c0_i32_1 = arith.constant 0 : i32
    return %c0_i32, %c0_i32_0 : i32, i32
  }
  func.func @transform_3(%arg0: i32) -> (i32, i32, i32) {
    %c0_i32 = arith.constant 0 : i32
    %c0_i32_0 = arith.constant 0 : i32
    %c0_i32_1 = arith.constant 0 : i32
    return %arg0, %c0_i32, %c0_i32_0 : i32, i32, i32
  }
}

</mosaic_0001>

<bundles_post_ra>
// kernel: decoder_forward_xe.7
= control target key start
LH: loop header
LB: loop body
LE: loop exit
PB: predicated region body
PF: predicated region fallthrough
CT: control target
= control target key end

     0   :  { %vm40_vm0 = vcmask 261120   ;;  %s233_s1 = inlined_call_operand.vmem [shape: bf16[32,128], index: 1, kind: input, shape index: {}]   ;;  %s234_s0 = inlined_call_operand.vmem [shape: f32[8,8,32], index: 0, kind: input, shape index: {}]   ;;  %s235_s2 = inlined_call_operand.vmem [shape: f32[8,8,128], index: 2, kind: output, shape index: {}]  }
   0x1   :  { %v158_v0 = vld [vmem:[%s233_s1] sm:$0xff]   ;;  %v159_v1 = vld [vmem:[%s233_s1 + $0x8] sm:$0xff]   ;;  %v14_v7 = vld [vmem:[%s234_s0 + $0x10] sm:$0xff] }
   0x2   :  { %142 = vmatprep.subr.bf16.mxu0 %v158_v0  ;;  %154 = vmatprep.subr.bf16.mxu1 %v158_v0  ;;  %v12_v2 = vld [vmem:[%s234_s0] sm:$0xff]  ;;  %v13_v3 = vld [vmem:[%s234_s0 + $0x8] sm:$0xff]  ;;  %v15_v8 = vld [vmem:[%s234_s0 + $0x18] sm:$0xff] }
   0x3   :  { %v16_v4 = vld [vmem:[%s234_s0 + $0x20] sm:$0xff]  ;;  %143 = vmatpush3.bf16.msra.mxu0 %v158_v0  ;;  %156 = vmatpush3.bf16.msra.mxu1 %v158_v0  ;;  %v20_v5 = vpack.c.bf16 %v13_v3, %v12_v2  ;;  %v17_v6 = vld [vmem:[%s234_s0 + $0x28] sm:$0xff]  ;;  %v18_v10 = vld [vmem:[%s234_s0 + $0x30] sm:$0xff]  ;;  %v21_v12 = vpack.c.bf16 %v15_v8, %v14_v7 }
   0x4   :  { %144 = vmatprep.subr.bf16.mxu0 %v159_v1  ;;  %155 = vmatprep.subr.bf16.mxu1 %v159_v1  ;;  %v22_v9 = vpack.c.bf16 %v17_v6, %v16_v4  ;;  %v19_v11 = vld [vmem:[%s234_s0 + $0x38] sm:$0xff] }
   0x5   :  { %146 = vmatprep.mubr.msk.bf16.mxu0 %vm40_vm0, %v20_v5  ;;  %v23_v13 = vpack.c.bf16 %v19_v11, %v18_v10 }
   0x6   :  { %150 = vmatprep.mubr.msk.bf16.mxu1 %vm40_vm0, %v22_v9 }
   0x7   :  { %145 = vmatpush3.bf16.msra.mxu0 %v159_v1  ;;  %157 = vmatpush3.bf16.msra.mxu1 %v159_v1 }
   0xa   :  { %147 = vmatmul.mubr.msk.bf16.vlgmr.msra.gmra.mrb[0].mxu0 %vm40_vm0, %v21_v12  ;;  %151 = vmatmul.mubr.msk.bf16.vlgmr.msra.gmra.mrb[0].mxu1 %vm40_vm0, %v23_v13 }
  0xdd   :  { %v148_v14 = vpop.f32.mrb[0].mxu0  ;;  %v152_v15 = vpop.f32.mrb[0].mxu1 }
  0xde   :  { %120 = vst [vmem:[%s235_s2 + $0x10] sm:$0xff] %v148_v14  ;;  %124 = vst [vmem:[%s235_s2 + $0x30] sm:$0xff] %v152_v15  ;;  %v87_v16 = vpop.f32.mrb[1].mxu0  ;;  %v103_v17 = vpop.f32.mrb[1].mxu1 }
  0xdf   :  { %118 = vst [vmem:[%s235_s2] sm:$0xff] %v87_v16  ;;  %122 = vst [vmem:[%s235_s2 + $0x20] sm:$0xff] %v103_v17  ;;  %v149_v18 = vpop.f32.mrb[2].mxu0  ;;  %v153_v19 = vpop.f32.mrb[2].mxu1 }
  0xe0   :  { %121 = vst [vmem:[%s235_s2 + $0x18] sm:$0xff] %v149_v18  ;;  %125 = vst [vmem:[%s235_s2 + $0x38] sm:$0xff] %v153_v19  ;;  %v90_v20 = vpop.f32.mrb[3].mxu0  ;;  %v106_v21 = vpop.f32.mrb[3].mxu1 }
  0xe1   :  { %119 = vst [vmem:[%s235_s2 + $0x8] sm:$0xff] %v90_v20  ;;  %123 = vst [vmem:[%s235_s2 + $0x28] sm:$0xff] %v106_v21 }

// kernel: decoder_forward_xe.5
= control target key start
LH: loop header
LB: loop body
LE: loop exit
PB: predicated region body
PF: predicated region fallthrough
CT: control target
= control target key end

     0   :  { %v187_v0 = vmov 0.0   ;;  %vm188_vm0 = vmmov 0   ;;  %vm38_vm1 = vcmask 130048   ;;  %vm107_vm2 = vcmask 261120   ;;  %s240_s1 = inlined_call_operand.vmem [shape: bf16[16,32], index: 1, kind: input, shape index: {}]   ;;  %s241_s0 = inlined_call_operand.vmem [shape: f32[8,16], index: 0, kind: input, shape index: {}]   ;;  %s242_s3 = inlined_call_operand.vmem [shape: bf16[32,128], index: 3, kind: input, shape index: {}]   ;;  %s243_s2 = inlined_call_operand.vmem [shape: f32[1,32], index: 2, kind: input, shape index: {}]   ;;  %s244_s4 = inlined_call_operand.vmem [shape: f32[1,128], index: 4, kind: input, shape index: {}]   ;;  %s245_s5 = inlined_call_operand.vmem [shape: f32[8,128], index: 5, kind: output, shape index: {}]  }
   0x1   :  { %168 = vmatprep.subr.bf16.mxu0 %v187_v0  ;;  %v184_v1 = vld [vmem:[%s240_s1] sm:$0xff]   ;;  %170 = vmatprep.mubr.msk.bf16.mxu0 %vm188_vm0, %v187_v0  ;;  %v186_v5 = vld [vmem:[%s242_s3 + $0x8] sm:$0xff]  }
   0x2   :  { %v21_v2 = vld [vmem:[%s241_s0] sm:$0xff]  ;;  %174 = vmatprep.subr.bf16.mxu1 %v187_v0  ;;  %178 = vmatprep.mubr.msk.bf16.mxu1 %vm188_vm0, %v187_v0 }
   0x3   :  { %169 = vmatpush3.bf16.msra.mxu0 %v184_v1  ;;  %v22_v3 = vpack.c.bf16 %v21_v2, %v21_v2  ;;  %v185_v4 = vld [vmem:[%s242_s3] sm:$0xff]  }
   0x4   :  { %175 = vmatpush3.bf16.msra.mxu1 %v185_v4  ;;  %v156_v6 = vld [vmem:[%s243_s2] ss:$0 sm:$0xff] }
   0x5   :  { %176 = vmatprep.subr.bf16.mxu1 %v187_v0  ;;  %v159_v14 = vld [vmem:[%s244_s4] ss:$0 sm:$0xff] }
   0x6   :  { %171 = vmatmul.mubr.msk.bf16.vlgmr.msra.gmra.mrb[0].mxu0 %vm38_vm1, %v22_v3 }
   0x8   :  { %177 = vmatpush3.bf16.msra.mxu1 %v186_v5 }
  0xd9   :  { %v76_v7 = vpop.f32.mrb[0].mxu0 }
  0xda   :  { %v77_v8 = vadd.f32 %v156_v6, %v76_v7  ;;  %v172_v9 = vpop.f32.mrb[1].mxu0 }
  0xdb   :  { %v79_v10 = vpop.f32.mrb[2].mxu0 }
  0xdc   :  { %v82_v11 = vmax.f32 %v77_v8, 0.0  ;;  %v173_v12 = vpop.f32.mrb[3].mxu0 }
  0xde   :  { %v83_v13 = vpack.c.bf16 %v82_v11, %v82_v11 }
  0xe0   :  { %179 = vmatmul.mubr.msk.bf16.vlgmr.msra.gmra.mrb[0].mxu1 %vm107_vm2, %v83_v13 }
 0x1b3   :  { %v145_v15 = vpop.f32.mrb[0].mxu1 }
 0x1b4   :  { %v146_v16 = vadd.f32 %v159_v14, %v145_v15  ;;  %v180_v17 = vpop.f32.mrb[1].mxu1 }
 0x1b5   :  { %v148_v18 = vpop.f32.mrb[2].mxu1 }
 0x1b6   :  { %151 = vst [vmem:[%s245_s5] sm:$0xff] %v146_v16  ;;  %v181_v19 = vpop.f32.mrb[3].mxu1 }

// kernel: decoder_forward_xe.6
= control target key start
LH: loop header
LB: loop body
LE: loop exit
PB: predicated region body
PF: predicated region fallthrough
CT: control target
= control target key end

     0   :  { %vm50_vm0 = vcmask 130048   ;;  %vm168_vm1 = vcmask 257024   ;;  %vm200_vm2 = vcmask 261120   ;;  %s553_s1 = inlined_call_operand.vmem [shape: bf16[16,32], index: 1, kind: input, shape index: {}]   ;;  %s554_s0 = inlined_call_operand.vmem [shape: f32[8,8,16], index: 0, kind: input, shape index: {}]   ;;  %s555_s3 = inlined_call_operand.vmem [shape: bf16[32,32], index: 3, kind: input, shape index: {}]   ;;  %s556_s2 = inlined_call_operand.vmem [shape: f32[1,32], index: 2, kind: input, shape index: {}]   ;;  %s557_s5 = inlined_call_operand.vmem [shape: bf16[8,8,32], index: 5, kind: output, shape index: {0}]   ;;  %s558_s4 = inlined_call_operand.vmem [shape: f32[1,32], index: 4, kind: input, shape index: {}]   ;;  %s559_s6 = inlined_call_operand.vmem [shape: bf16[8,8,32], index: 6, kind: output, shape index: {1}]  }
   0x1   :  { %v404_v0 = vld [vmem:[%s553_s1] sm:$0xff]   ;;  %v24_v2 = vld [vmem:[%s554_s0 + $0x8] sm:$0xff]  ;;  %v25_v3 = vld [vmem:[%s554_s0 + $0x10] sm:$0xff] }
   0x2   :  { %v23_v1 = vld [vmem:[%s554_s0] sm:$0xff]  ;;  %382 = vmatprep.subr.bf16.mxu0 %v404_v0  ;;  %v26_v5 = vld [vmem:[%s554_s0 + $0x18] sm:$0xff]  ;;  %v28_v7 = vld [vmem:[%s554_s0 + $0x28] sm:$0xff] }
   0x3   :  { %v31_v4 = vpack.c.bf16 %v24_v2, %v23_v1  ;;  %v27_v6 = vld [vmem:[%s554_s0 + $0x20] sm:$0xff]  ;;  %383 = vmatpush3.bf16.msra.mxu0 %v404_v0  ;;  %v32_v8 = vpack.c.bf16 %v26_v5, %v25_v3  ;;  %v29_v10 = vld [vmem:[%s554_s0 + $0x30] sm:$0xff]  ;;  %v30_v11 = vld [vmem:[%s554_s0 + $0x38] sm:$0xff] }
   0x4   :  { %v33_v9 = vpack.c.bf16 %v28_v7, %v27_v6  ;;  %v34_v12 = vpack.c.bf16 %v30_v11, %v29_v10  ;;  %v405_v13 = vld [vmem:[%s555_s3] sm:$0xff]   ;;  %v406_v14 = vld [vmem:[%s555_s3 + $0x8] sm:$0xff]  }
   0x5   :  { %384 = vmatprep.mubr.msk.bf16.mxu0 %vm50_vm0, %v31_v4  ;;  %392 = vmatprep.subr.bf16.mxu1 %v405_v13  ;;  %v326_v15 = vld [vmem:[%s556_s2] ss:$0 sm:$0xff] }
   0x6   :  { %385 = vmatmul.mubr.msk.bf16.vlgmr.msra.gmra.mrb[0].mxu0 %vm50_vm0, %v32_v8  ;;  %393 = vmatpush3.bf16.msra.mxu1 %v405_v13  ;;  %v340_v52 = vld [vmem:[%s558_s4] ss:$0 sm:$0xff] }
   0x7   :  { %388 = vmatprep.mubr.msk.bf16.mxu0 %vm50_vm0, %v33_v9  ;;  %394 = vmatprep.subr.bf16.mxu1 %v406_v14 }
   0xa   :  { %395 = vmatpush3.bf16.msra.mxu1 %v406_v14 }
   0xe   :  { %389 = vmatmul.mubr.msk.bf16.gmra.mrb[4].mxu0 %vm50_vm0, %v34_v12 }
  0xd9   :  { %v386_v16 = vpop.f32.mrb[0].mxu0 }
  0xda   :  { %v106_v17 = vadd.f32 %v386_v16, %v326_v15  ;;  %v97_v18 = vpop.f32.mrb[1].mxu0 }
  0xdb   :  { %v98_v19 = vadd.f32 %v326_v15, %v97_v18  ;;  %v387_v20 = vpop.f32.mrb[2].mxu0 }
  0xdc   :  { %v130_v21 = vmax.f32 %v106_v17, 0.0  ;;  %v109_v22 = vadd.f32 %v387_v20, %v326_v15  ;;  %v100_v23 = vpop.f32.mrb[3].mxu0 }
  0xdd   :  { %v128_v24 = vmax.f32 %v98_v19, 0.0  ;;  %v101_v25 = vadd.f32 %v326_v15, %v100_v23 }
  0xde   :  { %v357_v26 = vpack.c.bf16 %v130_v21, %v130_v21  ;;  %v131_v27 = vmax.f32 %v109_v22, 0.0 }
  0xdf   :  { %v355_v28 = vpack.c.bf16 %v128_v24, %v128_v24  ;;  %v129_v29 = vmax.f32 %v101_v25, 0.0 }
  0xe0   :  { %171 = vst.msk [vmem:[%s557_s5 + $0x8] sm:$0xf] %vm168_vm1, %v357_v26  ;;  %v137_v30 = vpack.c.bf16 %v131_v27, %v130_v21  ;;  %v358_v31 = vpack.c.bf16 %v131_v27, %v131_v27 }
  0xe1   :  { %169 = vst.msk [vmem:[%s557_s5] sm:$0xf] %vm168_vm1, %v355_v28  ;;  %v356_v32 = vpack.c.bf16 %v129_v29, %v129_v29  ;;  %v390_v33 = vpop.f32.mrb[4].mxu0  ;;  %v136_v34 = vpack.c.bf16 %v129_v29, %v128_v24 }
  0xe2   :  { %172 = vst.msk [vmem:[%s557_s5 + $0xc] sm:$0xf] %vm168_vm1, %v358_v31  ;;  %v122_v35 = vadd.f32 %v390_v33, %v326_v15  ;;  %v113_v36 = vpop.f32.mrb[5].mxu0 }
  0xe3   :  { %170 = vst.msk [vmem:[%s557_s5 + $0x4] sm:$0xf] %vm168_vm1, %v356_v32  ;;  %v114_v37 = vadd.f32 %v326_v15, %v113_v36  ;;  %v391_v38 = vpop.f32.mrb[6].mxu0  ;;  %396 = vmatprep.mubr.msk.bf16.mxu1 %vm200_vm2, %v136_v34 }
  0xe4   :  { %v134_v39 = vmax.f32 %v122_v35, 0.0  ;;  %v125_v40 = vadd.f32 %v391_v38, %v326_v15  ;;  %v116_v41 = vpop.f32.mrb[7].mxu0  ;;  %397 = vmatmul.mubr.msk.bf16.vlgmr.msra.gmra.mrb[0].mxu1 %vm200_vm2, %v137_v30 }
  0xe5   :  { %v132_v42 = vmax.f32 %v114_v37, 0.0  ;;  %v117_v43 = vadd.f32 %v326_v15, %v116_v41 }
  0xe6   :  { %v361_v44 = vpack.c.bf16 %v134_v39, %v134_v39  ;;  %v135_v45 = vmax.f32 %v125_v40, 0.0 }
  0xe7   :  { %v359_v46 = vpack.c.bf16 %v132_v42, %v132_v42  ;;  %v133_v47 = vmax.f32 %v117_v43, 0.0 }
  0xe8   :  { %175 = vst.msk [vmem:[%s557_s5 + $0x18] sm:$0xf] %vm168_vm1, %v361_v44  ;;  %v139_v48 = vpack.c.bf16 %v135_v45, %v134_v39  ;;  %v362_v49 = vpack.c.bf16 %v135_v45, %v135_v45 }
  0xe9   :  { %173 = vst.msk [vmem:[%s557_s5 + $0x10] sm:$0xf] %vm168_vm1, %v359_v46  ;;  %v138_v50 = vpack.c.bf16 %v133_v47, %v132_v42  ;;  %v360_v51 = vpack.c.bf16 %v133_v47, %v133_v47 }
  0xea   :  { %176 = vst.msk [vmem:[%s557_s5 + $0x1c] sm:$0xf] %vm168_vm1, %v362_v49 }
  0xeb   :  { %174 = vst.msk [vmem:[%s557_s5 + $0x14] sm:$0xf] %vm168_vm1, %v360_v51  ;;  %400 = vmatprep.mubr.msk.bf16.mxu1 %vm200_vm2, %v138_v50 }
  0xec   :  { %401 = vmatmul.mubr.msk.bf16.gmra.mrb[4].mxu1 %vm200_vm2, %v139_v48 }
 0x1b7   :  { %v398_v53 = vpop.f32.mrb[0].mxu1 }
 0x1b8   :  { %v256_v54 = vadd.f32 %v398_v53, %v340_v52  ;;  %v247_v55 = vpop.f32.mrb[1].mxu1 }
 0x1b9   :  { %v248_v56 = vadd.f32 %v340_v52, %v247_v55  ;;  %v399_v57 = vpop.f32.mrb[2].mxu1 }
 0x1ba   :  { %v365_v58 = vpack.c.bf16 %v256_v54, %v256_v54  ;;  %v259_v59 = vadd.f32 %v399_v57, %v340_v52  ;;  %v250_v60 = vpop.f32.mrb[3].mxu1 }
 0x1bb   :  { %v363_v61 = vpack.c.bf16 %v248_v56, %v248_v56  ;;  %v251_v62 = vadd.f32 %v340_v52, %v250_v60 }
 0x1bc   :  { %312 = vst.msk [vmem:[%s559_s6 + $0x8] sm:$0xf] %vm168_vm1, %v365_v58  ;;  %v366_v63 = vpack.c.bf16 %v259_v59, %v259_v59 }
 0x1bd   :  { %310 = vst.msk [vmem:[%s559_s6] sm:$0xf] %vm168_vm1, %v363_v61  ;;  %v364_v0 = vpack.c.bf16 %v251_v62, %v251_v62 }
 0x1be   :  { %313 = vst.msk [vmem:[%s559_s6 + $0xc] sm:$0xf] %vm168_vm1, %v366_v63 }
 0x1bf   :  { %311 = vst.msk [vmem:[%s559_s6 + $0x4] sm:$0xf] %vm168_vm1, %v364_v0  ;;  %v402_v1 = vpop.f32.mrb[4].mxu1 }
 0x1c0   :  { %v272_v2 = vadd.f32 %v402_v1, %v340_v52  ;;  %v263_v3 = vpop.f32.mrb[5].mxu1 }
 0x1c1   :  { %v264_v4 = vadd.f32 %v340_v52, %v263_v3  ;;  %v403_v5 = vpop.f32.mrb[6].mxu1 }
 0x1c2   :  { %v369_v6 = vpack.c.bf16 %v272_v2, %v272_v2  ;;  %v275_v7 = vadd.f32 %v403_v5, %v340_v52  ;;  %v266_v8 = vpop.f32.mrb[7].mxu1 }
 0x1c3   :  { %v367_v9 = vpack.c.bf16 %v264_v4, %v264_v4  ;;  %v267_v10 = vadd.f32 %v340_v52, %v266_v8 }
 0x1c4   :  { %316 = vst.msk [vmem:[%s559_s6 + $0x18] sm:$0xf] %vm168_vm1, %v369_v6  ;;  %v370_v11 = vpack.c.bf16 %v275_v7, %v275_v7 }
 0x1c5   :  { %314 = vst.msk [vmem:[%s559_s6 + $0x10] sm:$0xf] %vm168_vm1, %v367_v9  ;;  %v368_v12 = vpack.c.bf16 %v267_v10, %v267_v10 }
 0x1c6   :  { %317 = vst.msk [vmem:[%s559_s6 + $0x1c] sm:$0xf] %vm168_vm1, %v370_v11 }
 0x1c7   :  { %315 = vst.msk [vmem:[%s559_s6 + $0x14] sm:$0xf] %vm168_vm1, %v368_v12 }

// kernel: decoder_forward_xe.9
= control target key start
LH: loop header
LB: loop body
LE: loop exit
PB: predicated region body
PF: predicated region fallthrough
CT: control target
= control target key end

     0   :  { %vm50_vm0 = vcmask 261120   ;;  %s396_s1 = inlined_call_operand.vmem [shape: bf16[32,128], index: 1, kind: input, shape index: {}]   ;;  %s397_s0 = inlined_call_operand.vmem [shape: f32[8,8,32], index: 0, kind: input, shape index: {}]   ;;  %s398_s2 = inlined_call_operand.vmem [shape: f32[1,128], index: 2, kind: input, shape index: {}]   ;;  %s399_s3 = inlined_call_operand.vmem [shape: f32[8,8,128], index: 3, kind: output, shape index: {}]  }
   0x1   :  { %v249_v0 = vld [vmem:[%s396_s1] sm:$0xff]   ;;  %v250_v1 = vld [vmem:[%s396_s1 + $0x8] sm:$0xff]   ;;  %v17_v4 = vld [vmem:[%s397_s0 + $0x10] sm:$0xff] }
   0x2   :  { %233 = vmatprep.subr.bf16.mxu0 %v249_v0  ;;  %245 = vmatprep.subr.bf16.mxu1 %v249_v0  ;;  %v15_v2 = vld [vmem:[%s397_s0] sm:$0xff]  ;;  %v16_v3 = vld [vmem:[%s397_s0 + $0x8] sm:$0xff]  ;;  %v18_v6 = vld [vmem:[%s397_s0 + $0x18] sm:$0xff] }
   0x3   :  { %234 = vmatpush3.bf16.msra.mxu0 %v249_v0  ;;  %247 = vmatpush3.bf16.msra.mxu1 %v249_v0  ;;  %v23_v5 = vpack.c.bf16 %v16_v3, %v15_v2  ;;  %v19_v7 = vld [vmem:[%s397_s0 + $0x20] sm:$0xff]  ;;  %v20_v8 = vld [vmem:[%s397_s0 + $0x28] sm:$0xff]  ;;  %v21_v10 = vld [vmem:[%s397_s0 + $0x30] sm:$0xff]  ;;  %v24_v12 = vpack.c.bf16 %v18_v6, %v17_v4 }
   0x4   :  { %235 = vmatprep.subr.bf16.mxu0 %v250_v1  ;;  %246 = vmatprep.subr.bf16.mxu1 %v250_v1  ;;  %v25_v9 = vpack.c.bf16 %v20_v8, %v19_v7  ;;  %v22_v11 = vld [vmem:[%s397_s0 + $0x38] sm:$0xff]  ;;  %v220_v14 = vld [vmem:[%s398_s2] ss:$0 sm:$0xff] }
   0x5   :  { %237 = vmatprep.mubr.msk.bf16.mxu0 %vm50_vm0, %v23_v5  ;;  %v26_v13 = vpack.c.bf16 %v22_v11, %v21_v10 }
   0x6   :  { %241 = vmatprep.mubr.msk.bf16.mxu1 %vm50_vm0, %v25_v9 }
   0x7   :  { %236 = vmatpush3.bf16.msra.mxu0 %v250_v1  ;;  %248 = vmatpush3.bf16.msra.mxu1 %v250_v1 }
   0xa   :  { %238 = vmatmul.mubr.msk.bf16.vlgmr.msra.gmra.mrb[0].mxu0 %vm50_vm0, %v24_v12  ;;  %242 = vmatmul.mubr.msk.bf16.vlgmr.msra.gmra.mrb[0].mxu1 %vm50_vm0, %v26_v13 }
  0xdd   :  { %v239_v15 = vpop.f32.mrb[0].mxu0  ;;  %v243_v16 = vpop.f32.mrb[0].mxu1 }
  0xde   :  { %v106_v17 = vadd.f32 %v239_v15, %v220_v14  ;;  %v97_v18 = vpop.f32.mrb[1].mxu0  ;;  %v113_v19 = vpop.f32.mrb[1].mxu1  ;;  %v122_v30 = vadd.f32 %v243_v16, %v220_v14 }
  0xdf   :  { %v98_v20 = vadd.f32 %v220_v14, %v97_v18  ;;  %v240_v21 = vpop.f32.mrb[2].mxu0  ;;  %v244_v22 = vpop.f32.mrb[2].mxu1  ;;  %v114_v25 = vadd.f32 %v220_v14, %v113_v19 }
  0xe0   :  { %132 = vmax.xlane.f32.xlu1 %v106_v17  ;;  %v100_v23 = vpop.f32.mrb[3].mxu0  ;;  %v116_v24 = vpop.f32.mrb[3].mxu1  ;;  %v109_v26 = vadd.f32 %v240_v21, %v220_v14  ;;  %v125_v29 = vadd.f32 %v244_v22, %v220_v14 }
  0xe1   :  { %128 = vmax.xlane.f32.xlu0 %v98_v20  ;;  %v117_v27 = vadd.f32 %v220_v14, %v116_v24  ;;  %v101_v28 = vadd.f32 %v220_v14, %v100_v23 }
  0xe4   :  { %134 = vmax.xlane.f32.xlu1 %v109_v26 }
  0xe5   :  { %136 = vmax.xlane.f32.xlu0 %v114_v25 }
  0xe8   :  { %138 = vmax.xlane.f32.xlu1 %v117_v27 }
  0xe9   :  { %130 = vmax.xlane.f32.xlu0 %v101_v28 }
  0xec   :  { %142 = vmax.xlane.f32.xlu1 %v125_v29 }
  0xed   :  { %140 = vmax.xlane.f32.xlu0 %v122_v30 }
 0x16d   :  { %v133_v31 = vpop.xlane.xlu1 %132 }
 0x16e   :  { %v340_v32 = vsub.f32 %v106_v17, %v133_v31  ;;  %v129_v33 = vpop.xlane.xlu0 %128 }
 0x16f   :  { %v342_v34 = vsub.f32 %v98_v20, %v129_v33 }
 0x170   :  { %v156_v35 = vmul.f32 1.442695, %v340_v32 }
 0x171   :  { %v152_v36 = vmul.f32 1.442695, %v342_v34  ;;  %v135_v37 = vpop.xlane.xlu1 %134 }
 0x172   :  { %251 = vpow2.f32 %v156_v35  ;;  %v346_v38 = vsub.f32 %v109_v26, %v135_v37  ;;  %v137_v39 = vpop.xlane.xlu0 %136 }
 0x173   :  { %v348_v40 = vsub.f32 %v114_v25, %v137_v39  ;;  %253 = vpow2.f32 %v152_v36 }
 0x174   :  { %v158_v41 = vmul.f32 1.442695, %v346_v38 }
 0x175   :  { %v139_v42 = vpop.xlane.xlu1 %138  ;;  %v160_v43 = vmul.f32 1.442695, %v348_v40 }
 0x176   :  { %255 = vpow2.f32 %v158_v41  ;;  %v352_v44 = vsub.f32 %v117_v27, %v139_v42  ;;  %v131_v45 = vpop.xlane.xlu0 %130 }
 0x177   :  { %v354_v46 = vsub.f32 %v101_v28, %v131_v45  ;;  %257 = vpow2.f32 %v160_v43 }
 0x178   :  { %v162_v49 = vmul.f32 1.442695, %v352_v44 }
 0x179   :  { %v154_v47 = vmul.f32 1.442695, %v354_v46  ;;  %v143_v48 = vpop.xlane.xlu1 %142 }
 0x17a   :  { %v141_v50 = vpop.xlane.xlu0 %140  ;;  %v358_v51 = vsub.f32 %v125_v29, %v143_v48 }
 0x17b   :  { %259 = vpow2.f32 %v154_v47  ;;  %v360_v52 = vsub.f32 %v122_v30, %v141_v50 }
 0x17c   :  { %v252_v53 = vpop.eup %251  ;;  %261 = vpow2.f32 %v162_v49  ;;  %v166_v56 = vmul.f32 1.442695, %v358_v51 }
 0x17d   :  { %v164_v54 = vmul.f32 1.442695, %v360_v52  ;;  %172 = vadd.xlane.f32.xlu0 %v252_v53  ;;  %v254_v55 = vpop.eup %253 }
 0x17f   :  { %263 = vpow2.f32 %v164_v54 }
 0x180   :  { %v256_v57 = vpop.eup %255  ;;  %265 = vpow2.f32 %v166_v56 }
 0x181   :  { %174 = vadd.xlane.f32.xlu1 %v256_v57  ;;  %168 = vadd.xlane.f32.xlu0 %v254_v55  ;;  %v258_v58 = vpop.eup %257 }
 0x185   :  { %v260_v59 = vpop.eup %259  ;;  %176 = vadd.xlane.f32.xlu0 %v258_v58 }
 0x186   :  { %170 = vadd.xlane.f32.xlu1 %v260_v59  ;;  %v262_v60 = vpop.eup %261 }
 0x189   :  { %v264_v61 = vpop.eup %263 }
 0x18a   :  { %178 = vadd.xlane.f32.xlu1 %v262_v60  ;;  %180 = vadd.xlane.f32.xlu0 %v264_v61  ;;  %v266_v62 = vpop.eup %265 }
 0x18e   :  { %182 = vadd.xlane.f32.xlu1 %v266_v62 }
 0x20a   :  { %v173_v63 = vpop.xlane.xlu0 %172 }
 0x20b   :  { %267 = vlog2.f32 %v173_v63 }
 0x20e   :  { %v175_v0 = vpop.xlane.xlu1 %174  ;;  %v169_v1 = vpop.xlane.xlu0 %168 }
 0x20f   :  { %269 = vlog2.f32 %v175_v0 }
 0x210   :  { %271 = vlog2.f32 %v169_v1 }
 0x212   :  { %v177_v2 = vpop.xlane.xlu0 %176 }
 0x213   :  { %273 = vlog2.f32 %v177_v2  ;;  %v171_v3 = vpop.xlane.xlu1 %170 }
 0x214   :  { %275 = vlog2.f32 %v171_v3 }
 0x215   :  { %v268_v4 = vpop.eup %267 }
 0x216   :  { %v189_v5 = vmul.f32 0.6931472, %v268_v4 }
 0x217   :  { %v179_v6 = vpop.xlane.xlu1 %178  ;;  %v181_v7 = vpop.xlane.xlu0 %180 }
 0x218   :  { %v202_v8 = vsub.f32 %v340_v32, %v189_v5  ;;  %277 = vlog2.f32 %v179_v6 }
 0x219   :  { %v270_v9 = vpop.eup %269  ;;  %279 = vlog2.f32 %v181_v7 }
 0x21a   :  { %v272_v10 = vpop.eup %271  ;;  %210 = vst [vmem:[%s399_s3 + $0x10] sm:$0xff] %v202_v8  ;;  %v191_v11 = vmul.f32 0.6931472, %v270_v9 }
 0x21b   :  { %v185_v12 = vmul.f32 0.6931472, %v272_v10  ;;  %v183_v13 = vpop.xlane.xlu1 %182 }
 0x21c   :  { %v203_v14 = vsub.f32 %v346_v38, %v191_v11  ;;  %281 = vlog2.f32 %v183_v13 }
 0x21d   :  { %v274_v15 = vpop.eup %273  ;;  %v200_v16 = vsub.f32 %v342_v34, %v185_v12 }
 0x21e   :  { %v276_v17 = vpop.eup %275  ;;  %211 = vst [vmem:[%s399_s3 + $0x18] sm:$0xff] %v203_v14  ;;  %v193_v18 = vmul.f32 0.6931472, %v274_v15 }
 0x21f   :  { %208 = vst [vmem:[%s399_s3] sm:$0xff] %v200_v16  ;;  %v187_v19 = vmul.f32 0.6931472, %v276_v17 }
 0x220   :  { %v204_v20 = vsub.f32 %v348_v40, %v193_v18 }
 0x221   :  { %v201_v21 = vsub.f32 %v354_v46, %v187_v19 }
 0x222   :  { %v278_v22 = vpop.eup %277  ;;  %212 = vst [vmem:[%s399_s3 + $0x20] sm:$0xff] %v204_v20 }
 0x223   :  { %v280_v23 = vpop.eup %279  ;;  %209 = vst [vmem:[%s399_s3 + $0x8] sm:$0xff] %v201_v21  ;;  %v195_v24 = vmul.f32 0.6931472, %v278_v22 }
 0x224   :  { %v197_v25 = vmul.f32 0.6931472, %v280_v23 }
 0x225   :  { %v205_v26 = vsub.f32 %v352_v44, %v195_v24 }
 0x226   :  { %v282_v27 = vpop.eup %281  ;;  %v206_v28 = vsub.f32 %v360_v52, %v197_v25 }
 0x227   :  { %213 = vst [vmem:[%s399_s3 + $0x28] sm:$0xff] %v205_v26  ;;  %v199_v29 = vmul.f32 0.6931472, %v282_v27 }
 0x228   :  { %214 = vst [vmem:[%s399_s3 + $0x30] sm:$0xff] %v206_v28 }
 0x229   :  { %v207_v30 = vsub.f32 %v358_v51, %v199_v29 }
 0x22b   :  { %215 = vst [vmem:[%s399_s3 + $0x38] sm:$0xff] %v207_v30 }

// kernel: decoder_forward_xe.8
= control target key start
LH: loop header
LB: loop body
LE: loop exit
PB: predicated region body
PF: predicated region fallthrough
CT: control target
= control target key end

     0   :  { %s4943_s25 = smov 0   ;;  %s4945_s26 = smov 0   ;;  %s5986_s0 = inlined_call_operand.vmem [shape: f32[8,8,128], index: 0, kind: input, shape index: {}]   ;;  %s5987_s1 = inlined_call_operand.vmem [shape: f32[8,128], index: 1, kind: input, shape index: {}]   ;;  %s5988_s2 = inlined_call_operand.vmem [shape: bf16[8,8,32], index: 2, kind: input, shape index: {}]   ;;  %s5989_s3 = inlined_call_operand.vmem [shape: bf16[8,8,32], index: 3, kind: input, shape index: {}]   ;;  %s5990_s4 = inlined_call_operand.vmem [shape: bf16[32,128], index: 4, kind: input, shape index: {}]   ;;  %s5991_s5 = inlined_call_operand.vmem [shape: bf16[32,128], index: 5, kind: input, shape index: {}]   ;;  %s5992_s6 = inlined_call_operand.vmem [shape: bf16[32,128], index: 6, kind: input, shape index: {}]   ;;  %s5993_s7 = inlined_call_operand.vmem [shape: bf16[32,128], index: 7, kind: input, shape index: {}]   ;;  %s5994_s8 = inlined_call_operand.vmem [shape: bf16[32,128], index: 8, kind: input, shape index: {}]   ;;  %s5995_s9 = inlined_call_operand.vmem [shape: f32[1,128], index: 9, kind: input, shape index: {}]   ;;  %s5996_s10 = inlined_call_operand.vmem [shape: bf16[32,32], index: 10, kind: input, shape index: {}]   ;;  %s5997_s11 = inlined_call_operand.vmem [shape: f32[1,32], index: 11, kind: input, shape index: {}]   ;;  %s5998_s12 = inlined_call_operand.vmem [shape: f32[1,32], index: 12, kind: input, shape index: {}]   ;;  %s5999_s13 = inlined_call_operand.vmem [shape: f32[8,8,32], index: 13, kind: output, shape index: {}]  }
   0x1   :  { %s4947_s27 = smov 0  }
   0x2 LB: > { %s32_s28 = sadd.s32 1, %s4859_s26  ;;  %p4196_p0 = scmp.ge.s32.totalorder %s4863_s27, 1  ;;  %s4863_s27 = sphi %s4947_s27, %s23_s27   ;;  %s4859_s26 = sphi %s4945_s26, %s6107_s26   ;;  %s4855_s25 = sphi %s4943_s25, %s6106_s25  }
   0x3   : > { %p33_p1 = scmp.ge.s32.totalorder %s32_s28, 2  ;;  %p438_p2 = scmp.lt.s32.totalorder %s4863_s27, 3 }
   0x5   : > { %s6109_s28 = smov (%p33_p1, %s32_s28), 0  ;;  %p439_p3 = pnand %p4196_p0, %p438_p2 }
   0x7   : > { %442 = sbr.rel (%p439_p3) target bundleno = 9897 (0x26a9), region = 72 }
   0xe   : > { %s4197_s29 = sshll.u32 %s4855_s25, 2  ;;  %p4201_p5 = scmp.ne.s32.totalorder %s4855_s25, 0 }
   0xf   : > { %p503_p4 = scmp.lt.s32.totalorder %s4197_s29, 7  ;;  %vm541_vm0 = vcmask (!%p4201_p5), 261120   ;;  %v4865_v0 = vmov (!%p4201_p5), 0.0  }
  0x10   : > { %540 = sbr.rel (%p4201_p5) target bundleno = 23 (0x17), region = 76  ;;  %542 = vst.msk [vmem:[#allocation2] sm:$0xff] (!%p4201_p5), %vm541_vm0, %v4865_v0  ;;  %543 = vst.msk [vmem:[#allocation3] sm:$0xff] (!%p4201_p5), %vm541_vm0, %v4865_v0 }
  0x11   : > { %s6111_s29 = smov (!%p503_p4, %s4197_s29), 7  ;;  %544 = vst.msk [vmem:[#allocation4] sm:$0xff] (!%p4201_p5), %vm541_vm0, %v4865_v0  ;;  %545 = vst.msk [vmem:[#allocation5] sm:$0xff] (!%p4201_p5), %vm541_vm0, %v4865_v0 }
  0x12   : > { %s4198_s30 = sshll.u32 %s6111_s29, 3 }
  0x13   : > { %s4964_s16 = scalar_lea.vmem %s5986_s0, %s4198_s30  ;;  %s4969_s19 = scalar_lea.vmem %s5999_s13, %s4198_s30 }
  0x17 PF: > { %v4974_v1 = vld [vmem:[%s5990_s4] sm:$0xff]   ;;  %v6000_v2 = vmov 0.0   ;;  %v4980_v3 = vld [vmem:[%s5990_s4 + $0x8] sm:$0xff]   ;;  %vm4867_vm1 = vmmov 0   ;;  %vm609_vm2 = vcmask 261120   ;;  %s4868_s17 = smov 64   ;;  %v809_v41 = vlaneseq }
  0x18   : > { %4367 = vmatprep.subr.bf16.mxu0 %v6000_v2  ;;  %4383 = vmatprep.subr.bf16.mxu1 %v6000_v2  ;;  %v592_v4 = vld [vmem:[#allocation4] sm:$0xff]  ;;  %v4994_v6 = vld [vmem:[%s5991_s5] sm:$0xff]   ;;  %v5004_v7 = vld [vmem:[%s5991_s5 + $0x8] sm:$0xff]   ;;  %s4869_s18 = smov 32   ;;  %v4870_v39 = vmov 1966171168  }
  0x19   : > { %4368 = vmatpush3.bf16.msra.mxu0 %v4974_v1  ;;  %4371 = vmatprep.mubr.msk.bf16.mxu0 %vm4867_vm1, %v6000_v2  ;;  %v4989_v5 = vpack.c.bf16 %v592_v4, %v592_v4  ;;  %v590_v8 = vld [vmem:[#allocation2] sm:$0xff]  ;;  %v591_v19 = vld [vmem:[#allocation3] sm:$0xff]  ;;  %v807_v40 = vunpack.c.l.s4 %v4870_v39  ;;  %v5068_v43 = vshrl.u32 %v809_v41, 7  ;;  %v4293_v56 = vld [vmem:[%s5989_s3 + $0x10] sm:$0xff]   ;;  %vm998_vm3 = vcmask 1041409  }
  0x1a   : > { %4369 = vmatprep.subr.bf16.mxu0 %v6000_v2  ;;  %4387 = vmatprep.mubr.msk.bf16.mxu1 %vm4867_vm1, %v6000_v2  ;;  %v654_v9 = vpack.c.bf16 %v590_v8, %v590_v8  ;;  %v5017_v10 = vld [vmem:[%s5987_s1] sm:$0xff]  ;;  %v5036_v31 = vld [vmem:[%s5996_s10 + $0x8] sm:$0xff]   ;;  %vm1000_vm4 = vcmask 1042434   ;;  %vm1002_vm5 = vcmask 1043459   ;;  %vm1004_vm6 = vcmask 1044484  }
  0x1b   : > { %v594_v11 = vld [vmem:[%s4964_s16] sm:$0xff]  ;;  %v5056_v38 = vld [vmem:[%s5993_s7 + $0x8] sm:$0xff]   ;;  %v808_v42 = vunpack.c.0.s8 %v807_v40  ;;  %v5084_v54 = vsub.s32 0, %v5068_v43  ;;  %vm1006_vm7 = vcmask 1045509   ;;  %vm1008_vm8 = vcmask 1046534  }
  0x1c   : > { %v595_v12 = vadd.f32 %v594_v11, %v5017_v10  ;;  %v5030_v30 = vld [vmem:[%s5996_s10] sm:$0xff]   ;;  %v4292_v55 = vld [vmem:[%s5989_s3 + $0x8] sm:$0xff]   ;;  %v5104_v11 = vunpack.c.l.bf16 %v4293_v56  ;;  %vm1010_vm9 = vcmask 1047559   ;;  %vm1013_vm10 = vcmask 64512  }
  0x1d   : > { %4370 = vmatpush3.bf16.msra.mxu0 %v4980_v3  ;;  %4384 = vmatpush3.bf16.msra.mxu1 %v5030_v30  ;;  %v5046_v36 = vld [vmem:[%s5993_s7] sm:$0xff]   ;;  %v5076_v45 = vsub.s32 %v808_v42, %v5068_v43  ;;  %v5100_v8 = vunpack.c.l.bf16 %v4292_v55 }
  0x1e   : > { %4375 = vmatprep.subr.bf16.mxu0 %v6000_v2  ;;  %4385 = vmatprep.subr.bf16.mxu1 %v6000_v2  ;;  %v5073_v44 = vld [vmem:[%s5997_s11] ss:$0 sm:$0xff]  ;;  %6049 = vst [vmem:[#allocation7_spill] sm:$0xff] %v5104_v11 }
  0x1f   : > { %v4274_v50 = vld [vmem:[%s5989_s3] sm:$0xff]  }
  0x20   : > { %4372 = vmatmul.mubr.msk.bf16.vlgmr.msra.gmra.mrb[0].mxu0 %vm609_vm2, %v4989_v5  ;;  %v5094_v60 = vunpack.c.l.bf16 %v4274_v50  ;;  %v5096_v61 = vunpack.c.h.bf16 %v4274_v50  ;;  %v5137_v50 = vld [vmem:[%s5998_s12] ss:$0 sm:$0xff] }
  0x21   : > { %4376 = vmatpush3.bf16.msra.mxu0 %v4994_v6  ;;  %4379 = vmatprep.mubr.msk.bf16.mxu0 %vm4867_vm1, %v6000_v2 }
  0x22   : > { %4377 = vmatprep.subr.bf16.mxu0 %v6000_v2  ;;  %4386 = vmatpush3.bf16.msra.mxu1 %v5036_v31 }
  0x23   : > { %4391 = vmatprep.subr.bf16.mxu1 %v6000_v2 }
  0x25   : > { %4378 = vmatpush3.bf16.msra.mxu0 %v5004_v7 }
  0x26   : > { %4399 = vmatprep.subr.bf16.mxu0 %v6000_v2 }
  0x2c   : > { %4380 = vmatmul.mubr.msk.bf16.vlgmr.msra.gmra.mrb[0].mxu0 %vm609_vm2, %v654_v9  ;;  %v5102_v9 = vunpack.c.h.bf16 %v4292_v55 }
  0x2d   : > { %4403 = vmatprep.mubr.msk.bf16.mxu0 %vm4867_vm1, %v6000_v2 }
  0x2e   : > { %6048 = vst [vmem:[#allocation6_spill] sm:$0xff] %v5102_v9 }
  0xff   : > { %v704_v13 = vpop.f32.mrb[0].mxu0 }
 0x100   : > { %v4559_v14 = vadd.f32 %v704_v13, %v595_v12  ;;  %v4381_v15 = vpop.f32.mrb[1].mxu0 }
 0x101   : > { %v707_v16 = vpop.f32.mrb[2].mxu0 }
 0x102   : > { %4625 = vtanh.f32 %v4559_v14  ;;  %v4382_v17 = vpop.f32.mrb[3].mxu0  ;;  %v4208_v20 = vmul.f32 -1.442695, %v4559_v14  ;;  %v5109_v14 = vunpack.c.h.bf16 %v4293_v56 }
 0x104   : > { %4627 = vpow2.f32 %v4208_v20  ;;  %6050 = vst [vmem:[#allocation8_spill] sm:$0xff] %v5109_v14 }
 0x10c   : > { %v4626_v18 = vpop.eup %4625 }
 0x10d   : > { %724 = vrot.lane.b32.xlu0 %v4626_v18, %s4868_s17 }
 0x10e   : > { %v4628_v21 = vpop.eup %4627 }
 0x10f   : > { %v714_v22 = vadd.f32 1.0, %v4628_v21 }
 0x111   : > { %719 = vrot.lane.b32.xlu0 %v591_v19, %s4869_s18  ;;  %4629 = vrcp.f32 %v714_v22 }
 0x11b   : > { %v4630_v23 = vpop.eup %4629 }
 0x17f   : > { %v725_v24 = vpop.permute.xlu0 %724 }
 0x180   : > { %v727_v25 = vmul.f32 %v4630_v23, %v725_v24  ;;  %v4294_v24 = vld [vmem:[%s5989_s3 + $0x18] sm:$0xff]  }
 0x181   : > { %v5128_v42 = vunpack.c.l.bf16 %v4294_v24 }
 0x182   : > { %729 = vrot.lane.b32.xlu1 %v727_v25, %s4869_s18 }
 0x183   : > { %v720_v26 = vpop.permute.xlu0 %719  ;;  %6052 = vst [vmem:[#allocation10_spill] sm:$0xff] %v5128_v42 }
 0x184   : > { %v722_v27 = vmul.f32 %v4630_v23, %v720_v26 }
 0x1f4   : > { %v730_v28 = vpop.permute.xlu1 %729 }
 0x1f5   : > { %v5024_v29 = vadd.f32 %v730_v28, %v722_v27 }
 0x1f7   : > { %4631 = vtanh.f32 %v5024_v29 }
 0x201   : > { %v4632_v32 = vpop.eup %4631 }
 0x202   : > { %735 = vrot.lane.b32.xlu1 %v4632_v32, %s4868_s17 }
 0x274   : > { %v736_v33 = vpop.permute.xlu1 %735 }
 0x275   : > { %v738_v34 = vmul.f32 %v4630_v23, %v736_v33 }
 0x277   : > { %v739_v35 = vpack.c.bf16 %v738_v34, %v738_v34  ;;  %v5123_v34 = vunpack.c.h.bf16 %v4294_v24 }
 0x279   : > { %747 = vrot.lane.b32.xlu0 %v739_v35, %s4869_s18  ;;  %6051 = vst [vmem:[#allocation9_spill] sm:$0xff] %v5123_v34 }
 0x2eb   : > { %v5048_v37 = vpop.permute.xlu0 %747 }
 0x2ec   : > { %4388 = vmatmul.mubr.msk.bf16.vlgmr.msra.gmra.mrb[0].mxu1 %vm609_vm2, %v5048_v37 }
 0x2ed   : > { %4392 = vmatpush3.bf16.msra.mxu1 %v5046_v36  ;;  %4395 = vmatprep.mubr.msk.bf16.mxu1 %vm4867_vm1, %v6000_v2 }
 0x2ee   : > { %4393 = vmatprep.subr.bf16.mxu1 %v6000_v2 }
 0x2f1   : > { %4394 = vmatpush3.bf16.msra.mxu1 %v5056_v38 }
 0x2f2   : > { %4407 = vmatprep.subr.bf16.mxu1 %v6000_v2 }
 0x2f4   : > { %4396 = vmatmul.mubr.msk.bf16.vlgmr.msra.gmra.mrb[4].mxu1 %vm609_vm2, %v5048_v37 }
 0x2f5   : > { %4411 = vmatprep.mubr.msk.bf16.mxu1 %vm4867_vm1, %v6000_v2 }
 0x3bf   : > { %v798_v46 = vpop.f32.mrb[0].mxu1 }
 0x3c0   : > { %v799_v47 = vadd.f32 %v5073_v44, %v798_v46  ;;  %v4389_v48 = vpop.f32.mrb[1].mxu1 }
 0x3c1   : > { %v801_v49 = vpop.f32.mrb[2].mxu1 }
 0x3c2   : > { %v805_v51 = vcombine.high %v799_v47, %v799_v47  ;;  %v812_v52 = vrot.slane %v799_v47, %v5076_v45  ;;  %v4390_v53 = vpop.f32.mrb[3].mxu1 }
 0x3c4   : > { %v819_v57 = vrot.slane %v805_v51, %v5076_v45  ;;  %v820_v58 = vcombine.high %v812_v52, %v812_v52  ;;  %v828_v59 = vrot.slane %v812_v52, %v5076_v45 }
 0x3c6   : > { %v821_v62 = vcombine.high %v819_v57, %v819_v57  ;;  %v835_v63 = vrot.slane %v819_v57, %v5076_v45  ;;  %v842_v0 = vrot.slane %v820_v58, %v5076_v45  ;;  %v850_v4 = vcombine.high %v828_v59, %v828_v59 }
 0x3c7   : > { %v865_v12 = vrot.slane %v828_v59, %v5084_v54  ;;  %v5107_v13 = vpop.f32.mrb[4].mxu1 }
 0x3c8   : > { %v849_v15 = vrot.slane %v821_v62, %v5076_v45  ;;  %v852_v16 = vcombine.high %v842_v0, %v842_v0  ;;  %v869_v17 = vrot.slane %v842_v0, %v5084_v54  ;;  %v4397_v18 = vpop.f32.mrb[5].mxu1  ;;  %v851_v19 = vcombine.high %v835_v63, %v835_v63 }
 0x3c9   : > { %v873_v20 = vrot.slane %v850_v4, %v5084_v54  ;;  %v881_v21 = vrot.slane %v835_v63, %v5084_v54  ;;  %v902_v22 = vadd.f32 %v5094_v60, %v865_v12  ;;  %v1376_v23 = vpop.f32.mrb[6].mxu1 }
 0x3ca   : > { %v853_v25 = vcombine.high %v849_v15, %v849_v15  ;;  %v877_v26 = vrot.slane %v852_v16, %v5084_v54  ;;  %v885_v27 = vrot.slane %v849_v15, %v5084_v54  ;;  %v4398_v28 = vpop.f32.mrb[7].mxu1  ;;  %v903_v32 = vadd.f32 %v5096_v61, %v869_v17 }
 0x3cb   : > { %v904_v33 = vadd.f32 %v5100_v8, %v873_v20  ;;  %4633 = vtanh.f32 %v902_v22  ;;  %v906_v40 = vadd.f32 %v5104_v11, %v881_v21  ;;  %v889_v46 = vrot.slane %v851_v19, %v5084_v54 }
 0x3cc   : > { %v893_v35 = vrot.slane %v853_v25, %v5084_v54  ;;  %v905_v39 = vadd.f32 %v5102_v9, %v877_v26  ;;  %v907_v47 = vadd.f32 %v5109_v14, %v885_v27  ;;  %4635 = vtanh.f32 %v903_v32 }
 0x3cd   : > { %4637 = vtanh.f32 %v904_v33  ;;  %v908_v49 = vadd.f32 %v5128_v42, %v889_v46  ;;  %v965_v26 = vand.u32 127, %v809_v41 }
 0x3ce   : > { %4639 = vtanh.f32 %v905_v39  ;;  %v909_v48 = vadd.f32 %v5123_v34, %v893_v35 }
 0x3cf   : > { %4641 = vtanh.f32 %v906_v40  ;;  %v5157_v28 = vsub.s32 %v965_v26, %v5068_v43 }
 0x3d0   : > { %4643 = vtanh.f32 %v907_v47 }
 0x3d1   : > { %4645 = vtanh.f32 %v909_v48 }
 0x3d2   : > { %4647 = vtanh.f32 %v908_v49 }
 0x3d5   : > { %v4634_v51 = vpop.eup %4633 }
 0x3d6   : > { %v924_v52 = vmul.f32 %v4634_v51, %v5137_v50  ;;  %v4636_v53 = vpop.eup %4635 }
 0x3d7   : > { %v4638_v55 = vpop.eup %4637  ;;  %v925_v57 = vmul.f32 %v4636_v53, %v5137_v50 }
 0x3d8   : > { %v932_v56 = vsel %vm609_vm2, %v924_v52, 0.0  ;;  %v4640_v58 = vpop.eup %4639  ;;  %v926_v0 = vmul.f32 %v4638_v55, %v5137_v50 }
 0x3d9   : > { %933 = vadd.xlane.f32.xlu1 %v932_v56  ;;  %v4642_v59 = vpop.eup %4641  ;;  %v935_v62 = vsel %vm609_vm2, %v925_v57, 0.0  ;;  %v927_v63 = vmul.f32 %v4640_v58, %v5137_v50 }
 0x3da   : > { %v4644_v4 = vpop.eup %4643  ;;  %936 = vadd.xlane.f32.xlu0 %v935_v62  ;;  %v938_v17 = vsel %vm609_vm2, %v926_v0, 0.0  ;;  %v928_v18 = vmul.f32 %v4642_v59, %v5137_v50 }
 0x3db   : > { %v941_v12 = vsel %vm609_vm2, %v927_v63, 0.0  ;;  %v929_v15 = vmul.f32 %v4644_v4, %v5137_v50  ;;  %v4646_v16 = vpop.eup %4645 }
 0x3dc   : > { %v4648_v19 = vpop.eup %4647  ;;  %v931_v21 = vmul.f32 %v4646_v16, %v5137_v50  ;;  %v944_v22 = vsel %vm609_vm2, %v928_v18, 0.0  ;;  %v5176_v16 = vsub.s32 1, %v5068_v43  ;;  %v5182_v18 = vsub.s32 3, %v5068_v43 }
 0x3dd   : > { %942 = vadd.xlane.f32.xlu1 %v941_v12  ;;  %v947_v20 = vsel %vm609_vm2, %v929_v15, 0.0  ;;  %v930_v23 = vmul.f32 %v4648_v19, %v5137_v50  ;;  %v4871_v15 = vmov 0  }
 0x3de   : > { %939 = vadd.xlane.f32.xlu0 %v938_v17  ;;  %v953_v24 = vsel %vm609_vm2, %v931_v21, 0.0  ;;  %4611 = vset.pattern.permute.xlu1 %v4871_v15  ;;  %6053 = vst [vmem:[#allocation11_spill] sm:$0xff] %v5176_v16  ;;  %v5179_v17 = vsub.s32 2, %v5068_v43  ;;  %6055 = vst [vmem:[#allocation13_spill] sm:$0xff] %v5182_v18 }
 0x3df   : > { %v950_v25 = vsel %vm609_vm2, %v930_v23, 0.0  ;;  %4612 = vset.pattern.permute.xlu0 %v4871_v15 }
 0x3e0   : > { %6054 = vst [vmem:[#allocation12_spill] sm:$0xff] %v5179_v17 }
 0x3e1   : > { %948 = vadd.xlane.f32.xlu1 %v947_v20 }
 0x3e2   : > { %945 = vadd.xlane.f32.xlu0 %v944_v22 }
 0x3e5   : > { %954 = vadd.xlane.f32.xlu1 %v953_v24 }
 0x3e6   : > { %951 = vadd.xlane.f32.xlu0 %v950_v25  ;;  %v5188_v25 = vsub.s32 4, %v5068_v43 }
 0x3e8   : > { %6056 = vst [vmem:[#allocation14_spill] sm:$0xff] %v5188_v25 }
 0x466   : > { %v934_v27 = vpop.xlane.xlu1 %933 }
 0x467   : > { %v937_v32 = vpop.xlane.xlu0 %936  ;;  %v969_v39 = vrot.slane %v934_v27, %v5157_v28 }
 0x468   : > { %v973_v33 = vrot.slane %v937_v32, %v5157_v28 }
 0x46a   : > { %v943_v35 = vpop.xlane.xlu1 %942  ;;  %v999_v47 = vsel %vm998_vm3, %v973_v33, %v969_v39 }
 0x46b   : > { %v940_v40 = vpop.xlane.xlu0 %939  ;;  %v981_v49 = vrot.slane %v943_v35, %v5157_v28 }
 0x46c   : > { %v977_v46 = vrot.slane %v940_v40, %v5157_v28 }
 0x46e   : > { %v949_v48 = vpop.xlane.xlu1 %948  ;;  %v1001_v41 = vsel %vm1000_vm4, %v977_v46, %v999_v47  ;;  %v5192_v47 = vsub.s32 5, %v5068_v43 }
 0x46f   : > { %v946_v51 = vpop.xlane.xlu0 %945  ;;  %v1003_v53 = vsel %vm1002_vm5, %v981_v49, %v1001_v41  ;;  %v989_v57 = vrot.slane %v949_v48, %v5157_v28 }
 0x470   : > { %v985_v52 = vrot.slane %v946_v51, %v5157_v28  ;;  %6057 = vst [vmem:[#allocation15_spill] sm:$0xff] %v5192_v47 }
 0x472   : > { %v1005_v55 = vsel %vm1004_vm6, %v985_v52, %v1003_v53  ;;  %v955_v56 = vpop.xlane.xlu1 %954 }
 0x473   : > { %v952_v58 = vpop.xlane.xlu0 %951  ;;  %v997_v62 = vrot.slane %v955_v56, %v5157_v28  ;;  %v1007_v63 = vsel %vm1006_vm7, %v989_v57, %v1005_v55 }
 0x474   : > { %v993_v59 = vrot.slane %v952_v58, %v5157_v28 }
 0x476   : > { %v1009_v0 = vsel %vm1008_vm8, %v993_v59, %v1007_v63 }
 0x477   : > { %v1011_v4 = vsel %vm1010_vm9, %v997_v62, %v1009_v0 }
 0x478   : > { %v1014_v12 = vsel %vm1013_vm10, %v1011_v4, -inf }
 0x479   : > { %1015 = vmax.xlane.f32.xlu0 %v1014_v12 }
 0x506   : > { %v1016_v19 = vpop.xlane.xlu0 %1015 }
 0x507   : > { %v1021_v20 = vrot.slane %v1016_v19, %v5084_v54  ;;  %v1025_v21 = vrot.slane %v1016_v19, %v5176_v16  ;;  %v1029_v22 = vrot.slane %v1016_v19, %v5179_v17  ;;  %v1033_v26 = vrot.slane %v1016_v19, %v5182_v18 }
 0x508   : > { %v1037_v41 = vrot.slane %v1016_v19, %v5188_v25 }
 0x509   : > { %v1059_v23 = vsub.f32 %v937_v32, %v1025_v21  ;;  %v1058_v24 = vsub.f32 %v934_v27, %v1021_v20  ;;  %v1060_v33 = vsub.f32 %v940_v40, %v1029_v22  ;;  %v1061_v52 = vsub.f32 %v943_v35, %v1033_v26 }
 0x50a   : > { %v5196_v32 = vsub.s32 6, %v5068_v43  ;;  %v1041_v27 = vrot.slane %v1016_v19, %v5192_v47  ;;  %v1062_v55 = vsub.f32 %v946_v51, %v1037_v41  ;;  %v5200_v40 = vsub.s32 7, %v5068_v43 }
 0x50b   : > { %v1068_v39 = vmul.f32 1.442695, %v1059_v23  ;;  %v1066_v46 = vmul.f32 1.442695, %v1058_v24  ;;  %v1070_v49 = vmul.f32 1.442695, %v1060_v33 }
 0x50c   : > { %6058 = vst [vmem:[#allocation16_spill] sm:$0xff] %v5196_v32  ;;  %v1072_v53 = vmul.f32 1.442695, %v1061_v52  ;;  %6059 = vst [vmem:[#allocation17_spill] sm:$0xff] %v5200_v40  ;;  %v1045_v57 = vrot.slane %v1016_v19, %v5196_v32  ;;  %v1074_v59 = vmul.f32 1.442695, %v1062_v55  ;;  %v1063_v62 = vsub.f32 %v949_v48, %v1041_v27 }
 0x50d   : > { %4649 = vpow2.f32 %v1068_v39  ;;  %v1049_v35 = vrot.slane %v1016_v19, %v5200_v40 }
 0x50e   : > { %4651 = vpow2.f32 %v1066_v46  ;;  %v1076_v4 = vmul.f32 1.442695, %v1063_v62  ;;  %v1064_v12 = vsub.f32 %v952_v58, %v1045_v57 }
 0x50f   : > { %4653 = vpow2.f32 %v1070_v49  ;;  %v1065_v43 = vsub.f32 %v955_v56, %v1049_v35 }
 0x510   : > { %4655 = vpow2.f32 %v1072_v53  ;;  %v1078_v51 = vmul.f32 1.442695, %v1064_v12 }
 0x511   : > { %4657 = vpow2.f32 %v1074_v59  ;;  %v1080_v21 = vmul.f32 1.442695, %v1065_v43 }
 0x512   : > { %4659 = vpow2.f32 %v1076_v4 }
 0x513   : > { %4661 = vpow2.f32 %v1078_v51 }
 0x514   : > { %4663 = vpow2.f32 %v1080_v21 }
 0x517   : > { %v4650_v63 = vpop.eup %4649 }
 0x518   : > { %v4652_v0 = vpop.eup %4651  ;;  %1094 = vperm.xlu0 %4612, %v4650_v63  }
 0x519   : > { %1091 = vperm.xlu1 %4611, %v4652_v0   ;;  %v4654_v15 = vpop.eup %4653 }
 0x51a   : > { %v4656_v20 = vpop.eup %4655 }
 0x51b   : > { %v4658_v22 = vpop.eup %4657 }
 0x51c   : > { %v4660_v48 = vpop.eup %4659 }
 0x51d   : > { %1097 = vperm.xlu1 %4611, %v4654_v15   ;;  %v4662_v23 = vpop.eup %4661 }
 0x51e   : > { %v4664_v19 = vpop.eup %4663 }
 0x521   : > { %1100 = vperm.xlu1 %4611, %v4656_v20  }
 0x525   : > { %1103 = vperm.xlu1 %4611, %v4658_v22  }
 0x529   : > { %1106 = vperm.xlu1 %4611, %v4660_v48  }
 0x52d   : > { %1109 = vperm.xlu1 %4611, %v4662_v23  }
 0x531   : > { %1112 = vperm.xlu1 %4611, %v4664_v19  }
 0x597   : > { %v1095_v39 = vpop.permute.xlu0 %1094 }
 0x598   : > { %v1092_v24 = vpop.permute.xlu1 %1091  ;;  %v1121_v56 = vrot.slane %v1095_v39, %v5157_v28 }
 0x599   : > { %v1117_v41 = vrot.slane %v1092_v24, %v5157_v28 }
 0x59b   : > { %v1146_v55 = vsel %vm998_vm3, %v1121_v56, %v1117_v41 }
 0x59c   : > { %v1098_v58 = vpop.permute.xlu1 %1097 }
 0x59d   : > { %v1125_v49 = vrot.slane %v1098_v58, %v5157_v28 }
 0x59f   : > { %v1147_v59 = vsel %vm1000_vm4, %v1125_v49, %v1146_v55 }
 0x5a0   : > { %v1101_v26 = vpop.permute.xlu1 %1100 }
 0x5a1   : > { %v1129_v52 = vrot.slane %v1101_v26, %v5157_v28 }
 0x5a3   : > { %v1148_v35 = vsel %vm1002_vm5, %v1129_v52, %v1147_v59 }
 0x5a4   : > { %v1104_v33 = vpop.permute.xlu1 %1103 }
 0x5a5   : > { %v1133_v27 = vrot.slane %v1104_v33, %v5157_v28 }
 0x5a7   : > { %v1149_v4 = vsel %vm1004_vm6, %v1133_v27, %v1148_v35 }
 0x5a8   : > { %v1107_v46 = vpop.permute.xlu1 %1106 }
 0x5a9   : > { %v1137_v57 = vrot.slane %v1107_v46, %v5157_v28 }
 0x5ab   : > { %v1150_v43 = vsel %vm1006_vm7, %v1137_v57, %v1149_v4  ;;  %v4258_v4 = vld [vmem:[%s5988_s2] sm:$0xff]  }
 0x5ac   : > { %v1110_v53 = vpop.permute.xlu1 %1109 }
 0x5ad   : > { %v1141_v62 = vrot.slane %v1110_v53, %v5157_v28 }
 0x5af   : > { %v1151_v21 = vsel %vm1008_vm8, %v1141_v62, %v1150_v43  ;;  %v5270_v43 = vunpack.c.h.bf16 %v4258_v4 }
 0x5b0   : > { %v1113_v12 = vpop.permute.xlu1 %1112 }
 0x5b1   : > { %v1145_v51 = vrot.slane %v1113_v12, %v5157_v28  ;;  %6061 = vst [vmem:[#allocation19_spill] sm:$0xff] %v5270_v43 }
 0x5b3   : > { %v1152_v24 = vsel %vm1010_vm9, %v1145_v51, %v1151_v21  ;;  %v5268_v51 = vunpack.c.l.bf16 %v4258_v4 }
 0x5b4   : > { %v1154_v58 = vsel %vm1013_vm10, %v1152_v24, 0.0 }
 0x5b5   : > { %1155 = vadd.xlane.f32.xlu1 %v1154_v58  ;;  %6060 = vst [vmem:[#allocation18_spill] sm:$0xff] %v5268_v51 }
 0x642   : > { %v1156_v26 = vpop.xlane.xlu1 %1155 }
 0x643   : > { %4665 = vrcp.f32 %v1156_v26 }
 0x64d   : > { %v4666_v33 = vpop.eup %4665 }
 0x64e   : > { %v1162_v39 = vrot.slane %v4666_v33, %v5084_v54  ;;  %v1166_v56 = vrot.slane %v4666_v33, %v5176_v16  ;;  %v1170_v49 = vrot.slane %v4666_v33, %v5179_v17  ;;  %v1174_v27 = vrot.slane %v4666_v33, %v5182_v18 }
 0x64f   : > { %v1178_v55 = vrot.slane %v4666_v33, %v5188_v25  ;;  %v1182_v59 = vrot.slane %v4666_v33, %v5192_v47  ;;  %v1186_v62 = vrot.slane %v4666_v33, %v5196_v32  ;;  %v1190_v35 = vrot.slane %v4666_v33, %v5200_v40 }
 0x650   : > { %v1199_v46 = vmul.f32 %v4652_v0, %v1162_v39  ;;  %v1200_v41 = vmul.f32 %v4650_v63, %v1166_v56  ;;  %v1201_v52 = vmul.f32 %v4654_v15, %v1170_v49  ;;  %v1202_v53 = vmul.f32 %v4656_v20, %v1174_v27  ;;  %v5231_v20 = vld [vmem:[%s5992_s6] sm:$0xff]  }
 0x651   : > { %v1203_v57 = vmul.f32 %v4658_v22, %v1178_v55  ;;  %v1204_v0 = vmul.f32 %v4660_v48, %v1182_v59  ;;  %v1205_v63 = vmul.f32 %v4662_v23, %v1186_v62  ;;  %v1206_v15 = vmul.f32 %v4664_v19, %v1190_v35  ;;  %v5236_v22 = vld [vmem:[%s5994_s8] sm:$0xff]   ;;  %4400 = vmatpush3.bf16.msra.mxu0 %v5231_v20  ;;  %v5243_v48 = vld [vmem:[%s5992_s6 + $0x8] sm:$0xff]   ;;  %v593_v19 = vld [vmem:[#allocation5] sm:$0xff] }
 0x652   : > { %1217 = vperm.xlu0 %4612, %v1199_v46   ;;  %4408 = vmatpush3.bf16.msra.mxu1 %v5236_v22  ;;  %v5248_v23 = vld [vmem:[%s5994_s8 + $0x8] sm:$0xff]  }
 0x653   : > { %4401 = vmatprep.subr.bf16.mxu0 %v6000_v2  ;;  %4409 = vmatprep.subr.bf16.mxu1 %v6000_v2 }
 0x655   : > { %4402 = vmatpush3.bf16.msra.mxu0 %v5243_v48 }
 0x656   : > { %1222 = vperm.xlu0 %4612, %v1200_v41   ;;  %4410 = vmatpush3.bf16.msra.mxu1 %v5248_v23 }
 0x657   : > { %4415 = vmatprep.subr.bf16.mxu0 %v6000_v2  ;;  %4431 = vmatprep.subr.bf16.mxu1 %v6000_v2 }
 0x659   : > { %4412 = vmatmul.mubr.msk.bf16.vlgmr.msra.gmra.mrb[8].mxu1 %vm609_vm2, %v4989_v5  ;;  %v4289_v5 = vld [vmem:[%s5988_s2 + $0x8] sm:$0xff]  }
 0x65a   : > { %1227 = vperm.xlu0 %4612, %v1201_v52   ;;  %4432 = vmatpush3.bf16.msra.mxu1 %v5030_v30  ;;  %v5277_v26 = vunpack.c.l.bf16 %v4289_v5  ;;  %v5282_v41 = vunpack.c.h.bf16 %v4289_v5  ;;  %v4290_v52 = vld [vmem:[%s5988_s2 + $0x10] sm:$0xff]  }
 0x65b   : > { %4435 = vmatprep.mubr.msk.bf16.mxu1 %vm4867_vm1, %v6000_v2  ;;  %4433 = vmatprep.subr.bf16.mxu1 %v6000_v2  ;;  %v5293_v5 = vunpack.c.h.bf16 %v4290_v52 }
 0x65c   : > { %6062 = vst [vmem:[#allocation20_spill] sm:$0xff] %v5277_v26  ;;  %6063 = vst [vmem:[#allocation21_spill] sm:$0xff] %v5282_v41 }
 0x65d   : > { %6065 = vst [vmem:[#allocation23_spill] sm:$0xff] %v5293_v5 }
 0x65e   : > { %1232 = vperm.xlu0 %4612, %v1202_v53   ;;  %4434 = vmatpush3.bf16.msra.mxu1 %v5036_v31 }
 0x65f   : > { %4439 = vmatprep.subr.bf16.mxu1 %v6000_v2 }
 0x662   : > { %1237 = vperm.xlu0 %4612, %v1203_v57  }
 0x666   : > { %1242 = vperm.xlu0 %4612, %v1204_v0   ;;  %v5289_v0 = vunpack.c.l.bf16 %v4290_v52 }
 0x668   : > { %6064 = vst [vmem:[#allocation22_spill] sm:$0xff] %v5289_v0 }
 0x66a   : > { %1247 = vperm.xlu0 %4612, %v1205_v63  }
 0x66e   : > { %1252 = vperm.xlu0 %4612, %v1206_v15  }
 0x672   : > { %1526 = vrot.lane.b32.xlu0 %v593_v19, %s4869_s18 }
 0x6d1   : > { %v1218_v12 = vpop.permute.xlu0 %1217 }
 0x6d2   : > { %v1255_v24 = vmul.f32 %v5268_v51, %v1218_v12 }
 0x6d4   : > { %v1263_v46 = vsel %vm609_vm2, %v1255_v24, 0.0 }
 0x6d5   : > { %v1223_v21 = vpop.permute.xlu0 %1222  ;;  %v1264_v53 = vrot.slane %v1263_v46, 4 }
 0x6d6   : > { %v1256_v58 = vmul.f32 %v5270_v43, %v1223_v21 }
 0x6d7   : > { %v1265_v15 = vadd.f32 %v1264_v53, %v1263_v46 }
 0x6d8   : > { %v1270_v33 = vsel %vm609_vm2, %v1256_v58, 0.0  ;;  %v4291_v58 = vld [vmem:[%s5988_s2 + $0x18] sm:$0xff]  }
 0x6d9   : > { %v1228_v39 = vpop.permute.xlu0 %1227  ;;  %v1271_v49 = vrot.slane %v1270_v33, 4  ;;  %v5300_v53 = vunpack.c.l.bf16 %v4291_v58 }
 0x6da   : > { %v1257_v56 = vmul.f32 %v5277_v26, %v1228_v39  ;;  %v5304_v26 = vunpack.c.h.bf16 %v4291_v58 }
 0x6db   : > { %v1272_v62 = vadd.f32 %v1271_v49, %v1270_v33  ;;  %v1266_v33 = vrot.slane %v1265_v15, 2  ;;  %6066 = vst [vmem:[#allocation24_spill] sm:$0xff] %v5300_v53 }
 0x6dc   : > { %v1277_v27 = vsel %vm609_vm2, %v1257_v56, 0.0  ;;  %6067 = vst [vmem:[#allocation25_spill] sm:$0xff] %v5304_v26 }
 0x6dd   : > { %v1278_v55 = vrot.slane %v1277_v27, 4  ;;  %v1233_v57 = vpop.permute.xlu0 %1232  ;;  %v1273_v21 = vrot.slane %v1272_v62, 2 }
 0x6de   : > { %v1258_v59 = vmul.f32 %v5282_v41, %v1233_v57 }
 0x6df   : > { %v1279_v63 = vadd.f32 %v1278_v55, %v1277_v27  ;;  %v1274_v57 = vadd.f32 %v1273_v21, %v1272_v62 }
 0x6e0   : > { %v1284_v35 = vsel %vm609_vm2, %v1258_v59, 0.0 }
 0x6e1   : > { %v1285_v19 = vrot.slane %v1284_v35, 4  ;;  %v1238_v4 = vpop.permute.xlu0 %1237  ;;  %v1280_v39 = vrot.slane %v1279_v63, 2  ;;  %v1275_v43 = vrot.slane %v1274_v57, 1 }
 0x6e2   : > { %v1259_v12 = vmul.f32 %v5289_v0, %v1238_v4 }
 0x6e3   : > { %v1286_v24 = vadd.f32 %v1285_v19, %v1284_v35  ;;  %v1281_v59 = vadd.f32 %v1280_v39, %v1279_v63  ;;  %v1267_v19 = vadd.f32 %v1266_v33, %v1265_v15  ;;  %v1276_v33 = vadd.f32 %v1275_v43, %v1274_v57 }
 0x6e4   : > { %v1291_v56 = vsel %vm609_vm2, %v1259_v12, 0.0 }
 0x6e5   : > { %v1287_v49 = vrot.slane %v1286_v24, 2  ;;  %v1292_v27 = vrot.slane %v1291_v56, 4  ;;  %v1243_v55 = vpop.permute.xlu0 %1242  ;;  %v1282_v40 = vrot.slane %v1281_v59, 1  ;;  %v1268_v62 = vrot.slane %v1267_v19, 1 }
 0x6e6   : > { %v1260_v46 = vmul.f32 %v5293_v5, %v1243_v55 }
 0x6e7   : > { %v1293_v52 = vadd.f32 %v1292_v27, %v1291_v56  ;;  %v1288_v4 = vadd.f32 %v1287_v49, %v1286_v24  ;;  %v1283_v27 = vadd.f32 %v1282_v40, %v1281_v59 }
 0x6e8   : > { %v1298_v35 = vsel %vm609_vm2, %v1260_v46, 0.0  ;;  %v1269_v46 = vadd.f32 %v1268_v62, %v1267_v19 }
 0x6e9   : > { %v1294_v2 = vrot.slane %v1293_v52, 2  ;;  %v1248_v0 = vpop.permute.xlu0 %1247  ;;  %v1299_v41 = vrot.slane %v1298_v35, 4  ;;  %v1289_v21 = vrot.slane %v1288_v4, 1  ;;  %v1321_v18 = vpack.c.bf16 %v1283_v27, %v1283_v27 }
 0x6ea   : > { %v1261_v12 = vmul.f32 %v5300_v53, %v1248_v0  ;;  %v1320_v53 = vpack.c.bf16 %v1276_v33, %v1276_v33  ;;  %v1319_v17 = vpack.c.bf16 %v1269_v46, %v1269_v46 }
 0x6eb   : > { %v1295_v51 = vadd.f32 %v1294_v2, %v1293_v52  ;;  %v1300_v55 = vadd.f32 %v1299_v41, %v1298_v35  ;;  %v1290_v2 = vadd.f32 %v1289_v21, %v1288_v4  ;;  %v1389_v19 = vunpack.c.l.b16 %v1321_v18 }
 0x6ec   : > { %v1305_v5 = vsel %vm609_vm2, %v1261_v12, 0.0  ;;  %v1388_v40 = vunpack.c.l.b16 %v1320_v53  ;;  %v1387_v4 = vunpack.c.l.b16 %v1319_v17  ;;  %v6068_v53 = vmov 0.0  }
 0x6ed   : > { %v1306_v63 = vrot.slane %v1305_v5, 4  ;;  %v1253_v39 = vpop.permute.xlu0 %1252  ;;  %v1296_v56 = vrot.slane %v1295_v51, 1  ;;  %v1301_v15 = vrot.slane %v1300_v55, 2  ;;  %v1322_v16 = vpack.c.bf16 %v1290_v2, %v1290_v2 }
 0x6ee   : > { %v1262_v24 = vmul.f32 %v5304_v26, %v1253_v39 }
 0x6ef   : > { %v1307_v49 = vadd.f32 %v1306_v63, %v1305_v5  ;;  %v1302_v0 = vadd.f32 %v1301_v15, %v1300_v55  ;;  %v1297_v35 = vadd.f32 %v1296_v56, %v1295_v51  ;;  %v1390_v62 = vunpack.c.l.b16 %v1322_v16 }
 0x6f0   : > { %v1312_v58 = vsel %vm609_vm2, %v1262_v24, 0.0  ;;  %v1395_v56 = vsel %vm998_vm3, %v1388_v40, %v1387_v4 }
 0x6f1   : > { %v1308_v52 = vrot.slane %v1307_v49, 2  ;;  %v1313_v41 = vrot.slane %v1312_v58, 4  ;;  %v1303_v12 = vrot.slane %v1302_v0, 1  ;;  %v1323_v5 = vpack.c.bf16 %v1297_v35, %v1297_v35 }
 0x6f2   : > { %v1396_v33 = vsel %vm1000_vm4, %v1389_v19, %v1395_v56 }
 0x6f3   : > { %v1309_v47 = vadd.f32 %v1308_v52, %v1307_v49  ;;  %v1314_v32 = vadd.f32 %v1313_v41, %v1312_v58  ;;  %v1304_v25 = vadd.f32 %v1303_v12, %v1302_v0  ;;  %v1391_v63 = vunpack.c.l.b16 %v1323_v5 }
 0x6f4   : > { %v1397_v27 = vsel %vm1002_vm5, %v1390_v62, %v1396_v33  ;;  %v1527_v62 = vpop.permute.xlu0 %1526 }
 0x6f5   : > { %v1310_v39 = vrot.slane %v1309_v47, 1  ;;  %v1315_v43 = vrot.slane %v1314_v32, 2  ;;  %v1324_v57 = vpack.c.bf16 %v1304_v25, %v1304_v25  ;;  %v1398_v25 = vsel %vm1004_vm6, %v1391_v63, %v1397_v27 }
 0x6f7   : > { %v1311_v59 = vadd.f32 %v1310_v39, %v1309_v47  ;;  %v1316_v55 = vadd.f32 %v1315_v43, %v1314_v32  ;;  %v1392_v15 = vunpack.c.l.b16 %v1324_v57 }
 0x6f9   : > { %v1325_v21 = vpack.c.bf16 %v1311_v59, %v1311_v59  ;;  %v1317_v51 = vrot.slane %v1316_v55, 1  ;;  %v1399_v47 = vsel %vm1006_vm7, %v1392_v15, %v1398_v25 }
 0x6fb   : > { %v1318_v24 = vadd.f32 %v1317_v51, %v1316_v55  ;;  %v1393_v49 = vunpack.c.l.b16 %v1325_v21 }
 0x6fd   : > { %v1326_v0 = vpack.c.bf16 %v1318_v24, %v1318_v24  ;;  %v1400_v16 = vsel %vm1008_vm8, %v1393_v49, %v1399_v47 }
 0x6ff   : > { %v1394_v18 = vunpack.c.l.b16 %v1326_v0 }
 0x701   : > { %v1401_v17 = vsel %vm1010_vm9, %v1394_v18, %v1400_v16 }
 0x702   : > { %v1402_v32 = vpack.c.b16 %v1401_v17, %v1401_v17 }
 0x704   : > { %4404 = vmatmul.mubr.msk.bf16.vlgmr.msra.gmra.mrb[4].mxu0 %vm609_vm2, %v1402_v32 }
 0x705   : > { %4416 = vmatpush3.bf16.msra.mxu0 %v4974_v1  ;;  %4419 = vmatprep.mubr.msk.bf16.mxu0 %vm4867_vm1, %v6068_v53  ;;  %v5327_v1 = vld [vmem:[%s5995_s9] ss:$0 sm:$0xff] }
 0x706   : > { %4417 = vmatprep.subr.bf16.mxu0 %v6068_v53 }
 0x709   : > { %4418 = vmatpush3.bf16.msra.mxu0 %v4980_v3 }
 0x70a   : > { %4423 = vmatprep.subr.bf16.mxu0 %v6068_v53 }
 0x72c   : > { %v1504_v58 = vpop.f32.mrb[8].mxu1 }
 0x72d   : > { %v4413_v46 = vpop.f32.mrb[9].mxu1 }
 0x72e   : > { %v1507_v2 = vpop.f32.mrb[10].mxu1 }
 0x72f   : > { %v4414_v52 = vpop.f32.mrb[11].mxu1 }
 0x7d7   : > { %v1452_v41 = vpop.f32.mrb[4].mxu0 }
 0x7d8   : > { %v1453_v35 = vadd.f32 %v1452_v41, %v5107_v13  ;;  %v4405_v12 = vpop.f32.mrb[5].mxu0 }
 0x7d9   : > { %v1455_v39 = vpop.f32.mrb[6].mxu0 }
 0x7da   : > { %v1510_v43 = vadd.f32 %v1504_v58, %v1453_v35  ;;  %v4406_v5 = vpop.f32.mrb[7].mxu0 }
 0x7dc   : > { %v1517_v3 = vadd.f32 %v5327_v1, %v1510_v43 }
 0x7de   : > { %4667 = vtanh.f32 %v1517_v3  ;;  %v4224_v57 = vmul.f32 -1.442695, %v1517_v3 }
 0x7e0   : > { %4669 = vpow2.f32 %v4224_v57 }
 0x7e8   : > { %v4668_v40 = vpop.eup %4667 }
 0x7e9   : > { %1531 = vrot.lane.b32.xlu1 %v4668_v40, %s4868_s17 }
 0x7ea   : > { %v4670_v59 = vpop.eup %4669 }
 0x7eb   : > { %v1521_v55 = vadd.f32 1.0, %v4670_v59 }
 0x7ed   : > { %4671 = vrcp.f32 %v1521_v55 }
 0x7f7   : > { %v4672_v13 = vpop.eup %4671 }
 0x7f8   : > { %v1529_v21 = vmul.f32 %v4672_v13, %v1527_v62 }
 0x85b   : > { %v1532_v19 = vpop.permute.xlu1 %1531 }
 0x85c   : > { %v1534_v4 = vmul.f32 %v4672_v13, %v1532_v19 }
 0x85e   : > { %1536 = vrot.lane.b32.xlu0 %v1534_v4, %s4869_s18 }
 0x8d0   : > { %v1537_v51 = vpop.permute.xlu0 %1536 }
 0x8d1   : > { %v5332_v63 = vadd.f32 %v1537_v51, %v1529_v21 }
 0x8d3   : > { %4673 = vtanh.f32 %v5332_v63 }
 0x8dd   : > { %v4674_v56 = vpop.eup %4673 }
 0x8de   : > { %1542 = vrot.lane.b32.xlu0 %v4674_v56, %s4868_s17 }
 0x950   : > { %v1543_v15 = vpop.permute.xlu0 %1542 }
 0x951   : > { %v5336_v24 = vmul.f32 %v4672_v13, %v1543_v15 }
 0x953   : > { %6069 = vst [vmem:[#allocation26_spill] sm:$0xff] %v5336_v24  ;;  %v1554_v33 = vpack.c.bf16 %v5336_v24, %v5336_v24 }
 0x955   : > { %1556 = vrot.lane.b32.xlu0 %v1554_v33, %s4869_s18 }
 0x9c7   : > { %v1557_v49 = vpop.permute.xlu0 %1556 }
 0x9c8   : > { %4420 = vmatmul.mubr.msk.bf16.vlgmr.msra.gmra.mrb[8].mxu0 %vm609_vm2, %v1557_v49 }
 0x9c9   : > { %4424 = vmatpush3.bf16.msra.mxu0 %v4994_v6  ;;  %4427 = vmatprep.mubr.msk.bf16.mxu0 %vm4867_vm1, %v6068_v53  ;;  %v4225_v6 = vld [vmem:[%s4964_s16 + $0x8] sm:$0xff] }
 0x9ca   : > { %4425 = vmatprep.subr.bf16.mxu0 %v6068_v53  ;;  %v1553_v27 = vadd.f32 %v4225_v6, %v5017_v10 }
 0x9cd   : > { %4426 = vmatpush3.bf16.msra.mxu0 %v5004_v7 }
 0x9ce   : > { %4447 = vmatprep.subr.bf16.mxu0 %v6068_v53 }
 0x9d4   : > { %4428 = vmatmul.mubr.msk.bf16.vlgmr.msra.gmra.mrb[8].mxu0 %vm609_vm2, %v5048_v37 }
 0x9d5   : > { %4448 = vmatpush3.bf16.msra.mxu0 %v5231_v20  ;;  %4451 = vmatprep.mubr.msk.bf16.mxu0 %vm4867_vm1, %v6068_v53 }
 0x9d6   : > { %4449 = vmatprep.subr.bf16.mxu0 %v6068_v53 }
 0x9d9   : > { %4450 = vmatpush3.bf16.msra.mxu0 %v5243_v48 }
 0x9da   : > { %4463 = vmatprep.subr.bf16.mxu0 %v6068_v53 }
 0xaa7   : > { %v1636_v7 = vpop.f32.mrb[8].mxu0 }
 0xaa8   : > { %v4560_v0 = vadd.f32 %v1636_v7, %v1553_v27  ;;  %v4429_v25 = vpop.f32.mrb[9].mxu0 }
 0xaa9   : > { %v1639_v47 = vpop.f32.mrb[10].mxu0 }
 0xaaa   : > { %4675 = vtanh.f32 %v4560_v0  ;;  %v4430_v37 = vpop.f32.mrb[11].mxu0  ;;  %v4228_v20 = vmul.f32 -1.442695, %v4560_v0 }
 0xaac   : > { %4677 = vpow2.f32 %v4228_v20 }
 0xab4   : > { %v4676_v18 = vpop.eup %4675 }
 0xab5   : > { %1652 = vrot.lane.b32.xlu1 %v4676_v18, %s4868_s17 }
 0xab6   : > { %v4678_v16 = vpop.eup %4677 }
 0xab7   : > { %v1646_v17 = vadd.f32 1.0, %v4678_v16 }
 0xab9   : > { %4679 = vrcp.f32 %v1646_v17 }
 0xac3   : > { %v4680_v48 = vpop.eup %4679 }
 0xac4   : > { %v1650_v10 = vmul.f32 %v4680_v48, %v5024_v29 }
 0xb27   : > { %v1653_v32 = vpop.permute.xlu1 %1652 }
 0xb28   : > { %v1655_v58 = vmul.f32 %v4680_v48, %v1653_v32 }
 0xb2a   : > { %1657 = vrot.lane.b32.xlu0 %v1655_v58, %s4869_s18 }
 0xb9c   : > { %v1658_v46 = vpop.permute.xlu0 %1657 }
 0xb9d   : > { %v5361_v2 = vadd.f32 %v1658_v46, %v1650_v10 }
 0xb9f   : > { %4681 = vtanh.f32 %v5361_v2 }
 0xba9   : > { %v4682_v52 = vpop.eup %4681 }
 0xbaa   : > { %1663 = vrot.lane.b32.xlu1 %v4682_v52, %s4868_s17 }
 0xc1c   : > { %v1664_v41 = vpop.permute.xlu1 %1663 }
 0xc1d   : > { %v1666_v35 = vmul.f32 %v4680_v48, %v1664_v41 }
 0xc1f   : > { %v1667_v12 = vpack.c.bf16 %v1666_v35, %v1666_v35 }
 0xc21   : > { %1669 = vrot.lane.b32.xlu0 %v1667_v12, %s4869_s18 }
 0xc93   : > { %v5366_v39 = vpop.permute.xlu0 %1669 }
 0xc94   : > { %4436 = vmatmul.mubr.msk.bf16.vlgmr.msra.gmra.mrb[12].mxu1 %vm609_vm2, %v5366_v39 }
 0xc95   : > { %4440 = vmatpush3.bf16.msra.mxu1 %v5046_v36  ;;  %4443 = vmatprep.mubr.msk.bf16.mxu1 %vm4867_vm1, %v6068_v53 }
 0xc96   : > { %4441 = vmatprep.subr.bf16.mxu1 %v6068_v53 }
 0xc99   : > { %4442 = vmatpush3.bf16.msra.mxu1 %v5056_v38 }
 0xc9a   : > { %4455 = vmatprep.subr.bf16.mxu1 %v6068_v53 }
 0xc9c   : > { %4444 = vmatmul.mubr.msk.bf16.vlgmr.msra.gmra.mrb[16].mxu1 %vm609_vm2, %v5366_v39 }
 0xc9d   : > { %4456 = vmatpush3.bf16.msra.mxu1 %v5236_v22  ;;  %4459 = vmatprep.mubr.msk.bf16.mxu1 %vm4867_vm1, %v6068_v53 }
 0xc9e   : > { %4457 = vmatprep.subr.bf16.mxu1 %v6068_v53 }
 0xca1   : > { %4458 = vmatpush3.bf16.msra.mxu1 %v5248_v23 }
 0xca2   : > { %4479 = vmatprep.subr.bf16.mxu1 %v6068_v53 }
 0xca4   : > { %4460 = vmatmul.mubr.msk.bf16.vlgmr.msra.gmra.mrb[20].mxu1 %vm609_vm2, %v1557_v49 }
 0xca5   : > { %4480 = vmatpush3.bf16.msra.mxu1 %v5030_v30  ;;  %4483 = vmatprep.mubr.msk.bf16.mxu1 %vm4867_vm1, %v6068_v53 }
 0xca6   : > { %4481 = vmatprep.subr.bf16.mxu1 %v6068_v53 }
 0xca9   : > { %4482 = vmatpush3.bf16.msra.mxu1 %v5036_v31 }
 0xcaa   : > { %4487 = vmatprep.subr.bf16.mxu1 %v6068_v53 }
 0xd67   : > { %v1708_v29 = vpop.f32.mrb[12].mxu1 }
 0xd68   : > { %v1709_v36 = vadd.f32 %v5073_v44, %v1708_v29  ;;  %v4437_v38 = vpop.f32.mrb[13].mxu1 }
 0xd69   : > { %v1711_v22 = vpop.f32.mrb[14].mxu1 }
 0xd6a   : > { %v1715_v23 = vcombine.high %v1709_v36, %v1709_v36  ;;  %v1722_v43 = vrot.slane %v1709_v36, %v5076_v45  ;;  %v4438_v5 = vpop.f32.mrb[15].mxu1 }
 0xd6c   : > { %v1729_v30 = vrot.slane %v1715_v23, %v5076_v45  ;;  %v1730_v3 = vcombine.high %v1722_v43, %v1722_v43  ;;  %v1738_v40 = vrot.slane %v1722_v43, %v5076_v45 }
 0xd6e   : > { %v1731_v57 = vcombine.high %v1729_v30, %v1729_v30  ;;  %v1745_v59 = vrot.slane %v1729_v30, %v5076_v45  ;;  %v1752_v31 = vrot.slane %v1730_v3, %v5076_v45  ;;  %v1760_v55 = vcombine.high %v1738_v40, %v1738_v40 }
 0xd6f   : > { %v1767_v13 = vrot.slane %v1738_v40, %v5084_v54  ;;  %v5398_v44 = vpop.f32.mrb[16].mxu1 }
 0xd70   : > { %v1761_v19 = vcombine.high %v1745_v59, %v1745_v59  ;;  %v1762_v4 = vcombine.high %v1752_v31, %v1752_v31  ;;  %v1771_v62 = vrot.slane %v1752_v31, %v5084_v54  ;;  %v4445_v21 = vpop.f32.mrb[17].mxu1  ;;  %v1759_v51 = vrot.slane %v1731_v57, %v5076_v45 }
 0xd71   : > { %v1775_v56 = vrot.slane %v1760_v55, %v5084_v54  ;;  %v1783_v15 = vrot.slane %v1745_v59, %v5084_v54  ;;  %v1804_v33 = vadd.f32 %v5094_v60, %v1767_v13  ;;  %v2242_v49 = vpop.f32.mrb[18].mxu1 }
 0xd72   : > { %v1779_v6 = vrot.slane %v1762_v4, %v5084_v54  ;;  %v1791_v27 = vrot.slane %v1761_v19, %v5084_v54  ;;  %v4446_v7 = vpop.f32.mrb[19].mxu1  ;;  %v1805_v0 = vadd.f32 %v5096_v61, %v1771_v62  ;;  %v1763_v37 = vcombine.high %v1759_v51, %v1759_v51 }
 0xd73   : > { %v1806_v25 = vadd.f32 %v5100_v8, %v1775_v56  ;;  %4683 = vtanh.f32 %v1804_v33  ;;  %v1808_v47 = vadd.f32 %v5104_v11, %v1783_v15  ;;  %v1787_v18 = vrot.slane %v1759_v51, %v5084_v54 }
 0xd74   : > { %v1807_v20 = vadd.f32 %v5102_v9, %v1779_v6  ;;  %4685 = vtanh.f32 %v1805_v0  ;;  %v1810_v16 = vadd.f32 %v5128_v42, %v1791_v27  ;;  %v1795_v32 = vrot.slane %v1763_v37, %v5084_v54 }
 0xd75   : > { %4687 = vtanh.f32 %v1806_v25  ;;  %v1809_v58 = vadd.f32 %v5109_v14, %v1787_v18 }
 0xd76   : > { %4689 = vtanh.f32 %v1808_v47  ;;  %v1811_v41 = vadd.f32 %v5123_v34, %v1795_v32 }
 0xd77   : > { %v5413_v17 = vpop.f32.mrb[20].mxu1  ;;  %4691 = vtanh.f32 %v1807_v20 }
 0xd78   : > { %v4461_v48 = vpop.f32.mrb[21].mxu1  ;;  %4693 = vtanh.f32 %v1810_v16 }
 0xd79   : > { %v2349_v10 = vpop.f32.mrb[22].mxu1  ;;  %4695 = vtanh.f32 %v1809_v58 }
 0xd7a   : > { %v4462_v46 = vpop.f32.mrb[23].mxu1  ;;  %4697 = vtanh.f32 %v1811_v41 }
 0xd7d   : > { %v4684_v52 = vpop.eup %4683 }
 0xd7e   : > { %v1820_v35 = vmul.f32 %v4684_v52, %v5137_v50  ;;  %v4686_v12 = vpop.eup %4685 }
 0xd7f   : > { %v4688_v29 = vpop.eup %4687  ;;  %v1821_v38 = vmul.f32 %v4686_v12, %v5137_v50 }
 0xd80   : > { %v1828_v36 = vsel %vm609_vm2, %v1820_v35, 0.0  ;;  %v4690_v22 = vpop.eup %4689  ;;  %v1822_v43 = vmul.f32 %v4688_v29, %v5137_v50 }
 0xd81   : > { %1829 = vadd.xlane.f32.xlu1 %v1828_v36  ;;  %v1831_v23 = vsel %vm609_vm2, %v1821_v38, 0.0  ;;  %v4692_v5 = vpop.eup %4691  ;;  %v1824_v30 = vmul.f32 %v4690_v22, %v5137_v50  ;;  %v6070_v22 = vld [vmem:[#allocation11_spill] sm:$0xff] }
 0xd82   : > { %1832 = vadd.xlane.f32.xlu0 %v1831_v23  ;;  %v4694_v3 = vpop.eup %4693  ;;  %v1834_v59 = vsel %vm609_vm2, %v1822_v43, 0.0  ;;  %v1823_v31 = vmul.f32 %v4692_v5, %v5137_v50  ;;  %v6071_v43 = vld [vmem:[#allocation12_spill] sm:$0xff] }
 0xd83   : > { %v1840_v40 = vsel %vm609_vm2, %v1824_v30, 0.0  ;;  %v1826_v57 = vmul.f32 %v4694_v3, %v5137_v50  ;;  %v4696_v55 = vpop.eup %4695  ;;  %v6072_v30 = vld [vmem:[#allocation14_spill] sm:$0xff] }
 0xd84   : > { %v1837_v19 = vsel %vm609_vm2, %v1823_v31, 0.0  ;;  %v1825_v4 = vmul.f32 %v4696_v55, %v5137_v50  ;;  %v4698_v62 = vpop.eup %4697 }
 0xd85   : > { %1841 = vadd.xlane.f32.xlu1 %v1840_v40  ;;  %v1846_v13 = vsel %vm609_vm2, %v1826_v57, 0.0  ;;  %v1827_v51 = vmul.f32 %v4698_v62, %v5137_v50  ;;  %v6073_v40 = vld [vmem:[#allocation13_spill] sm:$0xff] }
 0xd86   : > { %1835 = vadd.xlane.f32.xlu0 %v1834_v59  ;;  %v1843_v21 = vsel %vm609_vm2, %v1825_v4, 0.0 }
 0xd87   : > { %v1849_v56 = vsel %vm609_vm2, %v1827_v51, 0.0  ;;  %v6075_v51 = vld [vmem:[#allocation15_spill] sm:$0xff] }
 0xd89   : > { %1847 = vadd.xlane.f32.xlu1 %v1846_v13  ;;  %v6074_v13 = vld [vmem:[#allocation16_spill] sm:$0xff] }
 0xd8a   : > { %1838 = vadd.xlane.f32.xlu0 %v1837_v19 }
 0xd8e   : > { %1844 = vadd.xlane.f32.xlu0 %v1843_v21 }
 0xd92   : > { %1850 = vadd.xlane.f32.xlu0 %v1849_v56 }
 0xe0e   : > { %v1830_v33 = vpop.xlane.xlu1 %1829 }
 0xe0f   : > { %v1833_v15 = vpop.xlane.xlu0 %1832  ;;  %v1863_v7 = vrot.slane %v1830_v33, %v5157_v28 }
 0xe10   : > { %v1867_v6 = vrot.slane %v1833_v15, %v5157_v28 }
 0xe12   : > { %v1842_v0 = vpop.xlane.xlu1 %1841  ;;  %v1892_v47 = vsel %vm998_vm3, %v1867_v6, %v1863_v7 }
 0xe13   : > { %v1836_v49 = vpop.xlane.xlu0 %1835  ;;  %v1879_v20 = vrot.slane %v1842_v0, %v5157_v28 }
 0xe14   : > { %v1871_v27 = vrot.slane %v1836_v49, %v5157_v28 }
 0xe16   : > { %v1893_v50 = vsel %vm1000_vm4, %v1871_v27, %v1892_v47  ;;  %v1848_v48 = vpop.xlane.xlu1 %1847 }
 0xe17   : > { %v1839_v25 = vpop.xlane.xlu0 %1838  ;;  %v1887_v46 = vrot.slane %v1848_v48, %v5157_v28 }
 0xe18   : > { %v1875_v37 = vrot.slane %v1839_v25, %v5157_v28 }
 0xe1a   : > { %v1894_v18 = vsel %vm1002_vm5, %v1875_v37, %v1893_v50  ;;  %v6076_v37 = vld [vmem:[#allocation17_spill] sm:$0xff] }
 0xe1b   : > { %v1845_v16 = vpop.xlane.xlu0 %1844  ;;  %v1895_v58 = vsel %vm1004_vm6, %v1879_v20, %v1894_v18 }
 0xe1c   : > { %v1883_v32 = vrot.slane %v1845_v16, %v5157_v28 }
 0xe1e   : > { %v1896_v10 = vsel %vm1006_vm7, %v1883_v32, %v1895_v58 }
 0xe1f   : > { %v1851_v52 = vpop.xlane.xlu0 %1850  ;;  %v1897_v35 = vsel %vm1008_vm8, %v1887_v46, %v1896_v10 }
 0xe20   : > { %v1891_v41 = vrot.slane %v1851_v52, %v5157_v28 }
 0xe22   : > { %v1898_v12 = vsel %vm1010_vm9, %v1891_v41, %v1897_v35 }
 0xe23   : > { %v1900_v29 = vsel %vm1013_vm10, %v1898_v12, -inf }
 0xe24   : > { %1901 = vmax.xlane.f32.xlu1 %v1900_v29 }
 0xeb1   : > { %v1902_v36 = vpop.xlane.xlu1 %1901 }
 0xeb2   : > { %v1907_v38 = vrot.slane %v1902_v36, %v5084_v54  ;;  %v1911_v23 = vrot.slane %v1902_v36, %v6070_v22  ;;  %v1915_v5 = vrot.slane %v1902_v36, %v6071_v43  ;;  %v1923_v3 = vrot.slane %v1902_v36, %v6072_v30 }
 0xeb3   : > { %v1919_v57 = vrot.slane %v1902_v36, %v6073_v40  ;;  %v1931_v19 = vrot.slane %v1902_v36, %v6074_v13  ;;  %v1927_v56 = vrot.slane %v1902_v36, %v6075_v51  ;;  %v1935_v50 = vrot.slane %v1902_v36, %v6076_v37 }
 0xeb4   : > { %v1945_v59 = vsub.f32 %v1833_v15, %v1911_v23  ;;  %v1944_v31 = vsub.f32 %v1830_v33, %v1907_v38  ;;  %v1946_v55 = vsub.f32 %v1836_v49, %v1915_v5  ;;  %v1948_v4 = vsub.f32 %v1842_v0, %v1923_v3 }
 0xeb5   : > { %v1947_v27 = vsub.f32 %v1839_v25, %v1919_v57  ;;  %v1950_v47 = vsub.f32 %v1848_v48, %v1931_v19  ;;  %v1949_v15 = vsub.f32 %v1845_v16, %v1927_v56  ;;  %v1951_v0 = vsub.f32 %v1851_v52, %v1935_v50 }
 0xeb6   : > { %v1954_v62 = vmul.f32 1.442695, %v1945_v59  ;;  %v1952_v21 = vmul.f32 1.442695, %v1944_v31  ;;  %v1956_v6 = vmul.f32 1.442695, %v1946_v55 }
 0xeb7   : > { %v1960_v7 = vmul.f32 1.442695, %v1948_v4  ;;  %v1958_v18 = vmul.f32 1.442695, %v1947_v27  ;;  %v1964_v33 = vmul.f32 1.442695, %v1950_v47 }
 0xeb8   : > { %4699 = vpow2.f32 %v1954_v62  ;;  %v1962_v49 = vmul.f32 1.442695, %v1949_v15  ;;  %v1966_v25 = vmul.f32 1.442695, %v1951_v0 }
 0xeb9   : > { %4701 = vpow2.f32 %v1952_v21 }
 0xeba   : > { %4703 = vpow2.f32 %v1956_v6 }
 0xebb   : > { %4705 = vpow2.f32 %v1960_v7 }
 0xebc   : > { %4707 = vpow2.f32 %v1958_v18 }
 0xebd   : > { %4709 = vpow2.f32 %v1964_v33 }
 0xebe   : > { %4711 = vpow2.f32 %v1962_v49 }
 0xebf   : > { %4713 = vpow2.f32 %v1966_v25 }
 0xec2   : > { %v4700_v20 = vpop.eup %4699 }
 0xec3   : > { %v4702_v32 = vpop.eup %4701  ;;  %1980 = vperm.xlu1 %4611, %v4700_v20  }
 0xec4   : > { %1977 = vperm.xlu0 %4612, %v4702_v32   ;;  %v4704_v58 = vpop.eup %4703 }
 0xec5   : > { %v4706_v10 = vpop.eup %4705 }
 0xec6   : > { %v4708_v48 = vpop.eup %4707 }
 0xec7   : > { %1983 = vperm.xlu1 %4611, %v4704_v58   ;;  %v4710_v46 = vpop.eup %4709 }
 0xec8   : > { %1989 = vperm.xlu0 %4612, %v4706_v10   ;;  %v4712_v16 = vpop.eup %4711 }
 0xec9   : > { %v4714_v41 = vpop.eup %4713 }
 0xecb   : > { %1986 = vperm.xlu1 %4611, %v4708_v48  }
 0xecc   : > { %1995 = vperm.xlu0 %4612, %v4710_v46  }
 0xecf   : > { %1992 = vperm.xlu1 %4611, %v4712_v16  }
 0xed3   : > { %1998 = vperm.xlu1 %4611, %v4714_v41  }
 0xf42   : > { %v1981_v52 = vpop.permute.xlu1 %1980 }
 0xf43   : > { %v1978_v35 = vpop.permute.xlu0 %1977  ;;  %v2007_v29 = vrot.slane %v1981_v52, %v5157_v28 }
 0xf44   : > { %v2003_v36 = vrot.slane %v1978_v35, %v5157_v28 }
 0xf46   : > { %v1984_v12 = vpop.permute.xlu1 %1983  ;;  %v2032_v3 = vsel %vm998_vm3, %v2007_v29, %v2003_v36 }
 0xf47   : > { %v2011_v38 = vrot.slane %v1984_v12, %v5157_v28  ;;  %v1990_v23 = vpop.permute.xlu0 %1989 }
 0xf48   : > { %v2019_v55 = vrot.slane %v1990_v23, %v5157_v28 }
 0xf49   : > { %v2033_v59 = vsel %vm1000_vm4, %v2011_v38, %v2032_v3 }
 0xf4a   : > { %v1987_v5 = vpop.permute.xlu1 %1986 }
 0xf4b   : > { %v2015_v57 = vrot.slane %v1987_v5, %v5157_v28  ;;  %v1996_v4 = vpop.permute.xlu0 %1995 }
 0xf4c   : > { %v2027_v6 = vrot.slane %v1996_v4, %v5157_v28  ;;  %v6078_v4 = vld [vmem:[#allocation19_spill] sm:$0xff] }
 0xf4d   : > { %v2034_v31 = vsel %vm1002_vm5, %v2015_v57, %v2033_v59 }
 0xf4e   : > { %v1993_v19 = vpop.permute.xlu1 %1992  ;;  %v2035_v21 = vsel %vm1004_vm6, %v2019_v55, %v2034_v31  ;;  %v6077_v31 = vld [vmem:[#allocation18_spill] sm:$0xff] }
 0xf4f   : > { %v2023_v62 = vrot.slane %v1993_v19, %v5157_v28 }
 0xf51   : > { %v2036_v56 = vsel %vm1006_vm7, %v2023_v62, %v2035_v21 }
 0xf52   : > { %v1999_v27 = vpop.permute.xlu1 %1998  ;;  %v2037_v47 = vsel %vm1008_vm8, %v2027_v6, %v2036_v56 }
 0xf53   : > { %v2031_v7 = vrot.slane %v1999_v27, %v5157_v28  ;;  %v6079_v27 = vld [vmem:[#allocation20_spill] sm:$0xff] }
 0xf55   : > { %v2038_v50 = vsel %vm1010_vm9, %v2031_v7, %v2037_v47 }
 0xf56   : > { %v2040_v18 = vsel %vm1013_vm10, %v2038_v50, 0.0 }
 0xf57   : > { %2041 = vadd.xlane.f32.xlu0 %v2040_v18 }
 0xfe4   : > { %v2042_v15 = vpop.xlane.xlu0 %2041 }
 0xfe5   : > { %4715 = vrcp.f32 %v2042_v15 }
 0xfef   : > { %v4716_v33 = vpop.eup %4715 }
 0xff0   : > { %v2076_v49 = vrot.slane %v4716_v33, %v6076_v37  ;;  %v2048_v0 = vrot.slane %v4716_v33, %v5084_v54  ;;  %v2052_v35 = vrot.slane %v4716_v33, %v6070_v22  ;;  %v2056_v29 = vrot.slane %v4716_v33, %v6071_v43 }
 0xff1   : > { %v2060_v38 = vrot.slane %v4716_v33, %v6073_v40  ;;  %v2064_v5 = vrot.slane %v4716_v33, %v6072_v30  ;;  %v2072_v57 = vrot.slane %v4716_v33, %v6074_v13 }
 0xff2   : > { %v2092_v25 = vmul.f32 %v4714_v41, %v2076_v49  ;;  %v2085_v52 = vmul.f32 %v4702_v32, %v2048_v0  ;;  %v2086_v12 = vmul.f32 %v4700_v20, %v2052_v35  ;;  %v2087_v36 = vmul.f32 %v4704_v58, %v2056_v29  ;;  %v6080_v49 = vld [vmem:[#allocation21_spill] sm:$0xff] }
 0xff3   : > { %v2088_v23 = vmul.f32 %v4708_v48, %v2060_v38  ;;  %v2089_v3 = vmul.f32 %v4706_v10, %v2064_v5  ;;  %v2068_v41 = vrot.slane %v4716_v33, %v6075_v51  ;;  %v2091_v20 = vmul.f32 %v4710_v46, %v2072_v57  ;;  %v6081_v5 = vld [vmem:[#allocation22_spill] sm:$0xff] }
 0xff4   : > { %2130 = vperm.xlu0 %4612, %v2092_v25   ;;  %2095 = vperm.xlu1 %4611, %v2085_v52  }
 0xff5   : > { %v2090_v32 = vmul.f32 %v4712_v16, %v2068_v41 }
 0xff8   : > { %2100 = vperm.xlu1 %4611, %v2086_v12  }
 0xffc   : > { %2105 = vperm.xlu1 %4611, %v2087_v36  }
0x1000   : > { %2110 = vperm.xlu1 %4611, %v2088_v23  }
0x1004   : > { %2115 = vperm.xlu1 %4611, %v2089_v3  }
0x1008   : > { %2120 = vperm.xlu1 %4611, %v2090_v32  }
0x100c   : > { %2125 = vperm.xlu1 %4611, %v2091_v20  }
0x1073   : > { %v2096_v59 = vpop.permute.xlu1 %2095  ;;  %v2131_v19 = vpop.permute.xlu0 %2130 }
0x1074   : > { %v2133_v58 = vmul.f32 %v6077_v31, %v2096_v59  ;;  %v2140_v21 = vmul.f32 %v5304_v26, %v2131_v19 }
0x1076   : > { %v2141_v62 = vsel %vm609_vm2, %v2133_v58, 0.0  ;;  %v2190_v50 = vsel %vm609_vm2, %v2140_v21, 0.0 }
0x1077   : > { %v2101_v55 = vpop.permute.xlu1 %2100  ;;  %v2142_v6 = vrot.slane %v2141_v62, 4  ;;  %v2191_v52 = vrot.slane %v2190_v50, 4 }
0x1078   : > { %v2134_v48 = vmul.f32 %v6078_v4, %v2101_v55 }
0x1079   : > { %v2143_v33 = vadd.f32 %v2142_v6, %v2141_v62  ;;  %v2192_v41 = vadd.f32 %v2191_v52, %v2190_v50  ;;  %v6082_v62 = vld [vmem:[#allocation23_spill] sm:$0xff]  ;;  %v6083_v52 = vld [vmem:[#allocation24_spill] sm:$0xff] }
0x107a   : > { %v2148_v10 = vsel %vm609_vm2, %v2134_v48, 0.0 }
0x107b   : > { %v2149_v56 = vrot.slane %v2148_v10, 4  ;;  %v2106_v16 = vpop.permute.xlu1 %2105  ;;  %v2144_v38 = vrot.slane %v2143_v33, 2 }
0x107c   : > { %v2135_v7 = vmul.f32 %v6079_v27, %v2106_v16 }
0x107d   : > { %v2150_v46 = vadd.f32 %v2149_v56, %v2148_v10  ;;  %v2145_v19 = vadd.f32 %v2144_v38, %v2143_v33  ;;  %v2193_v56 = vrot.slane %v2192_v41, 2 }
0x107e   : > { %v2155_v47 = vsel %vm609_vm2, %v2135_v7, 0.0 }
0x107f   : > { %v2156_v18 = vrot.slane %v2155_v47, 4  ;;  %v2111_v15 = vpop.permute.xlu1 %2110  ;;  %v2151_v35 = vrot.slane %v2150_v46, 2  ;;  %v2194_v33 = vadd.f32 %v2193_v56, %v2192_v41 }
0x1080   : > { %v2136_v0 = vmul.f32 %v6080_v49, %v2111_v15  ;;  %v2146_v15 = vrot.slane %v2145_v19, 1 }
0x1081   : > { %v2157_v25 = vadd.f32 %v2156_v18, %v2155_v47  ;;  %v2152_v32 = vadd.f32 %v2151_v35, %v2150_v46  ;;  %v2195_v24 = vrot.slane %v2194_v33, 1 }
0x1082   : > { %v2162_v12 = vsel %vm609_vm2, %v2136_v0, 0.0 }
0x1083   : > { %v2158_v29 = vrot.slane %v2157_v25, 2  ;;  %v2116_v36 = vpop.permute.xlu1 %2115  ;;  %v2163_v23 = vrot.slane %v2162_v12, 4  ;;  %v2153_v16 = vrot.slane %v2152_v32, 1 }
0x1084   : > { %v2137_v3 = vmul.f32 %v6081_v5, %v2116_v36 }
0x1085   : > { %v2164_v57 = vadd.f32 %v2163_v23, %v2162_v12  ;;  %v2159_v59 = vadd.f32 %v2158_v29, %v2157_v25  ;;  %v2154_v29 = vadd.f32 %v2153_v16, %v2152_v32  ;;  %v2196_v16 = vadd.f32 %v2195_v24, %v2194_v33 }
0x1086   : > { %v2169_v20 = vsel %vm609_vm2, %v2137_v3, 0.0 }
0x1087   : > { %v2170_v58 = vrot.slane %v2169_v20, 4  ;;  %v2121_v55 = vpop.permute.xlu1 %2120  ;;  %v2165_v48 = vrot.slane %v2164_v57, 2  ;;  %v2160_v47 = vrot.slane %v2159_v59, 1  ;;  %v2198_v26 = vpack.c.bf16 %v2154_v29, %v2154_v29 }
0x1088   : > { %v2138_v10 = vmul.f32 %v6082_v62, %v2121_v55 }
0x1089   : > { %v2171_v21 = vadd.f32 %v2170_v58, %v2169_v20  ;;  %v2166_v6 = vadd.f32 %v2165_v48, %v2164_v57  ;;  %v2161_v38 = vadd.f32 %v2160_v47, %v2159_v59  ;;  %v2147_v20 = vadd.f32 %v2146_v15, %v2145_v19 }
0x108a   : > { %v2176_v7 = vsel %vm609_vm2, %v2138_v10, 0.0  ;;  %v2254_v59 = vunpack.c.l.b16 %v2198_v26 }
0x108b   : > { %v2172_v18 = vrot.slane %v2171_v21, 2  ;;  %v2177_v50 = vrot.slane %v2176_v7, 4  ;;  %v2126_v46 = vpop.permute.xlu1 %2125  ;;  %v2167_v0 = vrot.slane %v2166_v6, 1  ;;  %v2199_v62 = vpack.c.bf16 %v2161_v38, %v2161_v38 }
0x108c   : > { %v2139_v25 = vmul.f32 %v6083_v52, %v2126_v46 }
0x108d   : > { %v2173_v35 = vadd.f32 %v2172_v18, %v2171_v21  ;;  %v2178_v12 = vadd.f32 %v2177_v50, %v2176_v7  ;;  %v2168_v58 = vadd.f32 %v2167_v0, %v2166_v6  ;;  %v2197_v21 = vpack.c.bf16 %v2147_v20, %v2147_v20  ;;  %v5518_v20 = vld [vmem:[%s5990_s4 + $0x8] sm:$0xff]  }
0x108e   : > { %v2183_v36 = vsel %vm609_vm2, %v2139_v25, 0.0  ;;  %v2255_v47 = vunpack.c.l.b16 %v2199_v62  ;;  %v2204_v25 = vpack.c.bf16 %v2196_v16, %v2196_v16 }
0x108f   : > { %v2174_v23 = vrot.slane %v2173_v35, 1  ;;  %v2179_v3 = vrot.slane %v2178_v12, 2  ;;  %v2184_v57 = vrot.slane %v2183_v36, 4  ;;  %v2200_v7 = vpack.c.bf16 %v2168_v58, %v2168_v58 }
0x1090   : > { %v2253_v19 = vunpack.c.l.b16 %v2197_v21  ;;  %v2260_v26 = vunpack.c.l.b16 %v2204_v25  ;;  %v5553_v25 = vld [vmem:[%s5991_s5 + $0x8] sm:$0xff]  }
0x1091   : > { %v2175_v55 = vadd.f32 %v2174_v23, %v2173_v35  ;;  %v2180_v48 = vadd.f32 %v2179_v3, %v2178_v12  ;;  %v2185_v10 = vadd.f32 %v2184_v57, %v2183_v36  ;;  %v2256_v6 = vunpack.c.l.b16 %v2200_v7  ;;  %v5509_v57 = vld [vmem:[%s5990_s4] sm:$0xff]  }
0x1092   : > { %v2261_v35 = vsel %vm998_vm3, %v2254_v59, %v2253_v19 }
0x1093   : > { %v2181_v5 = vrot.slane %v2180_v48, 1  ;;  %v2186_v46 = vrot.slane %v2185_v10, 2  ;;  %v2201_v41 = vpack.c.bf16 %v2175_v55, %v2175_v55  ;;  %v2262_v29 = vsel %vm1000_vm4, %v2255_v47, %v2261_v35  ;;  %v5562_v35 = vld [vmem:[%s5992_s6] sm:$0xff]  }
0x1094   : > { %v2263_v38 = vsel %vm1002_vm5, %v2256_v6, %v2262_v29  ;;  %v5579_v29 = vld [vmem:[%s5987_s1] sm:$0xff] }
0x1095   : > { %v2182_v32 = vadd.f32 %v2181_v5, %v2180_v48  ;;  %v2187_v56 = vadd.f32 %v2186_v46, %v2185_v10  ;;  %v2257_v15 = vunpack.c.l.b16 %v2201_v41 }
0x1097   : > { %v2202_v18 = vpack.c.bf16 %v2182_v32, %v2182_v32  ;;  %v2188_v50 = vrot.slane %v2187_v56, 1  ;;  %v2264_v5 = vsel %vm1004_vm6, %v2257_v15, %v2263_v38 }
0x1099   : > { %v2189_v0 = vadd.f32 %v2188_v50, %v2187_v56  ;;  %v2258_v12 = vunpack.c.l.b16 %v2202_v18 }
0x109b   : > { %v2203_v36 = vpack.c.bf16 %v2189_v0, %v2189_v0  ;;  %v2265_v62 = vsel %vm1006_vm7, %v2258_v12, %v2264_v5  ;;  %v5571_v12 = vld [vmem:[%s5992_s6 + $0x8] sm:$0xff]  }
0x109d   : > { %v2259_v24 = vunpack.c.l.b16 %v2203_v36 }
0x109f   : > { %v2266_v33 = vsel %vm1008_vm8, %v2259_v24, %v2265_v62 }
0x10a0   : > { %v2267_v23 = vsel %vm1010_vm9, %v2260_v26, %v2266_v33 }
0x10a1   : > { %v2268_v3 = vpack.c.b16 %v2267_v23, %v2267_v23 }
0x10a3   : > { %4452 = vmatmul.mubr.msk.bf16.vlgmr.msra.gmra.mrb[12].mxu0 %vm609_vm2, %v2268_v3 }
0x10a4   : > { %4464 = vmatpush3.bf16.msra.mxu0 %v5509_v57  ;;  %4467 = vmatprep.mubr.msk.bf16.mxu0 %vm4867_vm1, %v6068_v53 }
0x10a5   : > { %4465 = vmatprep.subr.bf16.mxu0 %v6068_v53 }
0x10a8   : > { %4466 = vmatpush3.bf16.msra.mxu0 %v5518_v20 }
0x10a9   : > { %4471 = vmatprep.subr.bf16.mxu0 %v6068_v53 }
0x1176   : > { %v2306_v58 = vpop.f32.mrb[12].mxu0 }
0x1177   : > { %v2307_v55 = vadd.f32 %v2306_v58, %v5398_v44  ;;  %v4453_v48 = vpop.f32.mrb[13].mxu0 }
0x1178   : > { %v2309_v10 = vpop.f32.mrb[14].mxu0 }
0x1179   : > { %v2352_v46 = vadd.f32 %v5413_v17, %v2307_v55  ;;  %v4454_v21 = vpop.f32.mrb[15].mxu0 }
0x117b   : > { %v2353_v7 = vadd.f32 %v5327_v1, %v2352_v46 }
0x117d   : > { %4717 = vtanh.f32 %v2353_v7  ;;  %v4233_v32 = vmul.f32 -1.442695, %v2353_v7 }
0x117f   : > { %4719 = vpow2.f32 %v4233_v32 }
0x1187   : > { %v4718_v41 = vpop.eup %4717 }
0x1188   : > { %2363 = vrot.lane.b32.xlu1 %v4718_v41, %s4868_s17 }
0x1189   : > { %v4720_v56 = vpop.eup %4719 }
0x118a   : > { %v2357_v16 = vadd.f32 1.0, %v4720_v56 }
0x118c   : > { %4721 = vrcp.f32 %v2357_v16 }
0x1196   : > { %v4722_v59 = vpop.eup %4721 }
0x1197   : > { %v2361_v44 = vmul.f32 %v4722_v59, %v5332_v63  ;;  %v5544_v63 = vld [vmem:[%s5991_s5] sm:$0xff]  }
0x11fa   : > { %v2364_v47 = vpop.permute.xlu1 %2363 }
0x11fb   : > { %v2366_v18 = vmul.f32 %v4722_v59, %v2364_v47  ;;  %v5606_v47 = vld [vmem:[%s5993_s7 + $0x8] sm:$0xff]  }
0x11fd   : > { %2368 = vrot.lane.b32.xlu1 %v2366_v18, %s4869_s18  ;;  %v5615_v18 = vld [vmem:[%s5994_s8] sm:$0xff]  }
0x126f   : > { %v2369_v17 = vpop.permute.xlu1 %2368 }
0x1270   : > { %v5528_v50 = vadd.f32 %v2369_v17, %v2361_v44  ;;  %v5624_v44 = vld [vmem:[%s5994_s8 + $0x8] sm:$0xff]   ;;  %v4836_v17 = vld [vmem:[%s5996_s10] sm:$0xff]  }
0x1272   : > { %4723 = vtanh.f32 %v5528_v50 }
0x127c   : > { %v4724_v1 = vpop.eup %4723 }
0x127d   : > { %2374 = vrot.lane.b32.xlu1 %v4724_v1, %s4868_s17  ;;  %v4837_v1 = vld [vmem:[%s5996_s10 + $0x8] sm:$0xff]  }
0x12ef   : > { %v2375_v19 = vpop.permute.xlu1 %2374 }
0x12f0   : > { %v5532_v6 = vmul.f32 %v4722_v59, %v2375_v19 }
0x12f2   : > { %6084 = vst [vmem:[#allocation11_spill] sm:$0xff] %v5532_v6  ;;  %v2387_v15 = vpack.c.bf16 %v5532_v6, %v5532_v6 }
0x12f4   : > { %2389 = vrot.lane.b32.xlu1 %v2387_v15, %s4869_s18  ;;  %v5643_v15 = vld [vmem:[%s5997_s11] ss:$0 sm:$0xff] }
0x1366   : > { %v5537_v0 = vpop.permute.xlu1 %2389 }
0x1367   : > { %4468 = vmatmul.mubr.msk.bf16.vlgmr.msra.gmra.mrb[16].mxu0 %vm609_vm2, %v5537_v0 }
0x1368   : > { %4472 = vmatpush3.bf16.msra.mxu0 %v5544_v63  ;;  %4475 = vmatprep.mubr.msk.bf16.mxu0 %vm4867_vm1, %v6068_v53 }
0x1369   : > { %4473 = vmatprep.subr.bf16.mxu0 %v6068_v53 }
0x136c   : > { %4474 = vmatpush3.bf16.msra.mxu0 %v5553_v25 }
0x136d   : > { %4495 = vmatprep.subr.bf16.mxu0 %v6068_v53 }
0x1373   : > { %4476 = vmatmul.mubr.msk.bf16.vlgmr.msra.gmra.mrb[16].mxu0 %vm609_vm2, %v5366_v39  ;;  %v4235_v39 = vld [vmem:[%s4964_s16 + $0x10] sm:$0xff] }
0x1374   : > { %4496 = vmatpush3.bf16.msra.mxu0 %v5562_v35  ;;  %4499 = vmatprep.mubr.msk.bf16.mxu0 %vm4867_vm1, %v6068_v53  ;;  %v2386_v36 = vadd.f32 %v5579_v29, %v4235_v39 }
0x1375   : > { %4497 = vmatprep.subr.bf16.mxu0 %v6068_v53 }
0x1378   : > { %4498 = vmatpush3.bf16.msra.mxu0 %v5571_v12 }
0x1379   : > { %4511 = vmatprep.subr.bf16.mxu0 %v6068_v53 }
0x1446   : > { %v2469_v38 = vpop.f32.mrb[16].mxu0 }
0x1447   : > { %v4561_v5 = vadd.f32 %v2469_v38, %v2386_v36  ;;  %v4477_v24 = vpop.f32.mrb[17].mxu0 }
0x1448   : > { %v2472_v26 = vpop.f32.mrb[18].mxu0 }
0x1449   : > { %4725 = vtanh.f32 %v4561_v5  ;;  %v4478_v62 = vpop.f32.mrb[19].mxu0  ;;  %v4238_v23 = vmul.f32 -1.442695, %v4561_v5 }
0x144b   : > { %4727 = vpow2.f32 %v4238_v23 }
0x1453   : > { %v4726_v33 = vpop.eup %4725 }
0x1454   : > { %2485 = vrot.lane.b32.xlu1 %v4726_v33, %s4868_s17 }
0x1455   : > { %v4728_v3 = vpop.eup %4727 }
0x1456   : > { %v2479_v58 = vadd.f32 1.0, %v4728_v3 }
0x1458   : > { %4729 = vrcp.f32 %v2479_v58 }
0x1462   : > { %v4730_v55 = vpop.eup %4729 }
0x1463   : > { %v2483_v46 = vmul.f32 %v4730_v55, %v5361_v2  ;;  %v5597_v2 = vld [vmem:[%s5993_s7] sm:$0xff]  }
0x14c6   : > { %v2486_v48 = vpop.permute.xlu1 %2485 }
0x14c7   : > { %v2488_v10 = vmul.f32 %v4730_v55, %v2486_v48 }
0x14c9   : > { %2490 = vrot.lane.b32.xlu1 %v2488_v10, %s4869_s18 }
0x153b   : > { %v2491_v21 = vpop.permute.xlu1 %2490 }
0x153c   : > { %v5585_v7 = vadd.f32 %v2491_v21, %v2483_v46 }
0x153e   : > { %4731 = vtanh.f32 %v5585_v7 }
0x1548   : > { %v4732_v41 = vpop.eup %4731 }
0x1549   : > { %2496 = vrot.lane.b32.xlu0 %v4732_v41, %s4868_s17 }
0x15bb   : > { %v2497_v32 = vpop.permute.xlu0 %2496 }
0x15bc   : > { %v2499_v56 = vmul.f32 %v4730_v55, %v2497_v32 }
0x15be   : > { %v2500_v16 = vpack.c.bf16 %v2499_v56, %v2499_v56 }
0x15c0   : > { %2502 = vrot.lane.b32.xlu1 %v2500_v16, %s4869_s18 }
0x1632   : > { %v5590_v59 = vpop.permute.xlu1 %2502 }
0x1633   : > { %4484 = vmatmul.mubr.msk.bf16.vlgmr.msra.gmra.mrb[24].mxu1 %vm609_vm2, %v5590_v59 }
0x1634   : > { %4488 = vmatpush3.bf16.msra.mxu1 %v5597_v2  ;;  %4491 = vmatprep.mubr.msk.bf16.mxu1 %vm4867_vm1, %v6068_v53 }
0x1635   : > { %4489 = vmatprep.subr.bf16.mxu1 %v6068_v53 }
0x1638   : > { %4490 = vmatpush3.bf16.msra.mxu1 %v5606_v47 }
0x1639   : > { %4503 = vmatprep.subr.bf16.mxu1 %v6068_v53 }
0x163b   : > { %4492 = vmatmul.mubr.msk.bf16.vlgmr.msra.gmra.mrb[28].mxu1 %vm609_vm2, %v5590_v59 }
0x163c   : > { %4504 = vmatpush3.bf16.msra.mxu1 %v5615_v18  ;;  %4507 = vmatprep.mubr.msk.bf16.mxu1 %vm4867_vm1, %v6068_v53 }
0x163d   : > { %4505 = vmatprep.subr.bf16.mxu1 %v6068_v53 }
0x1640   : > { %4506 = vmatpush3.bf16.msra.mxu1 %v5624_v44 }
0x1641   : > { %4527 = vmatprep.subr.bf16.mxu1 %v6068_v53 }
0x1643   : > { %4508 = vmatmul.mubr.msk.bf16.vlgmr.msra.gmra.mrb[32].mxu1 %vm609_vm2, %v5537_v0 }
0x1644   : > { %4528 = vmatpush3.bf16.msra.mxu1 %v4836_v17  ;;  %4531 = vmatprep.mubr.msk.bf16.mxu1 %vm4867_vm1, %v6068_v53 }
0x1645   : > { %4529 = vmatprep.subr.bf16.mxu1 %v6068_v53 }
0x1648   : > { %4530 = vmatpush3.bf16.msra.mxu1 %v4837_v1 }
0x1649   : > { %4535 = vmatprep.subr.bf16.mxu1 %v6068_v53 }
0x1706   : > { %v2541_v19 = vpop.f32.mrb[24].mxu1 }
0x1707   : > { %v2542_v0 = vadd.f32 %v5643_v15, %v2541_v19  ;;  %v4485_v39 = vpop.f32.mrb[25].mxu1 }
0x1708   : > { %v2544_v36 = vpop.f32.mrb[26].mxu1 }
0x1709   : > { %v2548_v38 = vcombine.high %v2542_v0, %v2542_v0  ;;  %v2555_v5 = vrot.slane %v2542_v0, %v5076_v45  ;;  %v4486_v24 = vpop.f32.mrb[27].mxu1 }
0x170b   : > { %v2562_v26 = vrot.slane %v2548_v38, %v5076_v45  ;;  %v2563_v62 = vcombine.high %v2555_v5, %v2555_v5  ;;  %v2571_v33 = vrot.slane %v2555_v5, %v5076_v45 }
0x170d   : > { %v2564_v23 = vcombine.high %v2562_v26, %v2562_v26  ;;  %v2578_v3 = vrot.slane %v2562_v26, %v5076_v45  ;;  %v2585_v58 = vrot.slane %v2563_v62, %v5076_v45  ;;  %v2593_v55 = vcombine.high %v2571_v33, %v2571_v33 }
0x170e   : > { %v2600_v48 = vrot.slane %v2571_v33, %v5084_v54  ;;  %v5652_v10 = vpop.f32.mrb[28].mxu1 }
0x170f   : > { %v2592_v46 = vrot.slane %v2564_v23, %v5076_v45  ;;  %v2594_v21 = vcombine.high %v2578_v3, %v2578_v3  ;;  %v2595_v41 = vcombine.high %v2585_v58, %v2585_v58  ;;  %v2604_v32 = vrot.slane %v2585_v58, %v5084_v54  ;;  %v4493_v56 = vpop.f32.mrb[29].mxu1 }
0x1710   : > { %v2608_v16 = vrot.slane %v2593_v55, %v5084_v54  ;;  %v2616_v17 = vrot.slane %v2578_v3, %v5084_v54  ;;  %v2637_v1 = vadd.f32 %v5094_v60, %v2600_v48  ;;  %v3075_v19 = vpop.f32.mrb[30].mxu1  ;;  %v5675_v56 = vld [vmem:[%s5998_s12] ss:$0 sm:$0xff] }
0x1711   : > { %v2596_v0 = vcombine.high %v2592_v46, %v2592_v46  ;;  %v2612_v39 = vrot.slane %v2595_v41, %v5084_v54  ;;  %v2624_v36 = vrot.slane %v2594_v21, %v5084_v54  ;;  %v4494_v38 = vpop.f32.mrb[31].mxu1  ;;  %v2620_v5 = vrot.slane %v2592_v46, %v5084_v54  ;;  %6085 = vst [vmem:[#allocation12_spill] sm:$0xff] %v5675_v56 }
0x1712   : > { %v2638_v24 = vadd.f32 %v5096_v61, %v2604_v32  ;;  %v2639_v26 = vadd.f32 %v5100_v8, %v2608_v16  ;;  %4733 = vtanh.f32 %v2637_v1  ;;  %v2641_v33 = vadd.f32 %v5104_v11, %v2616_v17 }
0x1713   : > { %v2640_v62 = vadd.f32 %v5102_v9, %v2612_v39  ;;  %v2643_v23 = vadd.f32 %v5128_v42, %v2624_v36  ;;  %v2628_v3 = vrot.slane %v2596_v0, %v5084_v54  ;;  %v2642_v58 = vadd.f32 %v5109_v14, %v2620_v5 }
0x1714   : > { %4735 = vtanh.f32 %v2638_v24 }
0x1715   : > { %4737 = vtanh.f32 %v2639_v26  ;;  %v2644_v41 = vadd.f32 %v5123_v34, %v2628_v3 }
0x1716   : > { %4739 = vtanh.f32 %v2640_v62  ;;  %v5669_v55 = vpop.f32.mrb[32].mxu1 }
0x1717   : > { %4741 = vtanh.f32 %v2641_v33  ;;  %v4509_v48 = vpop.f32.mrb[33].mxu1 }
0x1718   : > { %v3182_v46 = vpop.f32.mrb[34].mxu1  ;;  %4743 = vtanh.f32 %v2643_v23 }
0x1719   : > { %v4510_v21 = vpop.f32.mrb[35].mxu1  ;;  %4745 = vtanh.f32 %v2642_v58 }
0x171a   : > { %4747 = vtanh.f32 %v2644_v41 }
0x171c   : > { %v4734_v32 = vpop.eup %4733 }
0x171d   : > { %v2653_v16 = vmul.f32 %v5675_v56, %v4734_v32 }
0x171e   : > { %v4736_v17 = vpop.eup %4735 }
0x171f   : > { %v4738_v1 = vpop.eup %4737  ;;  %v2661_v19 = vsel %vm609_vm2, %v2653_v16, 0.0  ;;  %v2654_v0 = vmul.f32 %v5675_v56, %v4736_v17 }
0x1720   : > { %v4740_v39 = vpop.eup %4739  ;;  %2662 = vadd.xlane.f32.xlu0 %v2661_v19  ;;  %v2655_v36 = vmul.f32 %v5675_v56, %v4738_v1 }
0x1721   : > { %v4742_v38 = vpop.eup %4741  ;;  %v2664_v5 = vsel %vm609_vm2, %v2654_v0, 0.0  ;;  %v2656_v33 = vmul.f32 %v5675_v56, %v4740_v39 }
0x1722   : > { %2665 = vadd.xlane.f32.xlu1 %v2664_v5  ;;  %v2657_v24 = vmul.f32 %v5675_v56, %v4742_v38  ;;  %v4744_v26 = vpop.eup %4743  ;;  %v2667_v62 = vsel %vm609_vm2, %v2655_v36, 0.0 }
0x1723   : > { %v4746_v23 = vpop.eup %4745  ;;  %v2659_v58 = vmul.f32 %v5675_v56, %v4744_v26  ;;  %v2670_v48 = vsel %vm609_vm2, %v2656_v33, 0.0 }
0x1724   : > { %2668 = vadd.xlane.f32.xlu0 %v2667_v62  ;;  %v2673_v3 = vsel %vm609_vm2, %v2657_v24, 0.0  ;;  %v2658_v46 = vmul.f32 %v5675_v56, %v4746_v23  ;;  %v4748_v21 = vpop.eup %4747 }
0x1725   : > { %v2679_v41 = vsel %vm609_vm2, %v2659_v58, 0.0  ;;  %v2660_v16 = vmul.f32 %v5675_v56, %v4748_v21 }
0x1726   : > { %2674 = vadd.xlane.f32.xlu1 %v2673_v3  ;;  %v2676_v32 = vsel %vm609_vm2, %v2658_v46, 0.0 }
0x1727   : > { %v2682_v17 = vsel %vm609_vm2, %v2660_v16, 0.0 }
0x1728   : > { %2671 = vadd.xlane.f32.xlu0 %v2670_v48 }
0x172a   : > { %2680 = vadd.xlane.f32.xlu1 %v2679_v41 }
0x172c   : > { %2677 = vadd.xlane.f32.xlu0 %v2676_v32 }
0x1730   : > { %2683 = vadd.xlane.f32.xlu0 %v2682_v17 }
0x17ad   : > { %v2663_v1 = vpop.xlane.xlu0 %2662 }
0x17ae   : > { %v2696_v36 = vrot.slane %v2663_v1, %v5157_v28 }
0x17af   : > { %v2666_v19 = vpop.xlane.xlu1 %2665 }
0x17b0   : > { %v2700_v0 = vrot.slane %v2666_v19, %v5157_v28 }
0x17b1   : > { %v2669_v39 = vpop.xlane.xlu0 %2668 }
0x17b2   : > { %v2704_v38 = vrot.slane %v2669_v39, %v5157_v28  ;;  %v2725_v5 = vsel %vm998_vm3, %v2700_v0, %v2696_v36 }
0x17b3   : > { %v2675_v24 = vpop.xlane.xlu1 %2674 }
0x17b4   : > { %v2726_v33 = vsel %vm1000_vm4, %v2704_v38, %v2725_v5  ;;  %v2712_v3 = vrot.slane %v2675_v24, %v5157_v28 }
0x17b5   : > { %v2672_v26 = vpop.xlane.xlu0 %2671 }
0x17b6   : > { %v2708_v62 = vrot.slane %v2672_v26, %v5157_v28 }
0x17b7   : > { %v2681_v48 = vpop.xlane.xlu1 %2680 }
0x17b8   : > { %v2727_v23 = vsel %vm1002_vm5, %v2708_v62, %v2726_v33  ;;  %v2720_v32 = vrot.slane %v2681_v48, %v5157_v28 }
0x17b9   : > { %v2678_v58 = vpop.xlane.xlu0 %2677  ;;  %v2728_v21 = vsel %vm1004_vm6, %v2712_v3, %v2727_v23 }
0x17ba   : > { %v2716_v46 = vrot.slane %v2678_v58, %v5157_v28 }
0x17bc   : > { %v2729_v41 = vsel %vm1006_vm7, %v2716_v46, %v2728_v21 }
0x17bd   : > { %v2684_v16 = vpop.xlane.xlu0 %2683  ;;  %v2730_v0 = vsel %vm1008_vm8, %v2720_v32, %v2729_v41 }
0x17be   : > { %v2724_v17 = vrot.slane %v2684_v16, %v5157_v28 }
0x17c0   : > { %v2731_v36 = vsel %vm1010_vm9, %v2724_v17, %v2730_v0 }
0x17c1   : > { %v2733_v38 = vsel %vm1013_vm10, %v2731_v36, -inf }
0x17c2   : > { %2734 = vmax.xlane.f32.xlu1 %v2733_v38 }
0x184f   : > { %v2735_v5 = vpop.xlane.xlu1 %2734 }
0x1850   : > { %v2740_v62 = vrot.slane %v2735_v5, %v5084_v54  ;;  %v2744_v33 = vrot.slane %v2735_v5, %v6070_v22  ;;  %v2748_v23 = vrot.slane %v2735_v5, %v6071_v43  ;;  %v2752_v3 = vrot.slane %v2735_v5, %v6073_v40 }
0x1851   : > { %v2760_v46 = vrot.slane %v2735_v5, %v6075_v51  ;;  %v2756_v41 = vrot.slane %v2735_v5, %v6072_v30  ;;  %v2768_v36 = vrot.slane %v2735_v5, %v6076_v37  ;;  %v2764_v14 = vrot.slane %v2735_v5, %v6074_v13 }
0x1852   : > { %v2777_v21 = vsub.f32 %v2663_v1, %v2740_v62  ;;  %v2778_v6 = vsub.f32 %v2666_v19, %v2744_v33  ;;  %v2780_v56 = vsub.f32 %v2672_v26, %v2752_v3  ;;  %v2779_v32 = vsub.f32 %v2669_v39, %v2748_v23 }
0x1853   : > { %v2782_v38 = vsub.f32 %v2678_v58, %v2760_v46  ;;  %v2781_v42 = vsub.f32 %v2675_v24, %v2756_v41  ;;  %v2784_v11 = vsub.f32 %v2684_v16, %v2768_v36  ;;  %v2783_v19 = vsub.f32 %v2681_v48, %v2764_v14 }
0x1854   : > { %v2785_v17 = vmul.f32 1.442695, %v2777_v21  ;;  %v2787_v0 = vmul.f32 1.442695, %v2778_v6  ;;  %v2791_v34 = vmul.f32 1.442695, %v2780_v56 }
0x1855   : > { %v2789_v9 = vmul.f32 1.442695, %v2779_v32  ;;  %v2795_v1 = vmul.f32 1.442695, %v2782_v38  ;;  %v2793_v26 = vmul.f32 1.442695, %v2781_v42 }
0x1856   : > { %4749 = vpow2.f32 %v2785_v17  ;;  %v2799_v39 = vmul.f32 1.442695, %v2784_v11  ;;  %v2797_v6 = vmul.f32 1.442695, %v2783_v19 }
0x1857   : > { %4751 = vpow2.f32 %v2787_v0 }
0x1858   : > { %4753 = vpow2.f32 %v2791_v34 }
0x1859   : > { %4755 = vpow2.f32 %v2789_v9 }
0x185a   : > { %4757 = vpow2.f32 %v2795_v1 }
0x185b   : > { %4759 = vpow2.f32 %v2793_v26 }
0x185c   : > { %4761 = vpow2.f32 %v2799_v39 }
0x185d   : > { %4763 = vpow2.f32 %v2797_v6 }
0x1860   : > { %v4750_v62 = vpop.eup %4749 }
0x1861   : > { %v4752_v33 = vpop.eup %4751  ;;  %2810 = vperm.xlu0 %4612, %v4750_v62  }
0x1862   : > { %2813 = vperm.xlu1 %4611, %v4752_v33   ;;  %v4754_v56 = vpop.eup %4753 }
0x1863   : > { %v4756_v24 = vpop.eup %4755 }
0x1864   : > { %v4758_v58 = vpop.eup %4757 }
0x1865   : > { %2819 = vperm.xlu0 %4612, %v4754_v56   ;;  %v4760_v34 = vpop.eup %4759 }
0x1866   : > { %2816 = vperm.xlu1 %4611, %v4756_v24   ;;  %v4762_v9 = vpop.eup %4761 }
0x1867   : > { %v4764_v14 = vpop.eup %4763 }
0x1869   : > { %2825 = vperm.xlu0 %4612, %v4758_v58  }
0x186a   : > { %2822 = vperm.xlu1 %4611, %v4760_v34  }
0x186d   : > { %2831 = vperm.xlu0 %4612, %v4762_v9  }
0x186e   : > { %2828 = vperm.xlu1 %4611, %v4764_v14  }
0x18e0   : > { %v2811_v11 = vpop.permute.xlu0 %2810 }
0x18e1   : > { %v2814_v42 = vpop.permute.xlu1 %2813  ;;  %v2836_v16 = vrot.slane %v2811_v11, %v5157_v28 }
0x18e2   : > { %v2840_v48 = vrot.slane %v2814_v42, %v5157_v28 }
0x18e4   : > { %v2820_v5 = vpop.permute.xlu0 %2819  ;;  %v2865_v46 = vsel %vm998_vm3, %v2840_v48, %v2836_v16 }
0x18e5   : > { %v2817_v23 = vpop.permute.xlu1 %2816  ;;  %v2848_v21 = vrot.slane %v2820_v5, %v5157_v28 }
0x18e6   : > { %v2844_v3 = vrot.slane %v2817_v23, %v5157_v28 }
0x18e8   : > { %v2866_v41 = vsel %vm1000_vm4, %v2844_v3, %v2865_v46  ;;  %v2826_v32 = vpop.permute.xlu0 %2825 }
0x18e9   : > { %v2823_v17 = vpop.permute.xlu1 %2822  ;;  %v2867_v36 = vsel %vm1002_vm5, %v2848_v21, %v2866_v41  ;;  %v2856_v38 = vrot.slane %v2826_v32, %v5157_v28 }
0x18ea   : > { %v2852_v0 = vrot.slane %v2823_v17, %v5157_v28 }
0x18ec   : > { %v2868_v1 = vsel %vm1004_vm6, %v2852_v0, %v2867_v36  ;;  %v2832_v19 = vpop.permute.xlu0 %2831 }
0x18ed   : > { %v2829_v26 = vpop.permute.xlu1 %2828  ;;  %v2864_v39 = vrot.slane %v2832_v19, %v5157_v28  ;;  %v2869_v11 = vsel %vm1006_vm7, %v2856_v38, %v2868_v1 }
0x18ee   : > { %v2860_v6 = vrot.slane %v2829_v26, %v5157_v28 }
0x18f0   : > { %v2870_v42 = vsel %vm1008_vm8, %v2860_v6, %v2869_v11 }
0x18f1   : > { %v2871_v48 = vsel %vm1010_vm9, %v2864_v39, %v2870_v42 }
0x18f2   : > { %v2873_v16 = vsel %vm1013_vm10, %v2871_v48, 0.0 }
0x18f3   : > { %2874 = vadd.xlane.f32.xlu1 %v2873_v16 }
0x1980   : > { %v2875_v5 = vpop.xlane.xlu1 %2874 }
0x1981   : > { %4765 = vrcp.f32 %v2875_v5 }
0x198b   : > { %v4766_v23 = vpop.eup %4765 }
0x198c   : > { %v2881_v3 = vrot.slane %v4766_v23, %v5084_v54  ;;  %v2885_v21 = vrot.slane %v4766_v23, %v6070_v22  ;;  %v2889_v32 = vrot.slane %v4766_v23, %v6071_v43  ;;  %v2893_v0 = vrot.slane %v4766_v23, %v6073_v40 }
0x198d   : > { %v2897_v38 = vrot.slane %v4766_v23, %v6072_v30  ;;  %v2901_v19 = vrot.slane %v4766_v23, %v6075_v51  ;;  %v2905_v26 = vrot.slane %v4766_v23, %v6074_v13  ;;  %v2909_v39 = vrot.slane %v4766_v23, %v6076_v37 }
0x198e   : > { %v2918_v46 = vmul.f32 %v4750_v62, %v2881_v3  ;;  %v2919_v41 = vmul.f32 %v4752_v33, %v2885_v21  ;;  %v2920_v17 = vmul.f32 %v4756_v24, %v2889_v32  ;;  %v2921_v36 = vmul.f32 %v4754_v56, %v2893_v0 }
0x198f   : > { %v2922_v1 = vmul.f32 %v4760_v34, %v2897_v38  ;;  %v2923_v62 = vmul.f32 %v4758_v58, %v2901_v19  ;;  %v2924_v33 = vmul.f32 %v4764_v14, %v2905_v26  ;;  %v2925_v24 = vmul.f32 %v4762_v9, %v2909_v39  ;;  %v6086_v38 = vld [vmem:[#allocation22_spill] sm:$0xff] }
0x1990   : > { %2928 = vperm.xlu0 %4612, %v2918_v46  }
0x1994   : > { %2933 = vperm.xlu0 %4612, %v2919_v41  }
0x1998   : > { %2938 = vperm.xlu0 %4612, %v2920_v17  }
0x199c   : > { %2943 = vperm.xlu0 %4612, %v2921_v36  }
0x19a0   : > { %2948 = vperm.xlu0 %4612, %v2922_v1  }
0x19a4   : > { %2953 = vperm.xlu0 %4612, %v2923_v62  }
0x19a8   : > { %2958 = vperm.xlu0 %4612, %v2924_v33  }
0x19ac   : > { %2963 = vperm.xlu0 %4612, %v2925_v24  }
0x1a0f   : > { %v2929_v6 = vpop.permute.xlu0 %2928 }
0x1a10   : > { %v2966_v56 = vmul.f32 %v6077_v31, %v2929_v6 }
0x1a12   : > { %v2974_v58 = vsel %vm609_vm2, %v2966_v56, 0.0  ;;  %v6087_v56 = vld [vmem:[#allocation23_spill] sm:$0xff] }
0x1a13   : > { %v2934_v11 = vpop.permute.xlu0 %2933  ;;  %v2975_v23 = vrot.slane %v2974_v58, 4 }
0x1a14   : > { %v2967_v42 = vmul.f32 %v6078_v4, %v2934_v11 }
0x1a15   : > { %v2976_v17 = vadd.f32 %v2975_v23, %v2974_v58 }
0x1a16   : > { %v2981_v34 = vsel %vm609_vm2, %v2967_v42, 0.0 }
0x1a17   : > { %v2939_v48 = vpop.permute.xlu0 %2938  ;;  %v2982_v5 = vrot.slane %v2981_v34, 4  ;;  %v2977_v39 = vrot.slane %v2976_v17, 2 }
0x1a18   : > { %v2968_v16 = vmul.f32 %v6079_v27, %v2939_v48 }
0x1a19   : > { %v2983_v21 = vadd.f32 %v2982_v5, %v2981_v34  ;;  %v2978_v5 = vadd.f32 %v2977_v39, %v2976_v17 }
0x1a1a   : > { %v2988_v14 = vsel %vm609_vm2, %v2968_v16, 0.0 }
0x1a1b   : > { %v2989_v3 = vrot.slane %v2988_v14, 4  ;;  %v2944_v9 = vpop.permute.xlu0 %2943  ;;  %v2984_v19 = vrot.slane %v2983_v21, 2 }
0x1a1c   : > { %v2969_v46 = vmul.f32 %v6080_v49, %v2944_v9  ;;  %v2979_v49 = vrot.slane %v2978_v5, 1 }
0x1a1d   : > { %v2990_v41 = vadd.f32 %v2989_v3, %v2988_v14  ;;  %v2985_v34 = vadd.f32 %v2984_v19, %v2983_v21 }
0x1a1e   : > { %v2995_v32 = vsel %vm609_vm2, %v2969_v46, 0.0 }
0x1a1f   : > { %v2996_v0 = vrot.slane %v2995_v32, 4  ;;  %v2949_v36 = vpop.permute.xlu0 %2948  ;;  %v2991_v26 = vrot.slane %v2990_v41, 2 }
0x1a20   : > { %v2970_v1 = vmul.f32 %v6086_v38, %v2949_v36 }
0x1a21   : > { %v2997_v62 = vadd.f32 %v2996_v0, %v2995_v32  ;;  %v2992_v16 = vadd.f32 %v2991_v26, %v2990_v41  ;;  %v2986_v32 = vrot.slane %v2985_v34, 1 }
0x1a22   : > { %v3002_v33 = vsel %vm609_vm2, %v2970_v1, 0.0 }
0x1a23   : > { %v2998_v24 = vrot.slane %v2997_v62, 2  ;;  %v3003_v6 = vrot.slane %v3002_v33, 4  ;;  %v2954_v11 = vpop.permute.xlu0 %2953  ;;  %v2993_v36 = vrot.slane %v2992_v16, 1 }
0x1a24   : > { %v2971_v42 = vmul.f32 %v6087_v56, %v2954_v11 }
0x1a25   : > { %v3004_v48 = vadd.f32 %v3003_v6, %v3002_v33  ;;  %v2999_v14 = vadd.f32 %v2998_v24, %v2997_v62  ;;  %v6088_v33 = vld [vmem:[#allocation25_spill] sm:$0xff]  ;;  %v2987_v62 = vadd.f32 %v2986_v32, %v2985_v34  ;;  %v2994_v24 = vadd.f32 %v2993_v36, %v2992_v16 }
0x1a26   : > { %v3009_v58 = vsel %vm609_vm2, %v2971_v42, 0.0 }
0x1a27   : > { %v3005_v23 = vrot.slane %v3004_v48, 2  ;;  %v2959_v3 = vpop.permute.xlu0 %2958  ;;  %v3010_v9 = vrot.slane %v3009_v58, 4  ;;  %v3000_v11 = vrot.slane %v2999_v14, 1  ;;  %v3032_v4 = vpack.c.bf16 %v2994_v24, %v2994_v24 }
0x1a28   : > { %v2972_v46 = vmul.f32 %v6083_v52, %v2959_v3  ;;  %v2980_v3 = vadd.f32 %v2979_v49, %v2978_v5  ;;  %v3031_v52 = vpack.c.bf16 %v2987_v62, %v2987_v62 }
0x1a29   : > { %v3006_v0 = vadd.f32 %v3005_v23, %v3004_v48  ;;  %v3011_v1 = vadd.f32 %v3010_v9, %v3009_v58  ;;  %v3001_v48 = vadd.f32 %v3000_v11, %v2999_v14  ;;  %v3088_v49 = vunpack.c.l.b16 %v3032_v4 }
0x1a2a   : > { %v3016_v38 = vsel %vm609_vm2, %v2972_v46, 0.0  ;;  %v3030_v37 = vpack.c.bf16 %v2980_v3, %v2980_v3  ;;  %v3087_v16 = vunpack.c.l.b16 %v3031_v52 }
0x1a2b   : > { %v3017_v21 = vrot.slane %v3016_v38, 4  ;;  %v2964_v19 = vpop.permute.xlu0 %2963  ;;  %v3007_v41 = vrot.slane %v3006_v0, 1  ;;  %v3012_v26 = vrot.slane %v3011_v1, 2  ;;  %v3033_v51 = vpack.c.bf16 %v3001_v48, %v3001_v48 }
0x1a2c   : > { %v2973_v17 = vmul.f32 %v6088_v33, %v2964_v19  ;;  %v3086_v5 = vunpack.c.l.b16 %v3030_v37 }
0x1a2d   : > { %v3018_v39 = vadd.f32 %v3017_v21, %v3016_v38  ;;  %v3013_v6 = vadd.f32 %v3012_v26, %v3011_v1  ;;  %v3008_v9 = vadd.f32 %v3007_v41, %v3006_v0  ;;  %v3089_v14 = vunpack.c.l.b16 %v3033_v51 }
0x1a2e   : > { %v3023_v42 = vsel %vm609_vm2, %v2973_v17, 0.0  ;;  %v3094_v41 = vsel %vm998_vm3, %v3087_v16, %v3086_v5 }
0x1a2f   : > { %v3019_v23 = vrot.slane %v3018_v39, 2  ;;  %v3024_v58 = vrot.slane %v3023_v42, 4  ;;  %v3014_v46 = vrot.slane %v3013_v6, 1  ;;  %v3034_v38 = vpack.c.bf16 %v3008_v9, %v3008_v9 }
0x1a30   : > { %v3095_v62 = vsel %vm1000_vm4, %v3088_v49, %v3094_v41 }
0x1a31   : > { %v3020_v56 = vadd.f32 %v3019_v23, %v3018_v39  ;;  %v3025_v27 = vadd.f32 %v3024_v58, %v3023_v42  ;;  %v3015_v31 = vadd.f32 %v3014_v46, %v3013_v6  ;;  %v3090_v21 = vunpack.c.l.b16 %v3034_v38 }
0x1a32   : > { %v3096_v24 = vsel %vm1002_vm5, %v3089_v14, %v3095_v62 }
0x1a33   : > { %v3021_v19 = vrot.slane %v3020_v56, 1  ;;  %v3026_v34 = vrot.slane %v3025_v27, 2  ;;  %v3035_v32 = vpack.c.bf16 %v3015_v31, %v3015_v31  ;;  %v3097_v31 = vsel %vm1004_vm6, %v3090_v21, %v3096_v24 }
0x1a35   : > { %v3022_v36 = vadd.f32 %v3021_v19, %v3020_v56  ;;  %v3027_v1 = vadd.f32 %v3026_v34, %v3025_v27  ;;  %v3091_v26 = vunpack.c.l.b16 %v3035_v32 }
0x1a37   : > { %v3036_v11 = vpack.c.bf16 %v3022_v36, %v3022_v36  ;;  %v3028_v0 = vrot.slane %v3027_v1, 1  ;;  %v3098_v27 = vsel %vm1006_vm7, %v3091_v26, %v3097_v31 }
0x1a39   : > { %v3029_v17 = vadd.f32 %v3028_v0, %v3027_v1  ;;  %v3092_v39 = vunpack.c.l.b16 %v3036_v11 }
0x1a3b   : > { %v3037_v6 = vpack.c.bf16 %v3029_v17, %v3029_v17  ;;  %v3099_v51 = vsel %vm1008_vm8, %v3092_v39, %v3098_v27 }
0x1a3d   : > { %v3093_v4 = vunpack.c.l.b16 %v3037_v6 }
0x1a3f   : > { %v3100_v37 = vsel %vm1010_vm9, %v3093_v4, %v3099_v51 }
0x1a40   : > { %v3101_v52 = vpack.c.b16 %v3100_v37, %v3100_v37 }
0x1a42   : > { %4500 = vmatmul.mubr.msk.bf16.vlgmr.msra.gmra.mrb[20].mxu0 %vm609_vm2, %v3101_v52 }
0x1a43   : > { %4512 = vmatpush3.bf16.msra.mxu0 %v5509_v57  ;;  %4515 = vmatprep.mubr.msk.bf16.mxu0 %vm4867_vm1, %v6068_v53  ;;  %v5776_v57 = vld [vmem:[%s5995_s9] ss:$0 sm:$0xff] }
0x1a44   : > { %4513 = vmatprep.subr.bf16.mxu0 %v6068_v53 }
0x1a47   : > { %4514 = vmatpush3.bf16.msra.mxu0 %v5518_v20 }
0x1a48   : > { %4519 = vmatprep.subr.bf16.mxu0 %v6068_v53 }
0x1b15   : > { %v3139_v56 = vpop.f32.mrb[20].mxu0 }
0x1b16   : > { %v3140_v42 = vadd.f32 %v3139_v56, %v5652_v10  ;;  %v4501_v3 = vpop.f32.mrb[21].mxu0 }
0x1b17   : > { %v3142_v48 = vpop.f32.mrb[22].mxu0 }
0x1b18   : > { %v3185_v23 = vadd.f32 %v5669_v55, %v3140_v42  ;;  %v4502_v58 = vpop.f32.mrb[23].mxu0 }
0x1b1a   : > { %v3186_v9 = vadd.f32 %v5776_v57, %v3185_v23 }
0x1b1c   : > { %4767 = vtanh.f32 %v3186_v9  ;;  %v4243_v20 = vmul.f32 -1.442695, %v3186_v9 }
0x1b1e   : > { %4769 = vpow2.f32 %v4243_v20 }
0x1b26   : > { %v4768_v46 = vpop.eup %4767 }
0x1b27   : > { %3196 = vrot.lane.b32.xlu0 %v4768_v46, %s4868_s17 }
0x1b28   : > { %v4770_v19 = vpop.eup %4769 }
0x1b29   : > { %v3190_v10 = vadd.f32 1.0, %v4770_v19 }
0x1b2b   : > { %4771 = vrcp.f32 %v3190_v10 }
0x1b35   : > { %v4772_v34 = vpop.eup %4771 }
0x1b36   : > { %v3194_v16 = vmul.f32 %v4772_v34, %v5528_v50  ;;  %v4245_v50 = vld [vmem:[%s4964_s16 + $0x18] sm:$0xff]  ;;  %s4872_s16 = smov 96  }
0x1b99   : > { %v3197_v38 = vpop.permute.xlu0 %3196 }
0x1b9a   : > { %v3199_v55 = vmul.f32 %v4772_v34, %v3197_v38 }
0x1b9c   : > { %3201 = vrot.lane.b32.xlu1 %v3199_v55, %s4869_s18 }
0x1c0e   : > { %v3202_v32 = vpop.permute.xlu1 %3201 }
0x1c0f   : > { %v5782_v36 = vadd.f32 %v3202_v32, %v3194_v16 }
0x1c11   : > { %4773 = vtanh.f32 %v5782_v36 }
0x1c1b   : > { %v4774_v1 = vpop.eup %4773 }
0x1c1c   : > { %3207 = vrot.lane.b32.xlu0 %v4774_v1, %s4868_s17 }
0x1c8e   : > { %v3208_v49 = vpop.permute.xlu0 %3207 }
0x1c8f   : > { %v5786_v5 = vmul.f32 %v4772_v34, %v3208_v49 }
0x1c91   : > { %v3220_v14 = vpack.c.bf16 %v5786_v5, %v5786_v5 }
0x1c93   : > { %3222 = vrot.lane.b32.xlu0 %v3220_v14, %s4869_s18 }
0x1d05   : > { %v3223_v11 = vpop.permute.xlu0 %3222 }
0x1d06   : > { %4516 = vmatmul.mubr.msk.bf16.vlgmr.msra.gmra.mrb[24].mxu0 %vm609_vm2, %v3223_v11 }
0x1d07   : > { %4520 = vmatpush3.bf16.msra.mxu0 %v5544_v63  ;;  %4523 = vmatprep.mubr.msk.bf16.mxu0 %vm4867_vm1, %v6068_v53  ;;  %v3219_v63 = vadd.f32 %v5579_v29, %v4245_v50 }
0x1d08   : > { %4521 = vmatprep.subr.bf16.mxu0 %v6068_v53 }
0x1d0b   : > { %4522 = vmatpush3.bf16.msra.mxu0 %v5553_v25 }
0x1d0c   : > { %4543 = vmatprep.subr.bf16.mxu0 %v6068_v53 }
0x1d12   : > { %4524 = vmatmul.mubr.msk.bf16.vlgmr.msra.gmra.mrb[24].mxu0 %vm609_vm2, %v5590_v59 }
0x1d13   : > { %4544 = vmatpush3.bf16.msra.mxu0 %v5562_v35  ;;  %4547 = vmatprep.mubr.msk.bf16.mxu0 %vm4867_vm1, %v6068_v53 }
0x1d14   : > { %4545 = vmatprep.subr.bf16.mxu0 %v6068_v53 }
0x1d17   : > { %4546 = vmatpush3.bf16.msra.mxu0 %v5571_v12 }
0x1de5   : > { %v3302_v0 = vpop.f32.mrb[24].mxu0 }
0x1de6   : > { %v4562_v21 = vadd.f32 %v3302_v0, %v3219_v63  ;;  %v4525_v25 = vpop.f32.mrb[25].mxu0 }
0x1de7   : > { %v3305_v41 = vpop.f32.mrb[26].mxu0 }
0x1de8   : > { %4775 = vtanh.f32 %v4562_v21  ;;  %v4526_v26 = vpop.f32.mrb[27].mxu0  ;;  %v4248_v35 = vmul.f32 -1.442695, %v4562_v21  ;;  %v6089_v21 = vld [vmem:[#allocation7_spill] sm:$0xff] }
0x1de9   : > { %v6090_v26 = vld [vmem:[#allocation6_spill] sm:$0xff] }
0x1dea   : > { %4777 = vpow2.f32 %v4248_v35 }
0x1df2   : > { %v4776_v17 = vpop.eup %4775 }
0x1df3   : > { %3318 = vrot.lane.b32.xlu0 %v4776_v17, %s4868_s17 }
0x1df4   : > { %v4778_v59 = vpop.eup %4777 }
0x1df5   : > { %v3312_v62 = vadd.f32 1.0, %v4778_v59 }
0x1df7   : > { %4779 = vrcp.f32 %v3312_v62 }
0x1e01   : > { %v4780_v39 = vpop.eup %4779 }
0x1e02   : > { %v3316_v29 = vmul.f32 %v4780_v39, %v5585_v7 }
0x1e65   : > { %v3319_v24 = vpop.permute.xlu0 %3318 }
0x1e66   : > { %v3321_v12 = vmul.f32 %v4780_v39, %v3319_v24 }
0x1e68   : > { %3323 = vrot.lane.b32.xlu0 %v3321_v12, %s4869_s18 }
0x1eda   : > { %v3324_v6 = vpop.permute.xlu0 %3323 }
0x1edb   : > { %v5810_v31 = vadd.f32 %v3324_v6, %v3316_v29  ;;  %v6093_v6 = vld [vmem:[#allocation9_spill] sm:$0xff] }
0x1edd   : > { %4781 = vtanh.f32 %v5810_v31 }
0x1ee7   : > { %v4782_v27 = vpop.eup %4781 }
0x1ee8   : > { %3329 = vrot.lane.b32.xlu1 %v4782_v27, %s4868_s17 }
0x1f5a   : > { %v3330_v4 = vpop.permute.xlu1 %3329 }
0x1f5b   : > { %v5814_v51 = vmul.f32 %v4780_v39, %v3330_v4  ;;  %v6092_v39 = vld [vmem:[#allocation8_spill] sm:$0xff] }
0x1f5c   : > { %v6094_v4 = vld [vmem:[#allocation12_spill] sm:$0xff] }
0x1f5d   : > { %v3333_v37 = vpack.c.bf16 %v5814_v51, %v5814_v51 }
0x1f5f   : > { %3335 = vrot.lane.b32.xlu0 %v3333_v37, %s4869_s18 }
0x1fd1   : > { %v3336_v52 = vpop.permute.xlu0 %3335 }
0x1fd2   : > { %4532 = vmatmul.mubr.msk.bf16.vlgmr.msra.gmra.mrb[36].mxu1 %vm609_vm2, %v3336_v52 }
0x1fd3   : > { %4536 = vmatpush3.bf16.msra.mxu1 %v5597_v2  ;;  %4539 = vmatprep.mubr.msk.bf16.mxu1 %vm4867_vm1, %v6068_v53 }
0x1fd4   : > { %4537 = vmatprep.subr.bf16.mxu1 %v6068_v53 }
0x1fd7   : > { %4538 = vmatpush3.bf16.msra.mxu1 %v5606_v47 }
0x1fd8   : > { %4551 = vmatprep.subr.bf16.mxu1 %v6068_v53 }
0x1fda   : > { %4540 = vmatmul.mubr.msk.bf16.vlgmr.msra.gmra.mrb[40].mxu1 %vm609_vm2, %v3336_v52 }
0x1fdb   : > { %4552 = vmatpush3.bf16.msra.mxu1 %v5615_v18  ;;  %4555 = vmatprep.mubr.msk.bf16.mxu1 %vm4867_vm1, %v6068_v53 }
0x1fdc   : > { %4553 = vmatprep.subr.bf16.mxu1 %v6068_v53 }
0x1fdf   : > { %4554 = vmatpush3.bf16.msra.mxu1 %v5624_v44 }
0x1fe2   : > { %4556 = vmatmul.mubr.msk.bf16.vlgmr.msra.gmra.mrb[44].mxu1 %vm609_vm2, %v3223_v11 }
0x20a5   : > { %v3374_v7 = vpop.f32.mrb[36].mxu1 }
0x20a6   : > { %v3375_v2 = vadd.f32 %v5643_v15, %v3374_v7  ;;  %v4533_v56 = vpop.f32.mrb[37].mxu1 }
0x20a7   : > { %v3377_v47 = vpop.f32.mrb[38].mxu1 }
0x20a8   : > { %v3381_v42 = vcombine.high %v3375_v2, %v3375_v2  ;;  %v3388_v3 = vrot.slane %v3375_v2, %v5076_v45  ;;  %v4534_v48 = vpop.f32.mrb[39].mxu1 }
0x20aa   : > { %v3395_v18 = vrot.slane %v3381_v42, %v5076_v45  ;;  %v3396_v23 = vcombine.high %v3388_v3, %v3388_v3  ;;  %v3404_v58 = vrot.slane %v3388_v3, %v5076_v45 }
0x20ac   : > { %v3397_v9 = vcombine.high %v3395_v18, %v3395_v18  ;;  %v3411_v53 = vrot.slane %v3395_v18, %v5076_v45  ;;  %v3418_v44 = vrot.slane %v3396_v23, %v5076_v45  ;;  %v3426_v46 = vcombine.high %v3404_v58, %v3404_v58 }
0x20ad   : > { %v3433_v20 = vrot.slane %v3404_v58, %v5084_v54  ;;  %v5840_v15 = vpop.f32.mrb[40].mxu1 }
0x20ae   : > { %v3427_v19 = vcombine.high %v3411_v53, %v3411_v53  ;;  %v3428_v10 = vcombine.high %v3418_v44, %v3418_v44  ;;  %v3437_v34 = vrot.slane %v3418_v44, %v5084_v54  ;;  %v4541_v38 = vpop.f32.mrb[41].mxu1  ;;  %v3425_v55 = vrot.slane %v3397_v9, %v5076_v45 }
0x20af   : > { %v3441_v16 = vrot.slane %v3426_v46, %v5084_v54  ;;  %v3449_v32 = vrot.slane %v3411_v53, %v5084_v54  ;;  %v3470_v1 = vadd.f32 %v5094_v60, %v3433_v20  ;;  %v3908_v49 = vpop.f32.mrb[42].mxu1  ;;  %v6091_v60 = vld [vmem:[#allocation10_spill] sm:$0xff] }
0x20b0   : > { %v3445_v14 = vrot.slane %v3428_v10, %v5084_v54  ;;  %v3457_v11 = vrot.slane %v3427_v19, %v5084_v54  ;;  %v4542_v50 = vpop.f32.mrb[43].mxu1  ;;  %v3471_v63 = vadd.f32 %v5096_v61, %v3437_v34  ;;  %v3429_v45 = vcombine.high %v3425_v55, %v3425_v55 }
0x20b1   : > { %v3472_v0 = vadd.f32 %v5100_v8, %v3441_v16  ;;  %4783 = vtanh.f32 %v3470_v1  ;;  %v3474_v25 = vadd.f32 %v6089_v21, %v3449_v32  ;;  %v3453_v41 = vrot.slane %v3425_v55, %v5084_v54 }
0x20b2   : > { %v3473_v17 = vadd.f32 %v6090_v26, %v3445_v14  ;;  %4785 = vtanh.f32 %v3471_v63  ;;  %v3476_v35 = vadd.f32 %v6091_v60, %v3457_v11  ;;  %v3461_v61 = vrot.slane %v3429_v45, %v5084_v54 }
0x20b3   : > { %4787 = vtanh.f32 %v3472_v0  ;;  %v3475_v8 = vadd.f32 %v6092_v39, %v3453_v41 }
0x20b4   : > { %4789 = vtanh.f32 %v3474_v25  ;;  %v3477_v27 = vadd.f32 %v6093_v6, %v3461_v61 }
0x20b5   : > { %v5855_v59 = vpop.f32.mrb[44].mxu1  ;;  %4791 = vtanh.f32 %v3473_v17 }
0x20b6   : > { %v4557_v62 = vpop.f32.mrb[45].mxu1  ;;  %4793 = vtanh.f32 %v3476_v35 }
0x20b7   : > { %v4015_v24 = vpop.f32.mrb[46].mxu1  ;;  %4795 = vtanh.f32 %v3475_v8 }
0x20b8   : > { %v4558_v12 = vpop.f32.mrb[47].mxu1  ;;  %4797 = vtanh.f32 %v3477_v27 }
0x20bb   : > { %v4784_v29 = vpop.eup %4783 }
0x20bc   : > { %v3486_v37 = vmul.f32 %v6094_v4, %v4784_v29  ;;  %v4786_v52 = vpop.eup %4785 }
0x20bd   : > { %v4788_v7 = vpop.eup %4787  ;;  %v3487_v56 = vmul.f32 %v6094_v4, %v4786_v52 }
0x20be   : > { %v3494_v2 = vsel %vm609_vm2, %v3486_v37, 0.0  ;;  %v4790_v47 = vpop.eup %4789  ;;  %v3488_v3 = vmul.f32 %v6094_v4, %v4788_v7 }
0x20bf   : > { %3495 = vadd.xlane.f32.xlu1 %v3494_v2  ;;  %v3497_v42 = vsel %vm609_vm2, %v3487_v56, 0.0  ;;  %v4792_v48 = vpop.eup %4791  ;;  %v3490_v18 = vmul.f32 %v6094_v4, %v4790_v47 }
0x20c0   : > { %3498 = vadd.xlane.f32.xlu0 %v3497_v42  ;;  %v4794_v23 = vpop.eup %4793  ;;  %v3500_v53 = vsel %vm609_vm2, %v3488_v3, 0.0  ;;  %v3489_v44 = vmul.f32 %v6094_v4, %v4792_v48 }
0x20c1   : > { %v3506_v58 = vsel %vm609_vm2, %v3490_v18, 0.0  ;;  %v3492_v9 = vmul.f32 %v6094_v4, %v4794_v23  ;;  %v4796_v46 = vpop.eup %4795 }
0x20c2   : > { %v3503_v19 = vsel %vm609_vm2, %v3489_v44, 0.0  ;;  %v3491_v10 = vmul.f32 %v6094_v4, %v4796_v46  ;;  %v4798_v34 = vpop.eup %4797 }
0x20c3   : > { %3507 = vadd.xlane.f32.xlu1 %v3506_v58  ;;  %v3512_v20 = vsel %vm609_vm2, %v3492_v9, 0.0  ;;  %v3493_v55 = vmul.f32 %v6094_v4, %v4798_v34 }
0x20c4   : > { %3501 = vadd.xlane.f32.xlu0 %v3500_v53  ;;  %v3509_v38 = vsel %vm609_vm2, %v3491_v10, 0.0  ;;  %v6095_v53 = vld [vmem:[#allocation15_spill] sm:$0xff]  ;;  %v6096_v10 = vld [vmem:[#allocation17_spill] sm:$0xff] }
0x20c5   : > { %v3515_v16 = vsel %vm609_vm2, %v3493_v55, 0.0 }
0x20c7   : > { %3513 = vadd.xlane.f32.xlu1 %v3512_v20 }
0x20c8   : > { %3504 = vadd.xlane.f32.xlu0 %v3503_v19 }
0x20cc   : > { %3510 = vadd.xlane.f32.xlu0 %v3509_v38 }
0x20d0   : > { %3516 = vadd.xlane.f32.xlu0 %v3515_v16 }
0x214c   : > { %v3496_v1 = vpop.xlane.xlu1 %3495 }
0x214d   : > { %v3499_v32 = vpop.xlane.xlu0 %3498  ;;  %v3529_v50 = vrot.slane %v3496_v1, %v5157_v28 }
0x214e   : > { %v3533_v14 = vrot.slane %v3499_v32, %v5157_v28 }
0x2150   : > { %v3508_v63 = vpop.xlane.xlu1 %3507  ;;  %v3558_v21 = vsel %vm998_vm3, %v3533_v14, %v3529_v50 }
0x2151   : > { %v3502_v49 = vpop.xlane.xlu0 %3501  ;;  %v3545_v26 = vrot.slane %v3508_v63, %v5157_v28 }
0x2152   : > { %v3537_v11 = vrot.slane %v3502_v49, %v5157_v28 }
0x2154   : > { %v3559_v45 = vsel %vm1000_vm4, %v3537_v11, %v3558_v21  ;;  %v3514_v60 = vpop.xlane.xlu1 %3513 }
0x2155   : > { %v3505_v0 = vpop.xlane.xlu0 %3504  ;;  %v3553_v39 = vrot.slane %v3514_v60, %v5157_v28 }
0x2156   : > { %v3541_v25 = vrot.slane %v3505_v0, %v5157_v28 }
0x2158   : > { %v3560_v41 = vsel %vm1002_vm5, %v3541_v25, %v3559_v45 }
0x2159   : > { %v3511_v17 = vpop.xlane.xlu0 %3510  ;;  %v3561_v62 = vsel %vm1004_vm6, %v3545_v26, %v3560_v41 }
0x215a   : > { %v3549_v35 = vrot.slane %v3511_v17, %v5157_v28 }
0x215c   : > { %v3562_v61 = vsel %vm1006_vm7, %v3549_v35, %v3561_v62 }
0x215d   : > { %v3517_v8 = vpop.xlane.xlu0 %3516  ;;  %v3563_v12 = vsel %vm1008_vm8, %v3553_v39, %v3562_v61 }
0x215e   : > { %v3557_v24 = vrot.slane %v3517_v8, %v5157_v28 }
0x2160   : > { %v3564_v29 = vsel %vm1010_vm9, %v3557_v24, %v3563_v12 }
0x2161   : > { %v3566_v6 = vsel %vm1013_vm10, %v3564_v29, -inf }
0x2162   : > { %3567 = vmax.xlane.f32.xlu1 %v3566_v6 }
0x21ef   : > { %v3568_v27 = vpop.xlane.xlu1 %3567 }
0x21f0   : > { %v3573_v4 = vrot.slane %v3568_v27, %v5084_v54  ;;  %v3577_v37 = vrot.slane %v3568_v27, %v6070_v22  ;;  %v3581_v52 = vrot.slane %v3568_v27, %v6071_v43  ;;  %v3589_v7 = vrot.slane %v3568_v27, %v6072_v30 }
0x21f1   : > { %v3597_v2 = vrot.slane %v3568_v27, %v6074_v13  ;;  %v3585_v42 = vrot.slane %v3568_v27, %v6073_v40  ;;  %v3593_v44 = vrot.slane %v3568_v27, %v6095_v53  ;;  %v3601_v34 = vrot.slane %v3568_v27, %v6096_v10 }
0x21f2   : > { %v3610_v56 = vsub.f32 %v3496_v1, %v3573_v4  ;;  %v3611_v47 = vsub.f32 %v3499_v32, %v3577_v37  ;;  %v3612_v3 = vsub.f32 %v3502_v49, %v3581_v52  ;;  %v3614_v48 = vsub.f32 %v3508_v63, %v3589_v7 }
0x21f3   : > { %v3616_v58 = vsub.f32 %v3514_v60, %v3597_v2  ;;  %v3613_v46 = vsub.f32 %v3505_v0, %v3585_v42  ;;  %v3615_v38 = vsub.f32 %v3511_v17, %v3593_v44  ;;  %v3617_v16 = vsub.f32 %v3517_v8, %v3601_v34 }
0x21f4   : > { %v3618_v18 = vmul.f32 1.442695, %v3610_v56  ;;  %v3620_v23 = vmul.f32 1.442695, %v3611_v47  ;;  %v3626_v9 = vmul.f32 1.442695, %v3614_v48 }
0x21f5   : > { %v3622_v20 = vmul.f32 1.442695, %v3612_v3  ;;  %v3630_v19 = vmul.f32 1.442695, %v3616_v58  ;;  %v3624_v55 = vmul.f32 1.442695, %v3613_v46 }
0x21f6   : > { %4799 = vpow2.f32 %v3618_v18  ;;  %v3628_v32 = vmul.f32 1.442695, %v3615_v38  ;;  %v3632_v14 = vmul.f32 1.442695, %v3617_v16 }
0x21f7   : > { %4801 = vpow2.f32 %v3620_v23 }
0x21f8   : > { %4803 = vpow2.f32 %v3626_v9 }
0x21f9   : > { %4805 = vpow2.f32 %v3622_v20 }
0x21fa   : > { %4807 = vpow2.f32 %v3630_v19 }
0x21fb   : > { %4809 = vpow2.f32 %v3624_v55 }
0x21fc   : > { %4811 = vpow2.f32 %v3628_v32 }
0x21fd   : > { %4813 = vpow2.f32 %v3632_v14 }
0x2200   : > { %v4800_v1 = vpop.eup %4799 }
0x2201   : > { %v4802_v49 = vpop.eup %4801  ;;  %3643 = vperm.xlu0 %4612, %v4800_v1  }
0x2202   : > { %3646 = vperm.xlu1 %4611, %v4802_v49   ;;  %v4804_v11 = vpop.eup %4803 }
0x2203   : > { %v4806_v50 = vpop.eup %4805 }
0x2204   : > { %v4808_v63 = vpop.eup %4807 }
0x2205   : > { %3655 = vperm.xlu0 %4612, %v4804_v11   ;;  %v4810_v0 = vpop.eup %4809 }
0x2206   : > { %3649 = vperm.xlu1 %4611, %v4806_v50   ;;  %v4812_v21 = vpop.eup %4811 }
0x2207   : > { %v4814_v25 = vpop.eup %4813 }
0x2209   : > { %3661 = vperm.xlu0 %4612, %v4808_v63  }
0x220a   : > { %3652 = vperm.xlu1 %4611, %v4810_v0  }
0x220e   : > { %3658 = vperm.xlu1 %4611, %v4812_v21  }
0x2212   : > { %3664 = vperm.xlu1 %4611, %v4814_v25  }
0x2280   : > { %v3644_v41 = vpop.permute.xlu0 %3643 }
0x2281   : > { %v3647_v45 = vpop.permute.xlu1 %3646  ;;  %v3669_v60 = vrot.slane %v3644_v41, %v5157_v28 }
0x2282   : > { %v3673_v17 = vrot.slane %v3647_v45, %v5157_v28 }
0x2284   : > { %v3656_v62 = vpop.permute.xlu0 %3655  ;;  %v3698_v39 = vsel %vm998_vm3, %v3673_v17, %v3669_v60 }
0x2285   : > { %v3650_v26 = vpop.permute.xlu1 %3649  ;;  %v3685_v29 = vrot.slane %v3656_v62, %v5157_v28 }
0x2286   : > { %v3677_v35 = vrot.slane %v3650_v26, %v5157_v28 }
0x2288   : > { %v3699_v24 = vsel %vm1000_vm4, %v3677_v35, %v3698_v39  ;;  %v3662_v27 = vpop.permute.xlu0 %3661 }
0x2289   : > { %v3653_v61 = vpop.permute.xlu1 %3652  ;;  %v3693_v7 = vrot.slane %v3662_v27, %v5157_v28 }
0x228a   : > { %v3681_v8 = vrot.slane %v3653_v61, %v5157_v28  ;;  %v6100_v61 = vld [vmem:[#allocation21_spill] sm:$0xff] }
0x228c   : > { %v3700_v12 = vsel %vm1002_vm5, %v3681_v8, %v3699_v24 }
0x228d   : > { %v3659_v6 = vpop.permute.xlu1 %3658  ;;  %v3701_v37 = vsel %vm1004_vm6, %v3685_v29, %v3700_v12 }
0x228e   : > { %v3689_v4 = vrot.slane %v3659_v6, %v5157_v28 }
0x2290   : > { %v3702_v52 = vsel %vm1006_vm7, %v3689_v4, %v3701_v37  ;;  %v6101_v37 = vld [vmem:[#allocation22_spill] sm:$0xff] }
0x2291   : > { %v3665_v2 = vpop.permute.xlu1 %3664  ;;  %v3703_v47 = vsel %vm1008_vm8, %v3693_v7, %v3702_v52 }
0x2292   : > { %v3697_v56 = vrot.slane %v3665_v2, %v5157_v28 }
0x2294   : > { %v3704_v42 = vsel %vm1010_vm9, %v3697_v56, %v3703_v47 }
0x2295   : > { %v3706_v3 = vsel %vm1013_vm10, %v3704_v42, 0.0 }
0x2296   : > { %3707 = vadd.xlane.f32.xlu0 %v3706_v3 }
0x2323   : > { %v3708_v48 = vpop.xlane.xlu0 %3707 }
0x2324   : > { %4815 = vrcp.f32 %v3708_v48 }
0x232e   : > { %v4816_v18 = vpop.eup %4815 }
0x232f   : > { %v3742_v23 = vrot.slane %v4816_v18, %v6096_v10  ;;  %v3714_v58 = vrot.slane %v4816_v18, %v5084_v54  ;;  %v3718_v46 = vrot.slane %v4816_v18, %v6070_v22  ;;  %v3722_v20 = vrot.slane %v4816_v18, %v6071_v43 }
0x2330   : > { %v3726_v34 = vrot.slane %v4816_v18, %v6073_v40  ;;  %v3730_v55 = vrot.slane %v4816_v18, %v6072_v30  ;;  %v3734_v54 = vrot.slane %v4816_v18, %v6095_v53  ;;  %v3738_v22 = vrot.slane %v4816_v18, %v6074_v13  ;;  %v6099_v13 = vld [vmem:[#allocation20_spill] sm:$0xff] }
0x2331   : > { %v3758_v9 = vmul.f32 %v4814_v25, %v3742_v23  ;;  %v3751_v44 = vmul.f32 %v4800_v1, %v3714_v58  ;;  %v3752_v28 = vmul.f32 %v4802_v49, %v3718_v46  ;;  %v3753_v19 = vmul.f32 %v4806_v50, %v3722_v20  ;;  %v6097_v1 = vld [vmem:[#allocation18_spill] sm:$0xff]  ;;  %v6098_v50 = vld [vmem:[#allocation19_spill] sm:$0xff] }
0x2332   : > { %v3754_v38 = vmul.f32 %v4810_v0, %v3726_v34  ;;  %v3755_v10 = vmul.f32 %v4804_v11, %v3730_v55  ;;  %v3756_v16 = vmul.f32 %v4812_v21, %v3734_v54  ;;  %v3757_v32 = vmul.f32 %v4808_v63, %v3738_v22  ;;  %v6102_v58 = vld [vmem:[#allocation23_spill] sm:$0xff]  ;;  %v6103_v22 = vld [vmem:[#allocation24_spill] sm:$0xff] }
0x2333   : > { %3796 = vperm.xlu0 %4612, %v3758_v9   ;;  %3761 = vperm.xlu1 %4611, %v3751_v44  }
0x2337   : > { %3766 = vperm.xlu1 %4611, %v3752_v28  }
0x233b   : > { %3771 = vperm.xlu1 %4611, %v3753_v19  }
0x233f   : > { %3776 = vperm.xlu1 %4611, %v3754_v38  }
0x2343   : > { %3781 = vperm.xlu1 %4611, %v3755_v10  }
0x2347   : > { %3786 = vperm.xlu1 %4611, %v3756_v16  }
0x234b   : > { %3791 = vperm.xlu1 %4611, %v3757_v32  }
0x23b2   : > { %v3762_v43 = vpop.permute.xlu1 %3761  ;;  %v3797_v40 = vpop.permute.xlu0 %3796 }
0x23b3   : > { %v3799_v49 = vmul.f32 %v6097_v1, %v3762_v43  ;;  %v3806_v53 = vmul.f32 %v6088_v33, %v3797_v40 }
0x23b5   : > { %v3807_v30 = vsel %vm609_vm2, %v3799_v49, 0.0  ;;  %v3856_v17 = vsel %vm609_vm2, %v3806_v53, 0.0 }
0x23b6   : > { %v3767_v14 = vpop.permute.xlu1 %3766  ;;  %v3808_v45 = vrot.slane %v3807_v30, 4  ;;  %v3857_v24 = vrot.slane %v3856_v17, 4 }
0x23b7   : > { %v3800_v0 = vmul.f32 %v6098_v50, %v3767_v14 }
0x23b8   : > { %v3809_v62 = vadd.f32 %v3808_v45, %v3807_v30  ;;  %v3858_v7 = vadd.f32 %v3857_v24, %v3856_v17 }
0x23b9   : > { %v3814_v11 = vsel %vm609_vm2, %v3800_v0, 0.0 }
0x23ba   : > { %v3815_v25 = vrot.slane %v3814_v11, 4  ;;  %v3772_v21 = vpop.permute.xlu1 %3771  ;;  %v3810_v27 = vrot.slane %v3809_v62, 2  ;;  %v3859_v46 = vrot.slane %v3858_v7, 2 }
0x23bb   : > { %v3801_v41 = vmul.f32 %v6099_v13, %v3772_v21 }
0x23bc   : > { %v3816_v63 = vadd.f32 %v3815_v25, %v3814_v11  ;;  %v3811_v18 = vadd.f32 %v3810_v27, %v3809_v62  ;;  %v3860_v49 = vadd.f32 %v3859_v46, %v3858_v7 }
0x23bd   : > { %v3821_v26 = vsel %vm609_vm2, %v3801_v41, 0.0 }
0x23be   : > { %v3822_v60 = vrot.slane %v3821_v26, 4  ;;  %v3777_v35 = vpop.permute.xlu1 %3776  ;;  %v3817_v12 = vrot.slane %v3816_v63, 2  ;;  %v3812_v54 = vrot.slane %v3811_v18, 1  ;;  %v3861_v41 = vrot.slane %v3860_v49, 1 }
0x23bf   : > { %v3802_v39 = vmul.f32 %v6100_v61, %v3777_v35 }
0x23c0   : > { %v3823_v8 = vadd.f32 %v3822_v60, %v3821_v26  ;;  %v3818_v2 = vadd.f32 %v3817_v12, %v3816_v63  ;;  %v3813_v53 = vadd.f32 %v3812_v54, %v3811_v18  ;;  %v3862_v24 = vadd.f32 %v3861_v41, %v3860_v49 }
0x23c1   : > { %v3828_v33 = vsel %vm609_vm2, %v3802_v39, 0.0 }
0x23c2   : > { %v3824_v29 = vrot.slane %v3823_v8, 2  ;;  %v3782_v6 = vpop.permute.xlu1 %3781  ;;  %v3829_v4 = vrot.slane %v3828_v33, 4  ;;  %v3819_v28 = vrot.slane %v3818_v2, 1  ;;  %v3863_v35 = vpack.c.bf16 %v3813_v53, %v3813_v53 }
0x23c3   : > { %v3803_v52 = vmul.f32 %v6101_v37, %v3782_v6  ;;  %v3870_v7 = vpack.c.bf16 %v3862_v24, %v3862_v24 }
0x23c4   : > { %v3830_v56 = vadd.f32 %v3829_v4, %v3828_v33  ;;  %v3825_v42 = vadd.f32 %v3824_v29, %v3823_v8  ;;  %v3820_v14 = vadd.f32 %v3819_v28, %v3818_v2  ;;  %v3919_v27 = vunpack.c.l.b16 %v3863_v35 }
0x23c5   : > { %v3835_v47 = vsel %vm609_vm2, %v3803_v52, 0.0 }
0x23c6   : > { %v3836_v3 = vrot.slane %v3835_v47, 4  ;;  %v3787_v48 = vpop.permute.xlu1 %3786  ;;  %v3831_v23 = vrot.slane %v3830_v56, 2  ;;  %v3826_v34 = vrot.slane %v3825_v42, 1  ;;  %v3864_v63 = vpack.c.bf16 %v3820_v14, %v3820_v14 }
0x23c7   : > { %v3804_v9 = vmul.f32 %v6102_v58, %v3787_v48 }
0x23c8   : > { %v3837_v44 = vadd.f32 %v3836_v3, %v3835_v47  ;;  %v3832_v20 = vadd.f32 %v3831_v23, %v3830_v56  ;;  %v3827_v50 = vadd.f32 %v3826_v34, %v3825_v42  ;;  %v3920_v12 = vunpack.c.l.b16 %v3864_v63 }
0x23c9   : > { %v3842_v19 = vsel %vm609_vm2, %v3804_v9, 0.0  ;;  %v3926_v23 = vunpack.c.l.b16 %v3870_v7 }
0x23ca   : > { %v3838_v38 = vrot.slane %v3837_v44, 2  ;;  %v3843_v55 = vrot.slane %v3842_v19, 4  ;;  %v3792_v10 = vpop.permute.xlu1 %3791  ;;  %v3833_v16 = vrot.slane %v3832_v20, 1  ;;  %v3865_v26 = vpack.c.bf16 %v3827_v50, %v3827_v50  ;;  %v6105_v50 = vld [vmem:[#allocation11_spill] sm:$0xff] }
0x23cb   : > { %v3805_v32 = vmul.f32 %v6103_v22, %v3792_v10  ;;  %v3927_v2 = vsel %vm998_vm3, %v3920_v12, %v3919_v27 }
0x23cc   : > { %v3839_v43 = vadd.f32 %v3838_v38, %v3837_v44  ;;  %v3844_v1 = vadd.f32 %v3843_v55, %v3842_v19  ;;  %v3834_v25 = vadd.f32 %v3833_v16, %v3832_v20  ;;  %v3921_v33 = vunpack.c.l.b16 %v3865_v26 }
0x23cd   : > { %v3849_v40 = vsel %vm609_vm2, %v3805_v32, 0.0 }
0x23ce   : > { %v3840_v0 = vrot.slane %v3839_v43, 1  ;;  %v3845_v30 = vrot.slane %v3844_v1, 2  ;;  %v3850_v11 = vrot.slane %v3849_v40, 4  ;;  %v3866_v62 = vpack.c.bf16 %v3834_v25, %v3834_v25 }
0x23cf   : > { %v3928_v47 = vsel %vm1000_vm4, %v3921_v33, %v3927_v2 }
0x23d0   : > { %v3841_v21 = vadd.f32 %v3840_v0, %v3839_v43  ;;  %v3846_v45 = vadd.f32 %v3845_v30, %v3844_v1  ;;  %v3851_v13 = vadd.f32 %v3850_v11, %v3849_v40  ;;  %v3922_v4 = vunpack.c.l.b16 %v3866_v62  ;;  %v6104_v40 = vld [vmem:[#allocation26_spill] sm:$0xff] }
0x23d2   : > { %v3847_v17 = vrot.slane %v3846_v45, 1  ;;  %v3852_v60 = vrot.slane %v3851_v13, 2  ;;  %v3867_v61 = vpack.c.bf16 %v3841_v21, %v3841_v21  ;;  %v3929_v3 = vsel %vm1002_vm5, %v3922_v4, %v3928_v47 }
0x23d4   : > { %v3848_v39 = vadd.f32 %v3847_v17, %v3846_v45  ;;  %v3853_v8 = vadd.f32 %v3852_v60, %v3851_v13  ;;  %v3923_v37 = vunpack.c.l.b16 %v3867_v61 }
0x23d6   : > { %v3868_v29 = vpack.c.bf16 %v3848_v39, %v3848_v39  ;;  %v3854_v6 = vrot.slane %v3853_v8, 1  ;;  %v3930_v48 = vsel %vm1004_vm6, %v3923_v37, %v3929_v3 }
0x23d8   : > { %v3855_v52 = vadd.f32 %v3854_v6, %v3853_v8  ;;  %v3924_v56 = vunpack.c.l.b16 %v3868_v29 }
0x23da   : > { %v3869_v42 = vpack.c.bf16 %v3855_v52, %v3855_v52  ;;  %v3931_v58 = vsel %vm1006_vm7, %v3924_v56, %v3930_v48 }
0x23dc   : > { %v3925_v18 = vunpack.c.l.b16 %v3869_v42 }
0x23de   : > { %v3932_v9 = vsel %vm1008_vm8, %v3925_v18, %v3931_v58 }
0x23df   : > { %v3933_v44 = vsel %vm1010_vm9, %v3926_v23, %v3932_v9 }
0x23e0   : > { %v3934_v46 = vpack.c.b16 %v3933_v44, %v3933_v44 }
0x23e2   : > { %4548 = vmatmul.mubr.msk.bf16.vlgmr.msra.gmra.mrb[28].mxu0 %vm609_vm2, %v3934_v46 }
0x24b5   : > { %v3972_v28 = vpop.f32.mrb[28].mxu0 }
0x24b6   : > { %v3973_v20 = vadd.f32 %v3972_v28, %v5840_v15  ;;  %v4549_v19 = vpop.f32.mrb[29].mxu0 }
0x24b7   : > { %v3975_v34 = vpop.f32.mrb[30].mxu0 }
0x24b8   : > { %v4018_v38 = vadd.f32 %v5855_v59, %v3973_v20  ;;  %v4550_v55 = vpop.f32.mrb[31].mxu0 }
0x24ba   : > { %v4019_v10 = vadd.f32 %v5776_v57, %v4018_v38 }
0x24bc   : > { %4817 = vtanh.f32 %v4019_v10  ;;  %v4253_v16 = vmul.f32 -1.442695, %v4019_v10 }
0x24be   : > { %4819 = vpow2.f32 %v4253_v16 }
0x24c6   : > { %v4818_v54 = vpop.eup %4817 }
0x24c7   : > { %4029 = vrot.lane.b32.xlu1 %v4818_v54, %s4868_s17 }
0x24c8   : > { %v4820_v22 = vpop.eup %4819 }
0x24c9   : > { %v4023_v32 = vadd.f32 1.0, %v4820_v22 }
0x24cb   : > { %4821 = vrcp.f32 %v4023_v32 }
0x24d5   : > { %v4822_v43 = vpop.eup %4821 }
0x24d6   : > { %v4027_v15 = vmul.f32 %v4822_v43, %v5782_v36 }
0x2539   : > { %v4030_v1 = vpop.permute.xlu1 %4029 }
0x253a   : > { %v4032_v49 = vmul.f32 %v4822_v43, %v4030_v1 }
0x253c   : > { %4034 = vrot.lane.b32.xlu1 %v4032_v49, %s4869_s18 }
0x25ae   : > { %v4035_v59 = vpop.permute.xlu1 %4034 }
0x25af   : > { %v4037_v14 = vadd.f32 %v4035_v59, %v4027_v15 }
0x25b1   : > { %4823 = vtanh.f32 %v4037_v14 }
0x25bb   : > { %v4824_v57 = vpop.eup %4823 }
0x25bc   : > { %4040 = vrot.lane.b32.xlu1 %v4824_v57, %s4868_s17 }
0x25c0   : > { %1547 = vrot.lane.b32.xlu1 %v6104_v40, %s4869_s18 }
0x25c4   : > { %2379 = vrot.lane.b32.xlu1 %v6105_v50, %s4869_s18 }
0x25c8   : > { %3212 = vrot.lane.b32.xlu1 %v5786_v5, %s4869_s18 }
0x25cc   : > { %4051 = vrot.lane.b32.xlu1 %v5814_v51, %s4869_s18 }
0x25d0   : > { %4062 = vrot.lane.b32.xlu1 %v4037_v14, %s4872_s16 }
0x262e   : > { %v4041_v36 = vpop.permute.xlu1 %4040 }
0x262f   : > { %v4043_v0 = vmul.f32 %v4822_v43, %v4041_v36 }
0x2631   : > { %4045 = vrot.lane.b32.xlu0 %v4043_v0, %s4869_s18 }
0x2632   : > { %v1548_v30 = vpop.permute.xlu1 %1547 }
0x2633   : > { %1550 = vst.msk [vmem:[%s4969_s19] sm:$0xff] %vm609_vm2, %v1548_v30 }
0x2635   : > { %4056 = vrot.lane.b32.xlu0 %v5810_v31, %s4872_s16 }
0x2636   : > { %v2380_v11 = vpop.permute.xlu1 %2379 }
0x2637   : > { %4234 = vst.msk [vmem:[%s4969_s19 + $0x8] sm:$0xff] %vm609_vm2, %v2380_v11 }
0x263a   : > { %v3213_v53 = vpop.permute.xlu1 %3212 }
0x263b   : > { %4244 = vst.msk [vmem:[%s4969_s19 + $0x10] sm:$0xff] %vm609_vm2, %v3213_v53 }
0x263e   : > { %v4052_v5 = vpop.permute.xlu1 %4051 }
0x263f   : > { %4054 = vst.msk [vmem:[#allocation2] sm:$0xff] %vm609_vm2, %v4052_v5 }
0x2642   : > { %v4063_v51 = vpop.permute.xlu1 %4062 }
0x2643   : > { %4065 = vst.msk [vmem:[#allocation5] sm:$0xff] %vm609_vm2, %v4063_v51 }
0x26a3   : > { %v4046_v25 = vpop.permute.xlu0 %4045 }
0x26a4   : > { %4254 = vst.msk [vmem:[%s4969_s19 + $0x18] sm:$0xff] %vm609_vm2, %v4046_v25  ;;  %4060 = vst.msk [vmem:[#allocation4] sm:$0xff] %vm609_vm2, %v4046_v25 }
0x26a7   : > { %v4057_v21 = vpop.permute.xlu0 %4056 }
0x26a8   : > { %4059 = vst.msk [vmem:[#allocation3] sm:$0xff] %vm609_vm2, %v4057_v21 }
0x26a9 PF: > { %s23_s27 = sadd.s32 1, %s4863_s27   ;;  %s6106_s25 = smov %s4859_s26 }
0x26aa   : > { %p20_p6 = scmp.ge.s32.totalorder %s23_s27, 4   ;;  %s6107_s26 = smov %s6109_s28 }
0x26ac   :  { %22 = sbr.rel (!%p20_p6) target bundleno = 2 (0x2), region = 121 }

</bundles_post_ra>
